<compile_context>
chip_gen: v6e
topology: v6e:2x2x1
jax: 0.10.0
libtpu: 0.0.40
codegen_flags: <defaults>
</compile_context>

<pallas_src>
import functools

import jax
import jax.numpy as jnp
from jax.experimental import pallas as pl
from jax.experimental.pallas import tpu as pltpu


# ----------------------------------------------------------------------------- kernel
def span_mlp_kernel(x_ref, w2_ref, b2_ref, w3_ref, b3_ref, o_ref, *, n_chunks, chunk):
    # x_ref: (tm, 1024) bf16 == relu(span[0](layer(emb(ids)))) gathered from table1.
    x = x_ref[...]
    acc = jnp.zeros((x_ref.shape[0], o_ref.shape[1]), jnp.float32)
    # span[1] (1024 -> 2048) + ReLU computed in 512-column chunks; each chunk is
    # immediately consumed by span[2] (2048 -> F_out) and accumulated in f32, so
    # the full (tm, 2048) f32 intermediate is never materialized.
    for c in range(n_chunks):                       # static unroll (<= 4 iters)
        lo = c * chunk
        h = jnp.dot(x, w2_ref[:, lo:lo + chunk], preferred_element_type=jnp.float32)
        h = jnp.maximum(h + b2_ref[:, lo:lo + chunk], 0.0)
        acc = acc + jnp.dot(h.astype(jnp.bfloat16), w3_ref[lo:lo + chunk, :],
                            preferred_element_type=jnp.float32)
    # span[2] bias + final ReLU.
    o_ref[...] = jnp.maximum(acc + b3_ref[...], 0.0).astype(o_ref.dtype)


# ----------------------------------------------------------------------------- helpers
def _round_up(a, b):
    return ((a + b - 1) // b) * b


def _vmem_limit_bytes():
    """~3/4 of physical VMEM: 96 MiB on v5e/v6e (128 MiB), 48 MiB on v7x (64 MiB)."""
    try:
        cap = pltpu.get_tpu_info().vmem_capacity_bytes
        return int(min(cap * 3 // 4, 96 << 20))
    except Exception:
        return 48 << 20  # safe on every generation


@functools.cache
def _buffered1_supported():
    """One-time STATIC probe (lower + compile of a tiny kernel): does this
    JAX/Mosaic build accept single-buffered operands (pl.Buffered(1))?
    Cached, so it never adds per-call work and never swallows runtime errors
    of the real kernel."""
    try:
        def copy_k(x_ref, o_ref):
            o_ref[...] = x_ref[...]

        f = pl.pallas_call(
            copy_k,
            out_shape=jax.ShapeDtypeStruct((8, 128), jnp.float32),
            grid=(2,),
            in_specs=[pl.BlockSpec((8, 128), lambda i: (0, 0),
                                   pipeline_mode=pl.Buffered(1))],
            out_specs=pl.BlockSpec((8, 128), lambda i: (0, 0)),
        )
        jax.jit(f).lower(jax.ShapeDtypeStruct((8, 128), jnp.float32)).compile()
        return True
    except Exception:
        return False


def _span_mlp_call(x, w2, b2, w3, b3, *, tm, chunk, out_dtype, single_buffer_weights):
    M, H1 = x.shape
    H2, F_out = w3.shape
    if H2 % chunk != 0:
        chunk = H2
    kernel = functools.partial(span_mlp_kernel, n_chunks=H2 // chunk, chunk=chunk)

    const = lambda i: (0, 0)
    if single_buffer_weights:
        # Constant index_map -> single resident VMEM copy (no double buffer).
        wspec = lambda a: pl.BlockSpec(a.shape, const, pipeline_mode=pl.Buffered(1))
    else:
        wspec = lambda a: pl.BlockSpec(a.shape, const)

    return pl.pallas_call(
        kernel,
        out_shape=jax.ShapeDtypeStruct((M, F_out), out_dtype),
        grid_spec=pltpu.PrefetchScalarGridSpec(
            num_scalar_prefetch=0,
            grid=(pl.cdiv(M, tm),),
            in_specs=[
                pl.BlockSpec((tm, H1), lambda i: (i, 0)),
                wspec(w2), wspec(b2),
                wspec(w3), wspec(b3),
            ],
            out_specs=pl.BlockSpec((tm, F_out), lambda i: (i, 0)),
        ),
        compiler_params=pltpu.CompilerParams(
            dimension_semantics=("parallel",),
            vmem_limit_bytes=_vmem_limit_bytes(),
        ),
    )(x, w2, b2, w3, b3)


# ----------------------------------------------------------------------------- prepare
def prepare_params(params):
    """One-time (per parameter set) preprocessing, hoisted out of the forward:
      * fold Embedding -> Linear -> span[0] -> ReLU into a single table (exact f32),
      * cast the remaining matmul operands to bf16 once (MXU-native).
    For this module V is small (vocabsize=50), so table1 is tiny; for very large
    vocabularies one would instead keep table0 (V, F_in) and a 3-layer kernel."""
    emb = params["embedding"]        # (V, E) f32, row 0 zeroed (padding_idx=0)
    w0, b0 = params["layer"]         # (E, F_in), (1, F_in)
    w1, b1 = params["span0"]         # (F_in, 1024), (1, 1024)
    w2, b2 = params["span1"]         # (1024, 2048), (1, 2048)
    w3, b3 = params["span2"]         # (2048, F_out), (1, F_out)

    table0 = jnp.dot(emb, w0, preferred_element_type=jnp.float32) + b0          # (V, F_in)
    table1 = jnp.maximum(
        jnp.dot(table0, w1, preferred_element_type=jnp.float32) + b1, 0.0)      # (V, 1024)

    return {
        "table": table1.astype(jnp.bfloat16),
        "w2": w2.astype(jnp.bfloat16), "b2": b2,
        "w3": w3.astype(jnp.bfloat16), "b3": b3,
    }


# ----------------------------------------------------------------------------- forward
def span_encoder_forward(span_context, prepared, *, tm_max=512, chunk=512,
                         out_dtype=jnp.float32):
    table = prepared["table"]                    # (V, 1024) bf16
    w2, b2 = prepared["w2"], prepared["b2"]
    w3, b3 = prepared["w3"], prepared["b3"]

    B, S = span_context.shape
    F_out = w3.shape[1]

    # Gather the folded-activation rows (plain-JAX glue; the Embedding lookup
    # has no separate kernel — it is folded into table1).
    x = table[span_context.reshape(-1)]          # (M, 1024) bf16
    M = x.shape[0]

    # Single grid step for small M (never split tiny M across steps/cores);
    # tm=512 for large M amortizes per-step overhead and fits v7x VMEM.
    tm = min(tm_max, _round_up(M, 8))

    out = _span_mlp_call(x, w2, b2, w3, b3, tm=tm, chunk=chunk,
                         out_dtype=out_dtype,
                         single_buffer_weights=_buffered1_supported())
    return out.reshape(B, S, F_out)


# ----------------------------------------------------------------------------- reference
def span_encoder_reference(span_context, params):
    """Pure-JAX f32 reference matching the PyTorch forward exactly."""
    emb = params["embedding"]
    w0, b0 = params["layer"]
    w1, b1 = params["span0"]
    w2, b2 = params["span1"]
    w3, b3 = params["span2"]
    x = emb[span_context]                        # (B, S, E)
    x = x @ w0 + b0
    x = jnp.maximum(x @ w1 + b1, 0.0)
    x = jnp.maximum(x @ w2 + b2, 0.0)
    x = jnp.maximum(x @ w3 + b3, 0.0)
    return x


# ----------------------------------------------------------------------------- params
def init_params(key, vocabsize, embed_dim, in_feature, out_feature):
    """Deterministic synthetic init matching the PyTorch parameter shapes."""
    ks = jax.random.split(key, 9)

    def linear(kw, kb, fan_in, fan_out):
        bound = 1.0 / jnp.sqrt(jnp.float32(fan_in))
        w = jax.random.uniform(kw, (fan_in, fan_out), jnp.float32, -bound, bound)
        b = jax.random.uniform(kb, (1, fan_out), jnp.float32, -bound, bound)
        return w, b

    emb = jax.random.normal(ks[0], (vocabsize, embed_dim), jnp.float32)
    emb = emb.at[0].set(0.0)                     # padding_idx=0

    return {
        "embedding": emb,
        "layer": linear(ks[1], ks[2], embed_dim, in_feature),
        "span0": linear(ks[3], ks[4], in_feature, 1024),
        "span1": linear(ks[5], ks[6], 1024, 2048),
        "span2": linear(ks[7], ks[8], 2048, out_feature),
    }


if __name__ == "__main__":
    # Small shapes consistent with the module's forward.
    num_layer = 3          # ctor arg of the PyTorch module; unused by its forward
    vocabsize = 50
    embed_dim = 32
    in_feature = 64
    out_feature = 128
    B, S = 2, 8

    key = jax.random.PRNGKey(0)
    k_ids, k_params = jax.random.split(key)

    params = init_params(k_params, vocabsize, embed_dim, in_feature, out_feature)
    span_context = jax.random.randint(k_ids, (B, S), 0, vocabsize, dtype=jnp.int32)

    # One-time static decisions / constant folds (hoisted out of the per-call path).
    _ = _buffered1_supported()
    prepared = jax.block_until_ready(prepare_params(params))

    fwd = jax.jit(span_encoder_forward)
    out = jax.block_until_ready(fwd(span_context, prepared))

    assert out.shape == (B, S, out_feature)
    assert bool(jnp.all(jnp.isfinite(out)))

    # Sanity-check against the f32 reference (bf16 matmul operands => small deviation).
    ref = span_encoder_reference(span_context, params)
    rel = jnp.linalg.norm(out.astype(jnp.float32) - ref) / (jnp.linalg.norm(ref) + 1e-6)
    assert float(rel) < 5e-2, f"relative error too large: {float(rel)}"

    print("KERNEL_OK")
</pallas_src>

<mosaic_0001>
module attributes {stable_mosaic.version = 11 : i64} {
  func.func @span_mlp_kernel(%arg0: i32, %arg1: memref<16x1024xbf16, #tpu.memory_space<vmem>>, %arg2: memref<1024x2048xbf16, #tpu.memory_space<vmem>>, %arg3: memref<1x2048xf32, #tpu.memory_space<vmem>>, %arg4: memref<2048x128xbf16, #tpu.memory_space<vmem>>, %arg5: memref<1x128xf32, #tpu.memory_space<vmem>>, %arg6: memref<16x128xf32, #tpu.memory_space<vmem>>) attributes {dimension_semantics = [#tpu.dimension_semantics<parallel>], iteration_bounds = array<i64: 1>, scalar_prefetch = 0 : i64, scratch_operands = 0 : i64, tpu.core_type = #tpu.core_type<tc>, window_params = [{transform_indices = @transform_0, window_bounds = array<i64: 16, 1024>}, {pipeline_mode = #tpu.pipeline_mode<synchronous>, transform_indices = @transform_1, window_bounds = array<i64: 1024, 2048>}, {pipeline_mode = #tpu.pipeline_mode<synchronous>, transform_indices = @transform_2, window_bounds = array<i64: 1, 2048>}, {pipeline_mode = #tpu.pipeline_mode<synchronous>, transform_indices = @transform_3, window_bounds = array<i64: 2048, 128>}, {pipeline_mode = #tpu.pipeline_mode<synchronous>, transform_indices = @transform_4, window_bounds = array<i64: 1, 128>}, {transform_indices = @transform_5, window_bounds = array<i64: 16, 128>}]} {
    %c0 = arith.constant 0 : index
    %c0_0 = arith.constant 0 : index
    %0 = vector.load %arg1[%c0, %c0_0] : memref<16x1024xbf16, #tpu.memory_space<vmem>>, vector<16x1024xbf16>
    %cst = arith.constant 0.000000e+00 : f32
    %1 = vector.broadcast %cst : f32 to vector<16x128xf32>
    %c0_1 = arith.constant 0 : index
    %c0_2 = arith.constant 0 : index
    %2 = vector.load %arg2[%c0_1, %c0_2] : memref<1024x2048xbf16, #tpu.memory_space<vmem>>, vector<1024x512xbf16>
    %cst_3 = arith.constant dense<0.000000e+00> : vector<16x512xf32>
    %3 = tpu.matmul %0, %2, %cst_3 {dimension_numbers = #tpu.dot_dimension_numbers<[1], [0], [0], [1], [0, 0, 1, 1], [], []>} : vector<16x1024xbf16>, vector<1024x512xbf16>, vector<16x512xf32> -> vector<16x512xf32>
    %c0_4 = arith.constant 0 : index
    %c0_5 = arith.constant 0 : index
    %4 = vector.load %arg3[%c0_4, %c0_5] : memref<1x2048xf32, #tpu.memory_space<vmem>>, vector<1x512xf32>
    %5 = vector.broadcast %4 : vector<1x512xf32> to vector<16x512xf32>
    %6 = arith.addf %3, %5 : vector<16x512xf32>
    %cst_6 = arith.constant 0.000000e+00 : f32
    %7 = vector.broadcast %cst_6 : f32 to vector<16x512xf32>
    %8 = arith.maximumf %6, %7 : vector<16x512xf32>
    %9 = arith.truncf %8 : vector<16x512xf32> to vector<16x512xbf16>
    %c0_7 = arith.constant 0 : index
    %c0_8 = arith.constant 0 : index
    %10 = vector.load %arg4[%c0_7, %c0_8] : memref<2048x128xbf16, #tpu.memory_space<vmem>>, vector<512x128xbf16>
    %cst_9 = arith.constant dense<0.000000e+00> : vector<16x128xf32>
    %11 = tpu.matmul %9, %10, %cst_9 {dimension_numbers = #tpu.dot_dimension_numbers<[1], [0], [0], [1], [0, 0, 1, 1], [], []>} : vector<16x512xbf16>, vector<512x128xbf16>, vector<16x128xf32> -> vector<16x128xf32>
    %12 = arith.addf %1, %11 : vector<16x128xf32>
    %c0_10 = arith.constant 0 : index
    %c512 = arith.constant 512 : index
    %13 = vector.load %arg2[%c0_10, %c512] : memref<1024x2048xbf16, #tpu.memory_space<vmem>>, vector<1024x512xbf16>
    %cst_11 = arith.constant dense<0.000000e+00> : vector<16x512xf32>
    %14 = tpu.matmul %0, %13, %cst_11 {dimension_numbers = #tpu.dot_dimension_numbers<[1], [0], [0], [1], [0, 0, 1, 1], [], []>} : vector<16x1024xbf16>, vector<1024x512xbf16>, vector<16x512xf32> -> vector<16x512xf32>
    %c0_12 = arith.constant 0 : index
    %c512_13 = arith.constant 512 : index
    %15 = vector.load %arg3[%c0_12, %c512_13] : memref<1x2048xf32, #tpu.memory_space<vmem>>, vector<1x512xf32>
    %16 = vector.broadcast %15 : vector<1x512xf32> to vector<16x512xf32>
    %17 = arith.addf %14, %16 : vector<16x512xf32>
    %cst_14 = arith.constant 0.000000e+00 : f32
    %18 = vector.broadcast %cst_14 : f32 to vector<16x512xf32>
    %19 = arith.maximumf %17, %18 : vector<16x512xf32>
    %20 = arith.truncf %19 : vector<16x512xf32> to vector<16x512xbf16>
    %c512_15 = arith.constant 512 : index
    %c0_16 = arith.constant 0 : index
    %21 = vector.load %arg4[%c512_15, %c0_16] : memref<2048x128xbf16, #tpu.memory_space<vmem>>, vector<512x128xbf16>
    %cst_17 = arith.constant dense<0.000000e+00> : vector<16x128xf32>
    %22 = tpu.matmul %20, %21, %cst_17 {dimension_numbers = #tpu.dot_dimension_numbers<[1], [0], [0], [1], [0, 0, 1, 1], [], []>} : vector<16x512xbf16>, vector<512x128xbf16>, vector<16x128xf32> -> vector<16x128xf32>
    %23 = arith.addf %12, %22 : vector<16x128xf32>
    %c0_18 = arith.constant 0 : index
    %c1024 = arith.constant 1024 : index
    %24 = vector.load %arg2[%c0_18, %c1024] : memref<1024x2048xbf16, #tpu.memory_space<vmem>>, vector<1024x512xbf16>
    %cst_19 = arith.constant dense<0.000000e+00> : vector<16x512xf32>
    %25 = tpu.matmul %0, %24, %cst_19 {dimension_numbers = #tpu.dot_dimension_numbers<[1], [0], [0], [1], [0, 0, 1, 1], [], []>} : vector<16x1024xbf16>, vector<1024x512xbf16>, vector<16x512xf32> -> vector<16x512xf32>
    %c0_20 = arith.constant 0 : index
    %c1024_21 = arith.constant 1024 : index
    %26 = vector.load %arg3[%c0_20, %c1024_21] : memref<1x2048xf32, #tpu.memory_space<vmem>>, vector<1x512xf32>
    %27 = vector.broadcast %26 : vector<1x512xf32> to vector<16x512xf32>
    %28 = arith.addf %25, %27 : vector<16x512xf32>
    %cst_22 = arith.constant 0.000000e+00 : f32
    %29 = vector.broadcast %cst_22 : f32 to vector<16x512xf32>
    %30 = arith.maximumf %28, %29 : vector<16x512xf32>
    %31 = arith.truncf %30 : vector<16x512xf32> to vector<16x512xbf16>
    %c1024_23 = arith.constant 1024 : index
    %c0_24 = arith.constant 0 : index
    %32 = vector.load %arg4[%c1024_23, %c0_24] : memref<2048x128xbf16, #tpu.memory_space<vmem>>, vector<512x128xbf16>
    %cst_25 = arith.constant dense<0.000000e+00> : vector<16x128xf32>
    %33 = tpu.matmul %31, %32, %cst_25 {dimension_numbers = #tpu.dot_dimension_numbers<[1], [0], [0], [1], [0, 0, 1, 1], [], []>} : vector<16x512xbf16>, vector<512x128xbf16>, vector<16x128xf32> -> vector<16x128xf32>
    %34 = arith.addf %23, %33 : vector<16x128xf32>
    %c0_26 = arith.constant 0 : index
    %c1536 = arith.constant 1536 : index
    %35 = vector.load %arg2[%c0_26, %c1536] : memref<1024x2048xbf16, #tpu.memory_space<vmem>>, vector<1024x512xbf16>
    %cst_27 = arith.constant dense<0.000000e+00> : vector<16x512xf32>
    %36 = tpu.matmul %0, %35, %cst_27 {dimension_numbers = #tpu.dot_dimension_numbers<[1], [0], [0], [1], [0, 0, 1, 1], [], []>} : vector<16x1024xbf16>, vector<1024x512xbf16>, vector<16x512xf32> -> vector<16x512xf32>
    %c0_28 = arith.constant 0 : index
    %c1536_29 = arith.constant 1536 : index
    %37 = vector.load %arg3[%c0_28, %c1536_29] : memref<1x2048xf32, #tpu.memory_space<vmem>>, vector<1x512xf32>
    %38 = vector.broadcast %37 : vector<1x512xf32> to vector<16x512xf32>
    %39 = arith.addf %36, %38 : vector<16x512xf32>
    %cst_30 = arith.constant 0.000000e+00 : f32
    %40 = vector.broadcast %cst_30 : f32 to vector<16x512xf32>
    %41 = arith.maximumf %39, %40 : vector<16x512xf32>
    %42 = arith.truncf %41 : vector<16x512xf32> to vector<16x512xbf16>
    %c1536_31 = arith.constant 1536 : index
    %c0_32 = arith.constant 0 : index
    %43 = vector.load %arg4[%c1536_31, %c0_32] : memref<2048x128xbf16, #tpu.memory_space<vmem>>, vector<512x128xbf16>
    %cst_33 = arith.constant dense<0.000000e+00> : vector<16x128xf32>
    %44 = tpu.matmul %42, %43, %cst_33 {dimension_numbers = #tpu.dot_dimension_numbers<[1], [0], [0], [1], [0, 0, 1, 1], [], []>} : vector<16x512xbf16>, vector<512x128xbf16>, vector<16x128xf32> -> vector<16x128xf32>
    %45 = arith.addf %34, %44 : vector<16x128xf32>
    %c0_34 = arith.constant 0 : index
    %c0_35 = arith.constant 0 : index
    %46 = vector.load %arg5[%c0_34, %c0_35] : memref<1x128xf32, #tpu.memory_space<vmem>>, vector<1x128xf32>
    %47 = vector.broadcast %46 : vector<1x128xf32> to vector<16x128xf32>
    %48 = arith.addf %45, %47 : vector<16x128xf32>
    %cst_36 = arith.constant 0.000000e+00 : f32
    %49 = vector.broadcast %cst_36 : f32 to vector<16x128xf32>
    %50 = arith.maximumf %48, %49 : vector<16x128xf32>
    %c0_37 = arith.constant 0 : index
    %c0_38 = arith.constant 0 : index
    %51 = vector.load %arg6[%c0_37, %c0_38] : memref<16x128xf32, #tpu.memory_space<vmem>>, vector<16x128xf32>
    tpu.vector_store %arg6[%c0_37, %c0_38], %50 {strides = array<i32>} : memref<16x128xf32, #tpu.memory_space<vmem>>, vector<16x128xf32>,
    return
  }
  func.func @transform_0(%arg0: i32) -> (i32, i32) {
    %c0_i32 = arith.constant 0 : i32
    %c0_i32_0 = arith.constant 0 : i32
    return %arg0, %c0_i32 : i32, i32
  }
  func.func @transform_1(%arg0: i32) -> (i32, i32) {
    %c0_i32 = arith.constant 0 : i32
    %c0_i32_0 = arith.constant 0 : i32
    %c0_i32_1 = arith.constant 0 : i32
    return %c0_i32, %c0_i32_0 : i32, i32
  }
  func.func @transform_2(%arg0: i32) -> (i32, i32) {
    %c0_i32 = arith.constant 0 : i32
    %c0_i32_0 = arith.constant 0 : i32
    %c0_i32_1 = arith.constant 0 : i32
    return %c0_i32, %c0_i32_0 : i32, i32
  }
  func.func @transform_3(%arg0: i32) -> (i32, i32) {
    %c0_i32 = arith.constant 0 : i32
    %c0_i32_0 = arith.constant 0 : i32
    %c0_i32_1 = arith.constant 0 : i32
    return %c0_i32, %c0_i32_0 : i32, i32
  }
  func.func @transform_4(%arg0: i32) -> (i32, i32) {
    %c0_i32 = arith.constant 0 : i32
    %c0_i32_0 = arith.constant 0 : i32
    %c0_i32_1 = arith.constant 0 : i32
    return %c0_i32, %c0_i32_0 : i32, i32
  }
  func.func @transform_5(%arg0: i32) -> (i32, i32) {
    %c0_i32 = arith.constant 0 : i32
    %c0_i32_0 = arith.constant 0 : i32
    return %arg0, %c0_i32 : i32, i32
  }
}

</mosaic_0001>

<bundles_post_ra>
// kernel: span_encoder_forward.1
= control target key start
LH: loop header
LB: loop body
LE: loop exit
PB: predicated region body
PF: predicated region fallthrough
CT: control target
= control target key end

     0   :  { %10 = vsyncpa [#allocation3], 0  ;;  %s11090_s0 = inlined_call_operand.vmem [shape: bf16[16,1024], index: 0, kind: input, shape index: {}]   ;;  %s11091_s1 = inlined_call_operand.hbm [shape: bf16[1024,2048], index: 1, kind: input, shape index: {}]   ;;  %s11092_s2 = inlined_call_operand.hbm [shape: f32[1,2048], index: 2, kind: input, shape index: {}]   ;;  %s11093_s3 = inlined_call_operand.hbm [shape: bf16[2048,128], index: 3, kind: input, shape index: {}]   ;;  %s11094_s4 = inlined_call_operand.hbm [shape: f32[1,128], index: 4, kind: input, shape index: {}]   ;;  %s11095_s5 = inlined_call_operand.hbm [shape: f32[16,128], index: 5, kind: output, shape index: {}]  }
   0x1   :  { %11 = vsyncpa [#allocation6], 0 }
   0x2   :  { %12 = vsyncpa [#allocation9], 0 }
   0x3   :  { %13 = vsyncpa [#allocation4], 0  ;;  %s10749_s18 = smov [#allocation5]   ;;  %s10750_s20 = smov [#allocation2]  }
   0x4   :  { %s34_s19 = sshll.u32 %s10749_s18, 4  ;;  %s21_s21 = sshll.u32 %s10750_s20, 4  ;;  %s35_s19 = int_to_ptr.vmem [resolvable:$true] %s34_s19  ;;  %s22_s21 = int_to_ptr.vmem [resolvable:$true] %s21_s21 }
   0x5   :  { %s10649_s22 = scalar_lea.vmem %s35_s19, 256  ;;  %p10654_p1 = scmp.lt.s32.totalorder %s35_s19, %s35_s19 }
   0x6   :  { %p10650_p0 = scmp.ne.s32.totalorder %s35_s19, %s10649_s22  ;;  %p10655_p2 = scmp.lt.s32.totalorder %s10649_s22, %s10649_s22 }
   0x8   :  { %p10656_p3 = por %p10655_p2, %p10654_p1 }
   0xa   :  { %p10657_p4 = pnand %p10656_p3, %p10650_p0 }
   0xc   :  { %10660 = shalt.err (!%p10657_p4)
}
   0xd   :  { %37 = dma.hbm_to_vmem [thread:$0]  %s11092_s2, 256, %s35_s19, [#allocation6]  }
   0xe   :  { %s10669_s25 = scalar_lea.vmem %s22_s21, 131072  ;;  %p10674_p6 = scmp.lt.s32.totalorder %s22_s21, %s22_s21 }
   0xf   :  { %p10670_p5 = scmp.ne.s32.totalorder %s22_s21, %s10669_s25  ;;  %p10675_p7 = scmp.lt.s32.totalorder %s10669_s25, %s10669_s25 }
  0x11   :  { %p10676_p8 = por %p10675_p7, %p10674_p6 }
  0x13   :  { %p10677_p9 = pnand %p10676_p8, %p10670_p5 }
  0x15   :  { %10680 = shalt.err (!%p10677_p9)
}
  0x16   :  { %s10751_s26 = smov 1024   ;;  %s10752_s27 = smov 64  }
  0x17   :  { %27 = dma.hbm_to_vmem [thread:$0]  %s11091_s1, 131072, %s22_s21, [#allocation3], %s10751_s26, %s10751_s26, %s10752_s27  }
  0x18   :  { %s10753_s30 = smov [#allocation7]   ;;  %s10754_s7 = smov [#allocation8]  }
  0x19   :  { %s43_s6 = sshll.u32 %s10753_s30, 4  ;;  %s56_s8 = sshll.u32 %s10754_s7, 4  ;;  %s44_s6 = int_to_ptr.vmem [resolvable:$true] %s43_s6  ;;  %s57_s8 = int_to_ptr.vmem [resolvable:$true] %s56_s8 }
  0x1a   :  { %s10689_s9 = scalar_lea.vmem %s44_s6, 16384  ;;  %p10694_p11 = scmp.lt.s32.totalorder %s44_s6, %s44_s6 }
  0x1b   :  { %p10690_p10 = scmp.ne.s32.totalorder %s44_s6, %s10689_s9  ;;  %p10695_p12 = scmp.lt.s32.totalorder %s10689_s9, %s10689_s9 }
  0x1d   :  { %p10696_p13 = por %p10695_p12, %p10694_p11 }
  0x1f   :  { %p10697_p0 = pnand %p10696_p13, %p10690_p10 }
  0x21   :  { %10700 = shalt.err (!%p10697_p0)
}
  0x22   :  { %s10755_s2 = smov 4   ;;  %s10709_s12 = scalar_lea.vmem %s57_s8, 16 }
  0x23   :  { %49 = dma.hbm_to_vmem [thread:$0]  %s11093_s3, 16384, %s44_s6, [#allocation6], %s10752_s27, %s10752_s27, %s10755_s2  }
  0x24   :  { %p10710_p1 = scmp.ne.s32.totalorder %s57_s8, %s10709_s12  ;;  %s10713_s1 = scalar_lea.vmem %s57_s8, 32 }
  0x25   :  { %p10714_p2 = scmp.lt.s32.totalorder %s57_s8, %s57_s8  ;;  %p10715_p3 = scmp.lt.s32.totalorder %s10713_s1, %s10709_s12 }
  0x27   :  { %p10716_p4 = por %p10715_p3, %p10714_p2 }
  0x29   :  { %p10717_p5 = pnand %p10716_p4, %p10710_p1 }
  0x2b   :  { %10720 = shalt.err (!%p10717_p5)
}
  0x2c   :  { %59 = dma.hbm_to_vmem [thread:$0]  %s11094_s4, 16, %s57_s8, [#allocation9]  }
  0x2d   :  { %10741 = dma.done.wait [#allocation3], 131072  }
  0x2e   :  { %10742 = vsyncadd [#allocation3], 4294836224 }
  0x2f   :  { %10743 = dma.done.wait [#allocation6], 16640  }
  0x30   :  { %10744 = vsyncadd [#allocation6], 4294950656 }
  0x31   :  { %10745 = dma.done.wait [#allocation9], 16  }
  0x32   :  { %10746 = vsyncadd [#allocation9], 4294967280  ;;  %v109_v0 = vld [vmem:[#allocation2 + $0x380] sm:$0xff]  ;;  %v10818_v59 = vld [vmem:[%s11090_s0 + $0x8] sm:$0xff] }
  0x33   :  { %v111_v1 = vld [vmem:[#allocation2 + $0x3c0] sm:$0xff]  ;;  %v10823_v60 = vld [vmem:[%s11090_s0 + $0x28] sm:$0xff] }
  0x34   :  { %v173_v2 = vld [vmem:[#allocation2 + $0xb80] sm:$0xff]  ;;  %v9202_v3 = vcombine.high %v109_v0, %v111_v1  ;;  %v9201_v5 = vcombine.low %v109_v0, %v111_v1  ;;  %v10827_v63 = vcombine.high %v10818_v59, %v10823_v60 }
  0x35   :  { %v175_v4 = vld [vmem:[#allocation2 + $0xbc0] sm:$0xff] }
  0x36   :  { %v105_v6 = vld [vmem:[#allocation2 + $0x300] sm:$0xff]  ;;  %v9266_v8 = vcombine.high %v173_v2, %v175_v4  ;;  %v9265_v9 = vcombine.low %v173_v2, %v175_v4  ;;  %1679 = vmatprep.subr.bf16.mxu0 %v9202_v3  ;;  %1754 = vmatprep.mubr.bf16.mxu1 %v10827_v63 }
  0x37   :  { %v107_v7 = vld [vmem:[#allocation2 + $0x340] sm:$0xff]  ;;  %1680 = vmatpush1.bf16.msra.mxu0 %v9201_v5 }
  0x38   :  { %v9198_v10 = vcombine.high %v105_v6, %v107_v7  ;;  %v169_v11 = vld [vmem:[#allocation2 + $0xb00] sm:$0xff]  ;;  %1722 = vmatprep.subr.bf16.mxu1 %v9266_v8  ;;  %v9197_v18 = vcombine.low %v105_v6, %v107_v7 }
  0x39   :  { %v171_v12 = vld [vmem:[#allocation2 + $0xb40] sm:$0xff]  ;;  %1723 = vmatpush1.bf16.msra.mxu1 %v9265_v9 }
  0x3a   :  { %v101_v13 = vld [vmem:[#allocation2 + $0x280] sm:$0xff]  ;;  %v9262_v14 = vcombine.high %v169_v11, %v171_v12  ;;  %1681 = vmatprep.subr.bf16.mxu0 %v9198_v10  ;;  %v9261_v19 = vcombine.low %v169_v11, %v171_v12 }
  0x3b   :  { %v103_v15 = vld [vmem:[#allocation2 + $0x2c0] sm:$0xff]  ;;  %1682 = vmatpush1.bf16.msra.mxu0 %v9197_v18 }
  0x3c   :  { %v165_v16 = vld [vmem:[#allocation2 + $0xa80] sm:$0xff]  ;;  %v9194_v20 = vcombine.high %v101_v13, %v103_v15  ;;  %1724 = vmatprep.subr.bf16.mxu1 %v9262_v14  ;;  %v9193_v26 = vcombine.low %v101_v13, %v103_v15 }
  0x3d   :  { %v167_v17 = vld [vmem:[#allocation2 + $0xac0] sm:$0xff]  ;;  %1725 = vmatpush1.bf16.msra.mxu1 %v9261_v19 }
  0x3e   :  { %v9258_v21 = vcombine.high %v165_v16, %v167_v17  ;;  %v97_v22 = vld [vmem:[#allocation2 + $0x200] sm:$0xff]  ;;  %1683 = vmatprep.subr.bf16.mxu0 %v9194_v20  ;;  %v9257_v27 = vcombine.low %v165_v16, %v167_v17 }
  0x3f   :  { %v99_v23 = vld [vmem:[#allocation2 + $0x240] sm:$0xff]  ;;  %1684 = vmatpush1.bf16.msra.mxu0 %v9193_v26 }
  0x40   :  { %v161_v24 = vld [vmem:[#allocation2 + $0xa00] sm:$0xff]  ;;  %v9190_v28 = vcombine.high %v97_v22, %v99_v23  ;;  %1726 = vmatprep.subr.bf16.mxu1 %v9258_v21  ;;  %v9189_v34 = vcombine.low %v97_v22, %v99_v23 }
  0x41   :  { %v163_v25 = vld [vmem:[#allocation2 + $0xa40] sm:$0xff]  ;;  %1727 = vmatpush1.bf16.msra.mxu1 %v9257_v27 }
  0x42   :  { %v9254_v29 = vcombine.high %v161_v24, %v163_v25  ;;  %v93_v30 = vld [vmem:[#allocation2 + $0x180] sm:$0xff]  ;;  %1685 = vmatprep.subr.bf16.mxu0 %v9190_v28  ;;  %v9253_v35 = vcombine.low %v161_v24, %v163_v25 }
  0x43   :  { %v95_v31 = vld [vmem:[#allocation2 + $0x1c0] sm:$0xff]  ;;  %1686 = vmatpush1.bf16.msra.mxu0 %v9189_v34 }
  0x44   :  { %v157_v32 = vld [vmem:[#allocation2 + $0x980] sm:$0xff]  ;;  %v9186_v36 = vcombine.high %v93_v30, %v95_v31  ;;  %1728 = vmatprep.subr.bf16.mxu1 %v9254_v29  ;;  %v9185_v42 = vcombine.low %v93_v30, %v95_v31 }
  0x45   :  { %v159_v33 = vld [vmem:[#allocation2 + $0x9c0] sm:$0xff]  ;;  %1729 = vmatpush1.bf16.msra.mxu1 %v9253_v35 }
  0x46   :  { %v9250_v37 = vcombine.high %v157_v32, %v159_v33  ;;  %v89_v38 = vld [vmem:[#allocation2 + $0x100] sm:$0xff]  ;;  %1687 = vmatprep.subr.bf16.mxu0 %v9186_v36  ;;  %v9249_v43 = vcombine.low %v157_v32, %v159_v33 }
  0x47   :  { %v91_v39 = vld [vmem:[#allocation2 + $0x140] sm:$0xff]  ;;  %1688 = vmatpush1.bf16.msra.mxu0 %v9185_v42 }
  0x48   :  { %v153_v40 = vld [vmem:[#allocation2 + $0x900] sm:$0xff]  ;;  %v9182_v44 = vcombine.high %v89_v38, %v91_v39  ;;  %1730 = vmatprep.subr.bf16.mxu1 %v9250_v37  ;;  %v9181_v50 = vcombine.low %v89_v38, %v91_v39 }
  0x49   :  { %v155_v41 = vld [vmem:[#allocation2 + $0x940] sm:$0xff]  ;;  %1731 = vmatpush1.bf16.msra.mxu1 %v9249_v43 }
  0x4a   :  { %v9246_v45 = vcombine.high %v153_v40, %v155_v41  ;;  %v85_v46 = vld [vmem:[#allocation2 + $0x80] sm:$0xff]  ;;  %1689 = vmatprep.subr.bf16.mxu0 %v9182_v44  ;;  %v9245_v51 = vcombine.low %v153_v40, %v155_v41 }
  0x4b   :  { %v87_v47 = vld [vmem:[#allocation2 + $0xc0] sm:$0xff]  ;;  %1690 = vmatpush1.bf16.msra.mxu0 %v9181_v50 }
  0x4c   :  { %v149_v48 = vld [vmem:[#allocation2 + $0x880] sm:$0xff]  ;;  %v9178_v52 = vcombine.high %v85_v46, %v87_v47  ;;  %1732 = vmatprep.subr.bf16.mxu1 %v9246_v45  ;;  %v9177_v0 = vcombine.low %v85_v46, %v87_v47 }
  0x4d   :  { %v151_v49 = vld [vmem:[#allocation2 + $0x8c0] sm:$0xff]  ;;  %1733 = vmatpush1.bf16.msra.mxu1 %v9245_v51 }
  0x4e   :  { %v81_v53 = vld [vmem:[#allocation2] sm:$0xff]  ;;  %v9242_v56 = vcombine.high %v149_v48, %v151_v49  ;;  %1691 = vmatprep.subr.bf16.mxu0 %v9178_v52  ;;  %v9241_v1 = vcombine.low %v149_v48, %v151_v49 }
  0x4f   :  { %v10804_v54 = vld [vmem:[%s11090_s0] sm:$0xff]  ;;  %1692 = vmatpush1.bf16.msra.mxu0 %v9177_v0 }
  0x50   :  { %v10809_v55 = vld [vmem:[%s11090_s0 + $0x20] sm:$0xff]  ;;  %1734 = vmatprep.subr.bf16.mxu1 %v9242_v56 }
  0x51   :  { %v83_v57 = vld [vmem:[#allocation2 + $0x40] sm:$0xff]  ;;  %v10813_v58 = vcombine.high %v10804_v54, %v10809_v55  ;;  %1735 = vmatpush1.bf16.msra.mxu1 %v9241_v1 }
  0x52   :  { %v145_v61 = vld [vmem:[#allocation2 + $0x800] sm:$0xff]  ;;  %v9174_v2 = vcombine.high %v81_v53, %v83_v57  ;;  %v9173_v8 = vcombine.low %v81_v53, %v83_v57 }
  0x53   :  { %v147_v62 = vld [vmem:[#allocation2 + $0x840] sm:$0xff]  ;;  %1711 = vmatprep.mubr.bf16.mxu0 %v10813_v58 }
  0x54   :  { %v9238_v3 = vcombine.high %v145_v61, %v147_v62  ;;  %v141_v4 = vld [vmem:[#allocation2 + $0x780] sm:$0xff]  ;;  %1693 = vmatprep.subr.bf16.mxu0 %v9174_v2  ;;  %v9237_v9 = vcombine.low %v145_v61, %v147_v62 }
  0x55   :  { %v143_v5 = vld [vmem:[#allocation2 + $0x7c0] sm:$0xff]  ;;  %1694 = vmatpush1.bf16.msra.mxu0 %v9173_v8 }
  0x56   :  { %v205_v6 = vld [vmem:[#allocation2 + $0xf80] sm:$0xff]  ;;  %v9234_v10 = vcombine.high %v141_v4, %v143_v5  ;;  %1736 = vmatprep.subr.bf16.mxu1 %v9238_v3  ;;  %v9233_v16 = vcombine.low %v141_v4, %v143_v5 }
  0x57   :  { %v207_v7 = vld [vmem:[#allocation2 + $0xfc0] sm:$0xff]  ;;  %1737 = vmatpush1.bf16.msra.mxu1 %v9237_v9 }
  0x58   :  { %v9298_v11 = vcombine.high %v205_v6, %v207_v7  ;;  %v137_v12 = vld [vmem:[#allocation2 + $0x700] sm:$0xff]  ;;  %1695 = vmatprep.subr.bf16.mxu0 %v9234_v10  ;;  %v9297_v17 = vcombine.low %v205_v6, %v207_v7 }
  0x59   :  { %v139_v13 = vld [vmem:[#allocation2 + $0x740] sm:$0xff]  ;;  %1696 = vmatpush2.bf16.msra.mxu0 %v9233_v16 }
  0x5a   :  { %v201_v14 = vld [vmem:[#allocation2 + $0xf00] sm:$0xff]  ;;  %v9230_v18 = vcombine.high %v137_v12, %v139_v13  ;;  %1738 = vmatprep.subr.bf16.mxu1 %v9298_v11  ;;  %v9229_v24 = vcombine.low %v137_v12, %v139_v13 }
  0x5b   :  { %v203_v15 = vld [vmem:[#allocation2 + $0xf40] sm:$0xff]  ;;  %1739 = vmatpush2.bf16.msra.mxu1 %v9297_v17 }
  0x5c   :  { %v9294_v19 = vcombine.high %v201_v14, %v203_v15  ;;  %v133_v20 = vld [vmem:[#allocation2 + $0x680] sm:$0xff]  ;;  %1697 = vmatprep.subr.bf16.mxu0 %v9230_v18  ;;  %v9293_v25 = vcombine.low %v201_v14, %v203_v15 }
  0x5d   :  { %v135_v21 = vld [vmem:[#allocation2 + $0x6c0] sm:$0xff]  ;;  %1698 = vmatpush2.bf16.msra.mxu0 %v9229_v24  ;;  %v10843_v24 = vld [vmem:[%s11090_s0 + $0x30] sm:$0xff] }
  0x5e   :  { %v197_v22 = vld [vmem:[#allocation2 + $0xe80] sm:$0xff]  ;;  %v9226_v26 = vcombine.high %v133_v20, %v135_v21  ;;  %1740 = vmatprep.subr.bf16.mxu1 %v9294_v19  ;;  %v9225_v32 = vcombine.low %v133_v20, %v135_v21  ;;  %v10833_v21 = vcombine.low %v10804_v54, %v10809_v55  ;;  %v10852_v54 = vld [vmem:[%s11090_s0 + $0x18] sm:$0xff] }
  0x5f   :  { %v199_v23 = vld [vmem:[#allocation2 + $0xec0] sm:$0xff]  ;;  %1741 = vmatpush2.bf16.msra.mxu1 %v9293_v25  ;;  %v10847_v25 = vcombine.low %v10818_v59, %v10823_v60  ;;  %v10857_v55 = vld [vmem:[%s11090_s0 + $0x38] sm:$0xff] }
  0x60   :  { %v9290_v27 = vcombine.high %v197_v22, %v199_v23  ;;  %v129_v28 = vld [vmem:[#allocation2 + $0x600] sm:$0xff]  ;;  %1699 = vmatprep.subr.bf16.mxu0 %v9226_v26  ;;  %v9289_v33 = vcombine.low %v197_v22, %v199_v23  ;;  %v10838_v23 = vld [vmem:[%s11090_s0 + $0x10] sm:$0xff]  ;;  %s10756_s0 = smov [#allocation10]  }
  0x61   :  { %v131_v29 = vld [vmem:[#allocation2 + $0x640] sm:$0xff]  ;;  %1700 = vmatpush2.bf16.msra.mxu0 %v9225_v32  ;;  %v10861_v60 = vcombine.high %v10838_v23, %v10843_v24  ;;  %s9151_s29 = sshll.u32 %s10756_s0, 4  ;;  %s9152_s29 = int_to_ptr.vmem [resolvable:$true] %s9151_s29 }
  0x62   :  { %v193_v30 = vld [vmem:[#allocation2 + $0xe00] sm:$0xff]  ;;  %v9222_v34 = vcombine.high %v129_v28, %v131_v29  ;;  %1742 = vmatprep.subr.bf16.mxu1 %v9290_v27  ;;  %v9221_v40 = vcombine.low %v129_v28, %v131_v29  ;;  %s10721_s30 = scalar_lea.vmem %s9152_s29, 256  ;;  %p10726_p7 = scmp.lt.s32.totalorder %s9152_s29, %s9152_s29 }
  0x63   :  { %v195_v31 = vld [vmem:[#allocation2 + $0xe40] sm:$0xff]  ;;  %1743 = vmatpush2.bf16.msra.mxu1 %v9289_v33  ;;  %v10866_v33 = vcombine.high %v10852_v54, %v10857_v55  ;;  %p10722_p6 = scmp.ne.s32.totalorder %s9152_s29, %s10721_s30  ;;  %p10727_p8 = scmp.lt.s32.totalorder %s10721_s30, %s10721_s30 }
  0x64   :  { %v9286_v35 = vcombine.high %v193_v30, %v195_v31  ;;  %v125_v36 = vld [vmem:[#allocation2 + $0x580] sm:$0xff]  ;;  %1701 = vmatprep.subr.bf16.mxu0 %v9222_v34  ;;  %v9285_v41 = vcombine.low %v193_v30, %v195_v31 }
  0x65   :  { %v127_v37 = vld [vmem:[#allocation2 + $0x5c0] sm:$0xff]  ;;  %1702 = vmatpush2.bf16.msra.mxu0 %v9221_v40  ;;  %p10728_p9 = por %p10727_p8, %p10726_p7 }
  0x66   :  { %v189_v38 = vld [vmem:[#allocation2 + $0xd80] sm:$0xff]  ;;  %v9218_v42 = vcombine.high %v125_v36, %v127_v37  ;;  %1744 = vmatprep.subr.bf16.mxu1 %v9286_v35  ;;  %v9217_v48 = vcombine.low %v125_v36, %v127_v37 }
  0x67   :  { %v191_v39 = vld [vmem:[#allocation2 + $0xdc0] sm:$0xff]  ;;  %1745 = vmatpush2.bf16.msra.mxu1 %v9285_v41  ;;  %p10729_p10 = pnand %p10728_p9, %p10722_p6 }
  0x68   :  { %v9282_v43 = vcombine.high %v189_v38, %v191_v39  ;;  %v121_v44 = vld [vmem:[#allocation2 + $0x500] sm:$0xff]  ;;  %1703 = vmatprep.subr.bf16.mxu0 %v9218_v42  ;;  %v9281_v49 = vcombine.low %v189_v38, %v191_v39 }
  0x69   :  { %v123_v45 = vld [vmem:[#allocation2 + $0x540] sm:$0xff]  ;;  %1704 = vmatpush2.bf16.msra.mxu0 %v9217_v48 }
  0x6a   :  { %v185_v46 = vld [vmem:[#allocation2 + $0xd00] sm:$0xff]  ;;  %v9214_v50 = vcombine.high %v121_v44, %v123_v45  ;;  %1746 = vmatprep.subr.bf16.mxu1 %v9282_v43  ;;  %v9213_v61 = vcombine.low %v121_v44, %v123_v45 }
  0x6b   :  { %v187_v47 = vld [vmem:[#allocation2 + $0xd40] sm:$0xff]  ;;  %1747 = vmatpush2.bf16.msra.mxu1 %v9281_v49 }
  0x6c   :  { %v9278_v51 = vcombine.high %v185_v46, %v187_v47  ;;  %v117_v52 = vld [vmem:[#allocation2 + $0x480] sm:$0xff]  ;;  %1705 = vmatprep.subr.bf16.mxu0 %v9214_v50  ;;  %v9277_v62 = vcombine.low %v185_v46, %v187_v47 }
  0x6d   :  { %v119_v53 = vld [vmem:[#allocation2 + $0x4c0] sm:$0xff]  ;;  %1706 = vmatpush2.bf16.msra.mxu0 %v9213_v61 }
  0x6e   :  { %v181_v56 = vld [vmem:[#allocation2 + $0xc80] sm:$0xff]  ;;  %v9210_v0 = vcombine.high %v117_v52, %v119_v53  ;;  %1748 = vmatprep.subr.bf16.mxu1 %v9278_v51  ;;  %v9209_v6 = vcombine.low %v117_v52, %v119_v53 }
  0x6f   :  { %v183_v57 = vld [vmem:[#allocation2 + $0xcc0] sm:$0xff]  ;;  %1749 = vmatpush2.bf16.msra.mxu1 %v9277_v62 }
  0x70   :  { %v9274_v1 = vcombine.high %v181_v56, %v183_v57  ;;  %v113_v2 = vld [vmem:[#allocation2 + $0x400] sm:$0xff]  ;;  %1707 = vmatprep.subr.bf16.mxu0 %v9210_v0  ;;  %v9273_v7 = vcombine.low %v181_v56, %v183_v57 }
  0x71   :  { %v115_v3 = vld [vmem:[#allocation2 + $0x440] sm:$0xff]  ;;  %1708 = vmatpush2.bf16.msra.mxu0 %v9209_v6 }
  0x72   :  { %v177_v4 = vld [vmem:[#allocation2 + $0xc00] sm:$0xff]  ;;  %v9206_v8 = vcombine.high %v113_v2, %v115_v3  ;;  %1750 = vmatprep.subr.bf16.mxu1 %v9274_v1  ;;  %v9205_v14 = vcombine.low %v113_v2, %v115_v3 }
  0x73   :  { %v179_v5 = vld [vmem:[#allocation2 + $0xc40] sm:$0xff]  ;;  %1751 = vmatpush2.bf16.msra.mxu1 %v9273_v7 }
  0x74   :  { %v9270_v9 = vcombine.high %v177_v4, %v179_v5  ;;  %v237_v10 = vld [vmem:[#allocation2 + $0x1380] sm:$0xff]  ;;  %1709 = vmatprep.subr.bf16.mxu0 %v9206_v8  ;;  %v9269_v15 = vcombine.low %v177_v4, %v179_v5 }
  0x75   :  { %v239_v11 = vld [vmem:[#allocation2 + $0x13c0] sm:$0xff]  ;;  %1710 = vmatpush2.bf16.msra.mxu0 %v9205_v14 }
  0x76   :  { %v301_v12 = vld [vmem:[#allocation2 + $0x1b80] sm:$0xff]  ;;  %v9330_v16 = vcombine.high %v237_v10, %v239_v11  ;;  %1752 = vmatprep.subr.bf16.mxu1 %v9270_v9  ;;  %v9329_v26 = vcombine.low %v237_v10, %v239_v11 }
  0x77   :  { %v303_v13 = vld [vmem:[#allocation2 + $0x1bc0] sm:$0xff]  ;;  %1753 = vmatpush2.bf16.msra.mxu1 %v9269_v15 }
  0x78   :  { %v9394_v17 = vcombine.high %v301_v12, %v303_v13  ;;  %v233_v18 = vld [vmem:[#allocation2 + $0x1300] sm:$0xff]  ;;  %1765 = vmatprep.subr.bf16.mxu0 %v9330_v16  ;;  %v9393_v27 = vcombine.low %v301_v12, %v303_v13  ;;  %1712 = vmatmul.mubr.bf16.vlgmr.msra.gmra.mxu0 %v10833_v21 }
  0x79   :  { %v235_v19 = vld [vmem:[#allocation2 + $0x1340] sm:$0xff]  ;;  %1766 = vmatpush1.bf16.msra.mxu0 %v9329_v26  ;;  %1797 = vmatprep.mubr.bf16.mxu0 %v10861_v60 }
  0x7a   :  { %v297_v20 = vld [vmem:[#allocation2 + $0x1b00] sm:$0xff]  ;;  %v9326_v28 = vcombine.high %v233_v18, %v235_v19  ;;  %1808 = vmatprep.subr.bf16.mxu1 %v9394_v17  ;;  %1755 = vmatmul.mubr.bf16.vlgmr.msra.gmra.mxu1 %v10847_v25  ;;  %v9325_v34 = vcombine.low %v233_v18, %v235_v19 }
  0x7b   :  { %v299_v22 = vld [vmem:[#allocation2 + $0x1b40] sm:$0xff]  ;;  %1809 = vmatpush1.bf16.msra.mxu1 %v9393_v27  ;;  %1840 = vmatprep.mubr.bf16.mxu1 %v10866_v33 }
  0x7c   :  { %v9390_v29 = vcombine.high %v297_v20, %v299_v22  ;;  %v229_v30 = vld [vmem:[#allocation2 + $0x1280] sm:$0xff]  ;;  %1767 = vmatprep.subr.bf16.mxu0 %v9326_v28  ;;  %v9389_v35 = vcombine.low %v297_v20, %v299_v22 }
  0x7d   :  { %v231_v59 = vld [vmem:[#allocation2 + $0x12c0] sm:$0xff]  ;;  %1768 = vmatpush1.bf16.msra.mxu0 %v9325_v34 }
  0x7e   :  { %v293_v31 = vld [vmem:[#allocation2 + $0x1a80] sm:$0xff]  ;;  %v9322_v36 = vcombine.high %v229_v30, %v231_v59  ;;  %1810 = vmatprep.subr.bf16.mxu1 %v9390_v29  ;;  %v9321_v42 = vcombine.low %v229_v30, %v231_v59 }
  0x7f   :  { %v295_v32 = vld [vmem:[#allocation2 + $0x1ac0] sm:$0xff]  ;;  %1811 = vmatpush1.bf16.msra.mxu1 %v9389_v35 }
  0x80   :  { %v225_v37 = vld [vmem:[#allocation2 + $0x1200] sm:$0xff]  ;;  %v9386_v40 = vcombine.high %v293_v31, %v295_v32  ;;  %1769 = vmatprep.subr.bf16.mxu0 %v9322_v36  ;;  %v9385_v43 = vcombine.low %v293_v31, %v295_v32 }
  0x81   :  { %v227_v38 = vld [vmem:[#allocation2 + $0x1240] sm:$0xff]  ;;  %1770 = vmatpush1.bf16.msra.mxu0 %v9321_v42 }
  0x82   :  { %v289_v39 = vld [vmem:[#allocation2 + $0x1a00] sm:$0xff]  ;;  %v9318_v44 = vcombine.high %v225_v37, %v227_v38  ;;  %1812 = vmatprep.subr.bf16.mxu1 %v9386_v40  ;;  %v9317_v50 = vcombine.low %v225_v37, %v227_v38 }
  0x83   :  { %v291_v41 = vld [vmem:[#allocation2 + $0x1a40] sm:$0xff]  ;;  %1813 = vmatpush1.bf16.msra.mxu1 %v9385_v43 }
  0x84   :  { %v221_v45 = vld [vmem:[#allocation2 + $0x1180] sm:$0xff]  ;;  %v9382_v48 = vcombine.high %v289_v39, %v291_v41  ;;  %1771 = vmatprep.subr.bf16.mxu0 %v9318_v44  ;;  %v9381_v51 = vcombine.low %v289_v39, %v291_v41 }
  0x85   :  { %v223_v46 = vld [vmem:[#allocation2 + $0x11c0] sm:$0xff]  ;;  %1772 = vmatpush1.bf16.msra.mxu0 %v9317_v50 }
  0x86   :  { %v285_v47 = vld [vmem:[#allocation2 + $0x1980] sm:$0xff]  ;;  %v9314_v52 = vcombine.high %v221_v45, %v223_v46  ;;  %1814 = vmatprep.subr.bf16.mxu1 %v9382_v48  ;;  %v9313_v0 = vcombine.low %v221_v45, %v223_v46 }
  0x87   :  { %v287_v49 = vld [vmem:[#allocation2 + $0x19c0] sm:$0xff]  ;;  %1815 = vmatpush1.bf16.msra.mxu1 %v9381_v51 }
  0x88   :  { %v217_v53 = vld [vmem:[#allocation2 + $0x1100] sm:$0xff]  ;;  %v9378_v61 = vcombine.high %v285_v47, %v287_v49  ;;  %1773 = vmatprep.subr.bf16.mxu0 %v9314_v52  ;;  %v9377_v1 = vcombine.low %v285_v47, %v287_v49 }
  0x89   :  { %v219_v56 = vld [vmem:[#allocation2 + $0x1140] sm:$0xff]  ;;  %1774 = vmatpush1.bf16.msra.mxu0 %v9313_v0 }
  0x8a   :  { %v281_v57 = vld [vmem:[#allocation2 + $0x1900] sm:$0xff]  ;;  %v9310_v2 = vcombine.high %v217_v53, %v219_v56  ;;  %1816 = vmatprep.subr.bf16.mxu1 %v9378_v61  ;;  %v9309_v8 = vcombine.low %v217_v53, %v219_v56 }
  0x8b   :  { %v283_v62 = vld [vmem:[#allocation2 + $0x1940] sm:$0xff]  ;;  %1817 = vmatpush1.bf16.msra.mxu1 %v9377_v1 }
  0x8c   :  { %v213_v3 = vld [vmem:[#allocation2 + $0x1080] sm:$0xff]  ;;  %v9374_v6 = vcombine.high %v281_v57, %v283_v62  ;;  %1775 = vmatprep.subr.bf16.mxu0 %v9310_v2  ;;  %v9373_v9 = vcombine.low %v281_v57, %v283_v62 }
  0x8d   :  { %v215_v4 = vld [vmem:[#allocation2 + $0x10c0] sm:$0xff]  ;;  %1776 = vmatpush1.bf16.msra.mxu0 %v9309_v8 }
  0x8e   :  { %v277_v5 = vld [vmem:[#allocation2 + $0x1880] sm:$0xff]  ;;  %v9306_v10 = vcombine.high %v213_v3, %v215_v4  ;;  %1818 = vmatprep.subr.bf16.mxu1 %v9374_v6  ;;  %v9305_v16 = vcombine.low %v213_v3, %v215_v4 }
  0x8f   :  { %v279_v7 = vld [vmem:[#allocation2 + $0x18c0] sm:$0xff]  ;;  %1819 = vmatpush1.bf16.msra.mxu1 %v9373_v9 }
  0x90   :  { %v209_v11 = vld [vmem:[#allocation2 + $0x1000] sm:$0xff]  ;;  %v9370_v14 = vcombine.high %v277_v5, %v279_v7  ;;  %1777 = vmatprep.subr.bf16.mxu0 %v9306_v10  ;;  %v9369_v17 = vcombine.low %v277_v5, %v279_v7 }
  0x91   :  { %v211_v12 = vld [vmem:[#allocation2 + $0x1040] sm:$0xff]  ;;  %1778 = vmatpush1.bf16.msra.mxu0 %v9305_v16 }
  0x92   :  { %v273_v13 = vld [vmem:[#allocation2 + $0x1800] sm:$0xff]  ;;  %v9302_v18 = vcombine.high %v209_v11, %v211_v12  ;;  %1820 = vmatprep.subr.bf16.mxu1 %v9370_v14  ;;  %v9301_v28 = vcombine.low %v209_v11, %v211_v12 }
  0x93   :  { %v275_v15 = vld [vmem:[#allocation2 + $0x1840] sm:$0xff]  ;;  %1821 = vmatpush1.bf16.msra.mxu1 %v9369_v17 }
  0x94   :  { %v269_v19 = vld [vmem:[#allocation2 + $0x1780] sm:$0xff]  ;;  %v9366_v26 = vcombine.high %v273_v13, %v275_v15  ;;  %1779 = vmatprep.subr.bf16.mxu0 %v9302_v18  ;;  %v9365_v29 = vcombine.low %v273_v13, %v275_v15 }
  0x95   :  { %v271_v20 = vld [vmem:[#allocation2 + $0x17c0] sm:$0xff]  ;;  %1780 = vmatpush1.bf16.msra.mxu0 %v9301_v28 }
  0x96   :  { %v333_v22 = vld [vmem:[#allocation2 + $0x1f80] sm:$0xff]  ;;  %v9362_v30 = vcombine.high %v269_v19, %v271_v20  ;;  %1822 = vmatprep.subr.bf16.mxu1 %v9366_v26  ;;  %v9361_v36 = vcombine.low %v269_v19, %v271_v20 }
  0x97   :  { %v335_v27 = vld [vmem:[#allocation2 + $0x1fc0] sm:$0xff]  ;;  %1823 = vmatpush1.bf16.msra.mxu1 %v9365_v29 }
  0x98   :  { %v265_v59 = vld [vmem:[#allocation2 + $0x1700] sm:$0xff]  ;;  %v9426_v34 = vcombine.high %v333_v22, %v335_v27  ;;  %1781 = vmatprep.subr.bf16.mxu0 %v9362_v30  ;;  %v9425_v37 = vcombine.low %v333_v22, %v335_v27 }
  0x99   :  { %v267_v31 = vld [vmem:[#allocation2 + $0x1740] sm:$0xff]  ;;  %1782 = vmatpush2.bf16.msra.mxu0 %v9361_v36 }
  0x9a   :  { %v329_v32 = vld [vmem:[#allocation2 + $0x1f00] sm:$0xff]  ;;  %v9358_v38 = vcombine.high %v265_v59, %v267_v31  ;;  %1824 = vmatprep.subr.bf16.mxu1 %v9426_v34  ;;  %v9357_v44 = vcombine.low %v265_v59, %v267_v31  ;;  %v112_v34 = vld [vmem:[#allocation2 + $0x3c8] sm:$0xff] }
  0x9b   :  { %v331_v35 = vld [vmem:[#allocation2 + $0x1f40] sm:$0xff]  ;;  %1825 = vmatpush2.bf16.msra.mxu1 %v9425_v37  ;;  %v176_v37 = vld [vmem:[#allocation2 + $0xbc8] sm:$0xff] }
  0x9c   :  { %v261_v39 = vld [vmem:[#allocation2 + $0x1680] sm:$0xff]  ;;  %v9422_v42 = vcombine.high %v329_v32, %v331_v35  ;;  %1783 = vmatprep.subr.bf16.mxu0 %v9358_v38  ;;  %v9421_v45 = vcombine.low %v329_v32, %v331_v35  ;;  %v110_v32 = vld [vmem:[#allocation2 + $0x388] sm:$0xff] }
  0x9d   :  { %v263_v40 = vld [vmem:[#allocation2 + $0x16c0] sm:$0xff]  ;;  %1784 = vmatpush2.bf16.msra.mxu0 %v9357_v44  ;;  %v174_v35 = vld [vmem:[#allocation2 + $0xb88] sm:$0xff] }
  0x9e   :  { %v325_v41 = vld [vmem:[#allocation2 + $0x1e80] sm:$0xff]  ;;  %v9354_v46 = vcombine.high %v261_v39, %v263_v40  ;;  %1826 = vmatprep.subr.bf16.mxu1 %v9422_v42  ;;  %v9353_v52 = vcombine.low %v261_v39, %v263_v40  ;;  %v9204_v40 = vcombine.high %v110_v32, %v112_v34  ;;  %v108_v42 = vld [vmem:[#allocation2 + $0x348] sm:$0xff]  ;;  %v9268_v44 = vcombine.high %v174_v35, %v176_v37 }
  0x9f   :  { %v327_v43 = vld [vmem:[#allocation2 + $0x1ec0] sm:$0xff]  ;;  %1827 = vmatpush2.bf16.msra.mxu1 %v9421_v45  ;;  %v172_v45 = vld [vmem:[#allocation2 + $0xb48] sm:$0xff] }
  0xa0   :  { %v257_v47 = vld [vmem:[#allocation2 + $0x1600] sm:$0xff]  ;;  %v9418_v50 = vcombine.high %v325_v41, %v327_v43  ;;  %1785 = vmatprep.subr.bf16.mxu0 %v9354_v46  ;;  %v9417_v53 = vcombine.low %v325_v41, %v327_v43  ;;  %v106_v41 = vld [vmem:[#allocation2 + $0x308] sm:$0xff]  ;;  %v10873_v46 = vcombine.low %v10838_v23, %v10843_v24 }
  0xa1   :  { %v259_v48 = vld [vmem:[#allocation2 + $0x1640] sm:$0xff]  ;;  %1786 = vmatpush2.bf16.msra.mxu0 %v9353_v52  ;;  %v170_v43 = vld [vmem:[#allocation2 + $0xb08] sm:$0xff]  ;;  %v9199_v23 = vcombine.low %v106_v41, %v108_v42 }
  0xa2   :  { %v321_v49 = vld [vmem:[#allocation2 + $0x1e00] sm:$0xff]  ;;  %v9350_v56 = vcombine.high %v257_v47, %v259_v48  ;;  %1828 = vmatprep.subr.bf16.mxu1 %v9418_v50  ;;  %v9349_v2 = vcombine.low %v257_v47, %v259_v48  ;;  %v10877_v47 = vcombine.low %v10852_v54, %v10857_v55  ;;  %v9203_v48 = vcombine.low %v110_v32, %v112_v34  ;;  %v98_v55 = vld [vmem:[#allocation2 + $0x208] sm:$0xff] }
  0xa3   :  { %v323_v51 = vld [vmem:[#allocation2 + $0x1e40] sm:$0xff]  ;;  %1829 = vmatpush2.bf16.msra.mxu1 %v9417_v53  ;;  %v9200_v50 = vcombine.high %v106_v41, %v108_v42  ;;  %v9264_v52 = vcombine.high %v170_v43, %v172_v45  ;;  %v104_v53 = vld [vmem:[#allocation2 + $0x2c8] sm:$0xff]  ;;  %v9263_v24 = vcombine.low %v170_v43, %v172_v45 }
  0xa4   :  { %v253_v57 = vld [vmem:[#allocation2 + $0x1580] sm:$0xff]  ;;  %v9414_v0 = vcombine.high %v321_v49, %v323_v51  ;;  %1787 = vmatprep.subr.bf16.mxu0 %v9350_v56  ;;  %v9413_v3 = vcombine.low %v321_v49, %v323_v51  ;;  %v9267_v49 = vcombine.low %v174_v35, %v176_v37  ;;  %v102_v51 = vld [vmem:[#allocation2 + $0x288] sm:$0xff] }
  0xa5   :  { %v255_v61 = vld [vmem:[#allocation2 + $0x15c0] sm:$0xff]  ;;  %1788 = vmatpush2.bf16.msra.mxu0 %v9349_v2  ;;  %v166_v56 = vld [vmem:[#allocation2 + $0xa88] sm:$0xff]  ;;  %v9196_v54 = vcombine.high %v102_v51, %v104_v53  ;;  %v9195_v2 = vcombine.low %v102_v51, %v104_v53 }
  0xa6   :  { %v317_v62 = vld [vmem:[#allocation2 + $0x1d80] sm:$0xff]  ;;  %v9346_v4 = vcombine.high %v253_v57, %v255_v61  ;;  %1830 = vmatprep.subr.bf16.mxu1 %v9414_v0  ;;  %v9345_v10 = vcombine.low %v253_v57, %v255_v61  ;;  %v168_v57 = vld [vmem:[#allocation2 + $0xac8] sm:$0xff] }
  0xa7   :  { %v319_v1 = vld [vmem:[#allocation2 + $0x1dc0] sm:$0xff]  ;;  %1831 = vmatpush2.bf16.msra.mxu1 %v9413_v3  ;;  %v100_v61 = vld [vmem:[#allocation2 + $0x248] sm:$0xff]  ;;  %v9260_v0 = vcombine.high %v166_v56, %v168_v57  ;;  %v9259_v3 = vcombine.low %v166_v56, %v168_v57 }
  0xa8   :  { %v249_v5 = vld [vmem:[#allocation2 + $0x1500] sm:$0xff]  ;;  %v9410_v8 = vcombine.high %v317_v62, %v319_v1  ;;  %1789 = vmatprep.subr.bf16.mxu0 %v9346_v4  ;;  %v9409_v11 = vcombine.low %v317_v62, %v319_v1  ;;  %v162_v62 = vld [vmem:[#allocation2 + $0xa08] sm:$0xff]  ;;  %v9192_v4 = vcombine.high %v98_v55, %v100_v61 }
  0xa9   :  { %v251_v6 = vld [vmem:[#allocation2 + $0x1540] sm:$0xff]  ;;  %1790 = vmatpush2.bf16.msra.mxu0 %v9345_v10  ;;  %v164_v1 = vld [vmem:[#allocation2 + $0xa48] sm:$0xff]  ;;  %v9191_v10 = vcombine.low %v98_v55, %v100_v61 }
  0xaa   :  { %v313_v7 = vld [vmem:[#allocation2 + $0x1d00] sm:$0xff]  ;;  %v9342_v12 = vcombine.high %v249_v5, %v251_v6  ;;  %1832 = vmatprep.subr.bf16.mxu1 %v9410_v8  ;;  %v9341_v18 = vcombine.low %v249_v5, %v251_v6  ;;  %v94_v5 = vld [vmem:[#allocation2 + $0x188] sm:$0xff]  ;;  %v9256_v8 = vcombine.high %v162_v62, %v164_v1 }
  0xab   :  { %v315_v9 = vld [vmem:[#allocation2 + $0x1d40] sm:$0xff]  ;;  %1833 = vmatpush2.bf16.msra.mxu1 %v9409_v11  ;;  %v96_v6 = vld [vmem:[#allocation2 + $0x1c8] sm:$0xff]  ;;  %v9255_v11 = vcombine.low %v162_v62, %v164_v1 }
  0xac   :  { %v245_v13 = vld [vmem:[#allocation2 + $0x1480] sm:$0xff]  ;;  %v9406_v16 = vcombine.high %v313_v7, %v315_v9  ;;  %1791 = vmatprep.subr.bf16.mxu0 %v9342_v12  ;;  %v9405_v19 = vcombine.low %v313_v7, %v315_v9  ;;  %v158_v7 = vld [vmem:[#allocation2 + $0x988] sm:$0xff]  ;;  %v9188_v12 = vcombine.high %v94_v5, %v96_v6 }
  0xad   :  { %v247_v14 = vld [vmem:[#allocation2 + $0x14c0] sm:$0xff]  ;;  %1792 = vmatpush2.bf16.msra.mxu0 %v9341_v18  ;;  %v160_v9 = vld [vmem:[#allocation2 + $0x9c8] sm:$0xff]  ;;  %v9187_v18 = vcombine.low %v94_v5, %v96_v6 }
  0xae   :  { %v309_v15 = vld [vmem:[#allocation2 + $0x1c80] sm:$0xff]  ;;  %v9338_v20 = vcombine.high %v245_v13, %v247_v14  ;;  %1834 = vmatprep.subr.bf16.mxu1 %v9406_v16  ;;  %v9337_v30 = vcombine.low %v245_v13, %v247_v14  ;;  %v90_v13 = vld [vmem:[#allocation2 + $0x108] sm:$0xff]  ;;  %v9252_v16 = vcombine.high %v158_v7, %v160_v9 }
  0xaf   :  { %v311_v17 = vld [vmem:[#allocation2 + $0x1cc0] sm:$0xff]  ;;  %1835 = vmatpush2.bf16.msra.mxu1 %v9405_v19  ;;  %v92_v14 = vld [vmem:[#allocation2 + $0x148] sm:$0xff]  ;;  %v9251_v19 = vcombine.low %v158_v7, %v160_v9 }
  0xb0   :  { %v241_v22 = vld [vmem:[#allocation2 + $0x1400] sm:$0xff]  ;;  %v9402_v28 = vcombine.high %v309_v15, %v311_v17  ;;  %1793 = vmatprep.subr.bf16.mxu0 %v9338_v20  ;;  %v9401_v59 = vcombine.low %v309_v15, %v311_v17  ;;  %v154_v15 = vld [vmem:[#allocation2 + $0x908] sm:$0xff]  ;;  %v9184_v20 = vcombine.high %v90_v13, %v92_v14 }
  0xb1   :  { %v243_v26 = vld [vmem:[#allocation2 + $0x1440] sm:$0xff]  ;;  %1794 = vmatpush2.bf16.msra.mxu0 %v9337_v30  ;;  %v156_v17 = vld [vmem:[#allocation2 + $0x948] sm:$0xff]  ;;  %v9183_v30 = vcombine.low %v90_v13, %v92_v14 }
  0xb2   :  { %v305_v27 = vld [vmem:[#allocation2 + $0x1c00] sm:$0xff]  ;;  %v9334_v31 = vcombine.high %v241_v22, %v243_v26  ;;  %1836 = vmatprep.subr.bf16.mxu1 %v9402_v28  ;;  %v9333_v38 = vcombine.low %v241_v22, %v243_v26  ;;  %v86_v22 = vld [vmem:[#allocation2 + $0x88] sm:$0xff]  ;;  %v9248_v28 = vcombine.high %v154_v15, %v156_v17 }
  0xb3   :  { %v307_v29 = vld [vmem:[#allocation2 + $0x1c40] sm:$0xff]  ;;  %1837 = vmatpush2.bf16.msra.mxu1 %v9401_v59  ;;  %v88_v26 = vld [vmem:[#allocation2 + $0xc8] sm:$0xff]  ;;  %v9247_v59 = vcombine.low %v154_v15, %v156_v17 }
  0xb4   :  { %v9398_v36 = vcombine.high %v305_v27, %v307_v29  ;;  %1795 = vmatprep.subr.bf16.mxu0 %v9334_v31  ;;  %v9397_v39 = vcombine.low %v305_v27, %v307_v29  ;;  %v150_v27 = vld [vmem:[#allocation2 + $0x888] sm:$0xff]  ;;  %v9180_v31 = vcombine.high %v86_v22, %v88_v26 }
  0xb5   :  { %1796 = vmatpush2.bf16.msra.mxu0 %v9333_v38  ;;  %v152_v29 = vld [vmem:[#allocation2 + $0x8c8] sm:$0xff]  ;;  %v9179_v38 = vcombine.low %v86_v22, %v88_v26 }
  0xb6   :  { %1838 = vmatprep.subr.bf16.mxu1 %v9398_v36  ;;  %1851 = vmatprep.subr.bf16.mxu0 %v9204_v40  ;;  %v82_v32 = vld [vmem:[#allocation2 + $0x8] sm:$0xff]  ;;  %v9244_v36 = vcombine.high %v150_v27, %v152_v29 }
  0xb7   :  { %1839 = vmatpush2.bf16.msra.mxu1 %v9397_v39  ;;  %v84_v34 = vld [vmem:[#allocation2 + $0x48] sm:$0xff]  ;;  %v9243_v39 = vcombine.low %v150_v27, %v152_v29 }
  0xb8   :  { %1894 = vmatprep.subr.bf16.mxu1 %v9268_v44  ;;  %1798 = vmatmul.mubr.bf16.vlgmr.msra.gmra.mxu0 %v10873_v46  ;;  %v146_v35 = vld [vmem:[#allocation2 + $0x808] sm:$0xff]  ;;  %v9176_v40 = vcombine.high %v82_v32, %v84_v34 }
  0xb9   :  { %1852 = vmatpush1.bf16.msra.mxu0 %v9203_v48  ;;  %1883 = vmatprep.mubr.bf16.mxu0 %v10813_v58  ;;  %v148_v37 = vld [vmem:[#allocation2 + $0x848] sm:$0xff]  ;;  %v9175_v48 = vcombine.low %v82_v32, %v84_v34 }
  0xba   :  { %1841 = vmatmul.mubr.bf16.vlgmr.msra.gmra.mxu1 %v10877_v47  ;;  %1853 = vmatprep.subr.bf16.mxu0 %v9200_v50  ;;  %v142_v41 = vld [vmem:[#allocation2 + $0x788] sm:$0xff]  ;;  %v9240_v44 = vcombine.high %v146_v35, %v148_v37 }
  0xbb   :  { %1895 = vmatpush1.bf16.msra.mxu1 %v9267_v49  ;;  %1926 = vmatprep.mubr.bf16.mxu1 %v10827_v63  ;;  %v144_v42 = vld [vmem:[#allocation2 + $0x7c8] sm:$0xff]  ;;  %v9239_v49 = vcombine.low %v146_v35, %v148_v37 }
  0xbc   :  { %1896 = vmatprep.subr.bf16.mxu1 %v9264_v52  ;;  %v206_v43 = vld [vmem:[#allocation2 + $0xf88] sm:$0xff]  ;;  %v9236_v50 = vcombine.high %v142_v41, %v144_v42 }
  0xbd   :  { %1854 = vmatpush1.bf16.msra.mxu0 %v9199_v23  ;;  %v208_v45 = vld [vmem:[#allocation2 + $0xfc8] sm:$0xff]  ;;  %v9235_v23 = vcombine.low %v142_v41, %v144_v42 }
  0xbe   :  { %1855 = vmatprep.subr.bf16.mxu0 %v9196_v54  ;;  %v138_v51 = vld [vmem:[#allocation2 + $0x708] sm:$0xff]  ;;  %v9300_v56 = vcombine.high %v206_v43, %v208_v45 }
  0xbf   :  { %1897 = vmatpush1.bf16.msra.mxu1 %v9263_v24  ;;  %v140_v52 = vld [vmem:[#allocation2 + $0x748] sm:$0xff]  ;;  %v9299_v24 = vcombine.low %v206_v43, %v208_v45 }
  0xc0   :  { %1898 = vmatprep.subr.bf16.mxu1 %v9260_v0  ;;  %v202_v53 = vld [vmem:[#allocation2 + $0xf08] sm:$0xff]  ;;  %v9232_v54 = vcombine.high %v138_v51, %v140_v52 }
  0xc1   :  { %1856 = vmatpush1.bf16.msra.mxu0 %v9195_v2  ;;  %v204_v57 = vld [vmem:[#allocation2 + $0xf48] sm:$0xff]  ;;  %v9231_v2 = vcombine.low %v138_v51, %v140_v52 }
  0xc2   :  { %1857 = vmatprep.subr.bf16.mxu0 %v9192_v4  ;;  %v134_v55 = vld [vmem:[#allocation2 + $0x688] sm:$0xff]  ;;  %v9296_v0 = vcombine.high %v202_v53, %v204_v57 }
  0xc3   :  { %1899 = vmatpush1.bf16.msra.mxu1 %v9259_v3  ;;  %v136_v61 = vld [vmem:[#allocation2 + $0x6c8] sm:$0xff]  ;;  %v9295_v3 = vcombine.low %v202_v53, %v204_v57 }
  0xc4   :  { %1900 = vmatprep.subr.bf16.mxu1 %v9256_v8  ;;  %v198_v62 = vld [vmem:[#allocation2 + $0xe88] sm:$0xff]  ;;  %v9228_v4 = vcombine.high %v134_v55, %v136_v61 }
  0xc5   :  { %1858 = vmatpush1.bf16.msra.mxu0 %v9191_v10  ;;  %v200_v1 = vld [vmem:[#allocation2 + $0xec8] sm:$0xff]  ;;  %v9227_v10 = vcombine.low %v134_v55, %v136_v61 }
  0xc6   :  { %1859 = vmatprep.subr.bf16.mxu0 %v9188_v12  ;;  %v130_v5 = vld [vmem:[#allocation2 + $0x608] sm:$0xff]  ;;  %v9292_v8 = vcombine.high %v198_v62, %v200_v1 }
  0xc7   :  { %1901 = vmatpush1.bf16.msra.mxu1 %v9255_v11  ;;  %v132_v6 = vld [vmem:[#allocation2 + $0x648] sm:$0xff]  ;;  %v9291_v11 = vcombine.low %v198_v62, %v200_v1 }
  0xc8   :  { %1902 = vmatprep.subr.bf16.mxu1 %v9252_v16  ;;  %v194_v7 = vld [vmem:[#allocation2 + $0xe08] sm:$0xff]  ;;  %v9224_v12 = vcombine.high %v130_v5, %v132_v6 }
  0xc9   :  { %1860 = vmatpush1.bf16.msra.mxu0 %v9187_v18  ;;  %v196_v9 = vld [vmem:[#allocation2 + $0xe48] sm:$0xff]  ;;  %v9223_v18 = vcombine.low %v130_v5, %v132_v6 }
  0xca   :  { %1861 = vmatprep.subr.bf16.mxu0 %v9184_v20  ;;  %v126_v13 = vld [vmem:[#allocation2 + $0x588] sm:$0xff]  ;;  %v9288_v16 = vcombine.high %v194_v7, %v196_v9 }
  0xcb   :  { %1903 = vmatpush1.bf16.msra.mxu1 %v9251_v19  ;;  %v128_v14 = vld [vmem:[#allocation2 + $0x5c8] sm:$0xff]  ;;  %v9287_v19 = vcombine.low %v194_v7, %v196_v9 }
  0xcc   :  { %1904 = vmatprep.subr.bf16.mxu1 %v9248_v28  ;;  %v190_v15 = vld [vmem:[#allocation2 + $0xd88] sm:$0xff]  ;;  %v9220_v20 = vcombine.high %v126_v13, %v128_v14 }
  0xcd   :  { %1862 = vmatpush1.bf16.msra.mxu0 %v9183_v30  ;;  %v192_v17 = vld [vmem:[#allocation2 + $0xdc8] sm:$0xff]  ;;  %v9219_v30 = vcombine.low %v126_v13, %v128_v14 }
  0xce   :  { %1863 = vmatprep.subr.bf16.mxu0 %v9180_v31  ;;  %v122_v22 = vld [vmem:[#allocation2 + $0x508] sm:$0xff]  ;;  %v9284_v28 = vcombine.high %v190_v15, %v192_v17 }
  0xcf   :  { %1905 = vmatpush1.bf16.msra.mxu1 %v9247_v59  ;;  %v124_v26 = vld [vmem:[#allocation2 + $0x548] sm:$0xff]  ;;  %v9283_v59 = vcombine.low %v190_v15, %v192_v17 }
  0xd0   :  { %1906 = vmatprep.subr.bf16.mxu1 %v9244_v36  ;;  %v186_v27 = vld [vmem:[#allocation2 + $0xd08] sm:$0xff]  ;;  %v9216_v31 = vcombine.high %v122_v22, %v124_v26 }
  0xd1   :  { %1864 = vmatpush1.bf16.msra.mxu0 %v9179_v38  ;;  %v188_v29 = vld [vmem:[#allocation2 + $0xd48] sm:$0xff]  ;;  %v9215_v38 = vcombine.low %v122_v22, %v124_v26 }
  0xd2   :  { %1865 = vmatprep.subr.bf16.mxu0 %v9176_v40  ;;  %v118_v32 = vld [vmem:[#allocation2 + $0x488] sm:$0xff]  ;;  %v9280_v36 = vcombine.high %v186_v27, %v188_v29 }
  0xd3   :  { %1907 = vmatpush1.bf16.msra.mxu1 %v9243_v39  ;;  %v120_v34 = vld [vmem:[#allocation2 + $0x4c8] sm:$0xff]  ;;  %v9279_v39 = vcombine.low %v186_v27, %v188_v29 }
  0xd4   :  { %1908 = vmatprep.subr.bf16.mxu1 %v9240_v44  ;;  %v182_v35 = vld [vmem:[#allocation2 + $0xc88] sm:$0xff]  ;;  %v9212_v40 = vcombine.high %v118_v32, %v120_v34 }
  0xd5   :  { %1866 = vmatpush1.bf16.msra.mxu0 %v9175_v48  ;;  %v184_v37 = vld [vmem:[#allocation2 + $0xcc8] sm:$0xff]  ;;  %v9211_v48 = vcombine.low %v118_v32, %v120_v34 }
  0xd6   :  { %1867 = vmatprep.subr.bf16.mxu0 %v9236_v50  ;;  %v114_v41 = vld [vmem:[#allocation2 + $0x408] sm:$0xff]  ;;  %v9276_v44 = vcombine.high %v182_v35, %v184_v37 }
  0xd7   :  { %1909 = vmatpush1.bf16.msra.mxu1 %v9239_v49  ;;  %v116_v42 = vld [vmem:[#allocation2 + $0x448] sm:$0xff]  ;;  %v9275_v49 = vcombine.low %v182_v35, %v184_v37 }
  0xd8   :  { %1910 = vmatprep.subr.bf16.mxu1 %v9300_v56  ;;  %v178_v43 = vld [vmem:[#allocation2 + $0xc08] sm:$0xff]  ;;  %v9208_v50 = vcombine.high %v114_v41, %v116_v42 }
  0xd9   :  { %1868 = vmatpush2.bf16.msra.mxu0 %v9235_v23  ;;  %v180_v45 = vld [vmem:[#allocation2 + $0xc48] sm:$0xff]  ;;  %v9207_v23 = vcombine.low %v114_v41, %v116_v42 }
  0xda   :  { %1869 = vmatprep.subr.bf16.mxu0 %v9232_v54  ;;  %v238_v51 = vld [vmem:[#allocation2 + $0x1388] sm:$0xff]  ;;  %v9272_v56 = vcombine.high %v178_v43, %v180_v45 }
  0xdb   :  { %1911 = vmatpush2.bf16.msra.mxu1 %v9299_v24  ;;  %v240_v52 = vld [vmem:[#allocation2 + $0x13c8] sm:$0xff]  ;;  %v9271_v24 = vcombine.low %v178_v43, %v180_v45 }
  0xdc   :  { %1912 = vmatprep.subr.bf16.mxu1 %v9296_v0  ;;  %v302_v53 = vld [vmem:[#allocation2 + $0x1b88] sm:$0xff]  ;;  %v9332_v54 = vcombine.high %v238_v51, %v240_v52 }
  0xdd   :  { %1870 = vmatpush2.bf16.msra.mxu0 %v9231_v2  ;;  %v304_v57 = vld [vmem:[#allocation2 + $0x1bc8] sm:$0xff]  ;;  %v9331_v2 = vcombine.low %v238_v51, %v240_v52 }
  0xde   :  { %1871 = vmatprep.subr.bf16.mxu0 %v9228_v4  ;;  %v234_v55 = vld [vmem:[#allocation2 + $0x1308] sm:$0xff]  ;;  %v9396_v0 = vcombine.high %v302_v53, %v304_v57 }
  0xdf   :  { %1913 = vmatpush2.bf16.msra.mxu1 %v9295_v3  ;;  %v236_v61 = vld [vmem:[#allocation2 + $0x1348] sm:$0xff]  ;;  %v9395_v3 = vcombine.low %v302_v53, %v304_v57 }
  0xe0   :  { %1914 = vmatprep.subr.bf16.mxu1 %v9292_v8  ;;  %v298_v62 = vld [vmem:[#allocation2 + $0x1b08] sm:$0xff]  ;;  %v9328_v4 = vcombine.high %v234_v55, %v236_v61 }
  0xe1   :  { %1872 = vmatpush2.bf16.msra.mxu0 %v9227_v10  ;;  %v300_v1 = vld [vmem:[#allocation2 + $0x1b48] sm:$0xff]  ;;  %v9327_v10 = vcombine.low %v234_v55, %v236_v61 }
  0xe2   :  { %1873 = vmatprep.subr.bf16.mxu0 %v9224_v12  ;;  %v230_v5 = vld [vmem:[#allocation2 + $0x1288] sm:$0xff]  ;;  %v9392_v8 = vcombine.high %v298_v62, %v300_v1 }
  0xe3   :  { %1915 = vmatpush2.bf16.msra.mxu1 %v9291_v11  ;;  %v232_v6 = vld [vmem:[#allocation2 + $0x12c8] sm:$0xff]  ;;  %v9391_v11 = vcombine.low %v298_v62, %v300_v1 }
  0xe4   :  { %1916 = vmatprep.subr.bf16.mxu1 %v9288_v16  ;;  %v294_v7 = vld [vmem:[#allocation2 + $0x1a88] sm:$0xff]  ;;  %v9324_v12 = vcombine.high %v230_v5, %v232_v6 }
  0xe5   :  { %1874 = vmatpush2.bf16.msra.mxu0 %v9223_v18  ;;  %v296_v9 = vld [vmem:[#allocation2 + $0x1ac8] sm:$0xff]  ;;  %v9323_v18 = vcombine.low %v230_v5, %v232_v6 }
  0xe6   :  { %1875 = vmatprep.subr.bf16.mxu0 %v9220_v20  ;;  %v9388_v13 = vcombine.high %v294_v7, %v296_v9  ;;  %v226_v14 = vld [vmem:[#allocation2 + $0x1208] sm:$0xff] }
  0xe7   :  { %1917 = vmatpush2.bf16.msra.mxu1 %v9287_v19  ;;  %v228_v15 = vld [vmem:[#allocation2 + $0x1248] sm:$0xff]  ;;  %v9387_v19 = vcombine.low %v294_v7, %v296_v9 }
  0xe8   :  { %1918 = vmatprep.subr.bf16.mxu1 %v9284_v28  ;;  %v290_v16 = vld [vmem:[#allocation2 + $0x1a08] sm:$0xff]  ;;  %v9320_v20 = vcombine.high %v226_v14, %v228_v15 }
  0xe9   :  { %1876 = vmatpush2.bf16.msra.mxu0 %v9219_v30  ;;  %v292_v17 = vld [vmem:[#allocation2 + $0x1a48] sm:$0xff]  ;;  %v9319_v30 = vcombine.low %v226_v14, %v228_v15 }
  0xea   :  { %1877 = vmatprep.subr.bf16.mxu0 %v9216_v31  ;;  %v9384_v22 = vcombine.high %v290_v16, %v292_v17  ;;  %v222_v26 = vld [vmem:[#allocation2 + $0x1188] sm:$0xff] }
  0xeb   :  { %1919 = vmatpush2.bf16.msra.mxu1 %v9283_v59  ;;  %v224_v27 = vld [vmem:[#allocation2 + $0x11c8] sm:$0xff]  ;;  %v9383_v59 = vcombine.low %v290_v16, %v292_v17 }
  0xec   :  { %1920 = vmatprep.subr.bf16.mxu1 %v9280_v36  ;;  %v286_v28 = vld [vmem:[#allocation2 + $0x1988] sm:$0xff]  ;;  %v9316_v31 = vcombine.high %v222_v26, %v224_v27 }
  0xed   :  { %1878 = vmatpush2.bf16.msra.mxu0 %v9215_v38  ;;  %v288_v29 = vld [vmem:[#allocation2 + $0x19c8] sm:$0xff]  ;;  %v9315_v38 = vcombine.low %v222_v26, %v224_v27 }
  0xee   :  { %1879 = vmatprep.subr.bf16.mxu0 %v9212_v40  ;;  %v9380_v32 = vcombine.high %v286_v28, %v288_v29  ;;  %v218_v34 = vld [vmem:[#allocation2 + $0x1108] sm:$0xff] }
  0xef   :  { %1921 = vmatpush2.bf16.msra.mxu1 %v9279_v39  ;;  %v220_v35 = vld [vmem:[#allocation2 + $0x1148] sm:$0xff]  ;;  %v9379_v39 = vcombine.low %v286_v28, %v288_v29 }
  0xf0   :  { %1922 = vmatprep.subr.bf16.mxu1 %v9276_v44  ;;  %v282_v36 = vld [vmem:[#allocation2 + $0x1908] sm:$0xff]  ;;  %v9312_v40 = vcombine.high %v218_v34, %v220_v35 }
  0xf1   :  { %1880 = vmatpush2.bf16.msra.mxu0 %v9211_v48  ;;  %v284_v37 = vld [vmem:[#allocation2 + $0x1948] sm:$0xff]  ;;  %v9311_v48 = vcombine.low %v218_v34, %v220_v35 }
  0xf2   :  { %1881 = vmatprep.subr.bf16.mxu0 %v9208_v50  ;;  %v9376_v41 = vcombine.high %v282_v36, %v284_v37  ;;  %v214_v42 = vld [vmem:[#allocation2 + $0x1088] sm:$0xff] }
  0xf3   :  { %1923 = vmatpush2.bf16.msra.mxu1 %v9275_v49  ;;  %v216_v43 = vld [vmem:[#allocation2 + $0x10c8] sm:$0xff]  ;;  %v9375_v49 = vcombine.low %v282_v36, %v284_v37 }
  0xf4   :  { %1924 = vmatprep.subr.bf16.mxu1 %v9272_v56  ;;  %v278_v44 = vld [vmem:[#allocation2 + $0x1888] sm:$0xff]  ;;  %v9308_v50 = vcombine.high %v214_v42, %v216_v43 }
  0xf5   :  { %1882 = vmatpush2.bf16.msra.mxu0 %v9207_v23  ;;  %v280_v45 = vld [vmem:[#allocation2 + $0x18c8] sm:$0xff]  ;;  %v9307_v23 = vcombine.low %v214_v42, %v216_v43 }
  0xf6   :  { %1937 = vmatprep.subr.bf16.mxu0 %v9332_v54  ;;  %v9372_v51 = vcombine.high %v278_v44, %v280_v45  ;;  %v210_v52 = vld [vmem:[#allocation2 + $0x1008] sm:$0xff] }
  0xf7   :  { %1925 = vmatpush2.bf16.msra.mxu1 %v9271_v24  ;;  %v212_v53 = vld [vmem:[#allocation2 + $0x1048] sm:$0xff]  ;;  %v9371_v24 = vcombine.low %v278_v44, %v280_v45 }
  0xf8   :  { %1980 = vmatprep.subr.bf16.mxu1 %v9396_v0  ;;  %1884 = vmatmul.mubr.bf16.vlgmr.msra.gmra.mxu0 %v10833_v21  ;;  %v274_v56 = vld [vmem:[#allocation2 + $0x1808] sm:$0xff]  ;;  %v9304_v54 = vcombine.high %v210_v52, %v212_v53 }
  0xf9   :  { %1938 = vmatpush1.bf16.msra.mxu0 %v9331_v2  ;;  %1969 = vmatprep.mubr.bf16.mxu0 %v10861_v60  ;;  %v276_v57 = vld [vmem:[#allocation2 + $0x1848] sm:$0xff]  ;;  %v9303_v2 = vcombine.low %v210_v52, %v212_v53 }
  0xfa   :  { %1927 = vmatmul.mubr.bf16.vlgmr.msra.gmra.mxu1 %v10847_v25  ;;  %1939 = vmatprep.subr.bf16.mxu0 %v9328_v4  ;;  %v9368_v55 = vcombine.high %v274_v56, %v276_v57  ;;  %v270_v61 = vld [vmem:[#allocation2 + $0x1788] sm:$0xff] }
  0xfb   :  { %1981 = vmatpush1.bf16.msra.mxu1 %v9395_v3  ;;  %2012 = vmatprep.mubr.bf16.mxu1 %v10866_v33  ;;  %v272_v62 = vld [vmem:[#allocation2 + $0x17c8] sm:$0xff]  ;;  %v9367_v3 = vcombine.low %v274_v56, %v276_v57 }
  0xfc   :  { %1982 = vmatprep.subr.bf16.mxu1 %v9392_v8  ;;  %v334_v0 = vld [vmem:[#allocation2 + $0x1f88] sm:$0xff]  ;;  %v9364_v4 = vcombine.high %v270_v61, %v272_v62 }
  0xfd   :  { %1940 = vmatpush1.bf16.msra.mxu0 %v9327_v10  ;;  %v336_v1 = vld [vmem:[#allocation2 + $0x1fc8] sm:$0xff]  ;;  %v9363_v10 = vcombine.low %v270_v61, %v272_v62 }
  0xfe   :  { %1941 = vmatprep.subr.bf16.mxu0 %v9324_v12  ;;  %v9428_v5 = vcombine.high %v334_v0, %v336_v1  ;;  %v266_v6 = vld [vmem:[#allocation2 + $0x1708] sm:$0xff] }
  0xff   :  { %1983 = vmatpush1.bf16.msra.mxu1 %v9391_v11  ;;  %v268_v7 = vld [vmem:[#allocation2 + $0x1748] sm:$0xff]  ;;  %v9427_v11 = vcombine.low %v334_v0, %v336_v1 }
 0x100   :  { %1984 = vmatprep.subr.bf16.mxu1 %v9388_v13  ;;  %v330_v8 = vld [vmem:[#allocation2 + $0x1f08] sm:$0xff]  ;;  %v9360_v12 = vcombine.high %v266_v6, %v268_v7 }
 0x101   :  { %1942 = vmatpush1.bf16.msra.mxu0 %v9323_v18  ;;  %v332_v9 = vld [vmem:[#allocation2 + $0x1f48] sm:$0xff]  ;;  %v9359_v18 = vcombine.low %v266_v6, %v268_v7 }
 0x102   :  { %1943 = vmatprep.subr.bf16.mxu0 %v9320_v20  ;;  %v9424_v13 = vcombine.high %v330_v8, %v332_v9  ;;  %v262_v14 = vld [vmem:[#allocation2 + $0x1688] sm:$0xff] }
 0x103   :  { %1985 = vmatpush1.bf16.msra.mxu1 %v9387_v19  ;;  %v264_v15 = vld [vmem:[#allocation2 + $0x16c8] sm:$0xff]  ;;  %v9423_v19 = vcombine.low %v330_v8, %v332_v9  ;;  %v2127_v8 = vld [vmem:[#allocation2 + $0x390] sm:$0xff] }
 0x104   :  { %1986 = vmatprep.subr.bf16.mxu1 %v9384_v22  ;;  %v326_v16 = vld [vmem:[#allocation2 + $0x1e88] sm:$0xff]  ;;  %v9356_v20 = vcombine.high %v262_v14, %v264_v15  ;;  %v2129_v9 = vld [vmem:[#allocation2 + $0x3d0] sm:$0xff] }
 0x105   :  { %1944 = vmatpush1.bf16.msra.mxu0 %v9319_v30  ;;  %v328_v17 = vld [vmem:[#allocation2 + $0x1ec8] sm:$0xff]  ;;  %v9355_v30 = vcombine.low %v262_v14, %v264_v15  ;;  %v10892_v15 = vld [vmem:[#allocation5] sm:$0xf] }
 0x106   :  { %1945 = vmatprep.subr.bf16.mxu0 %v9316_v31  ;;  %v9420_v22 = vcombine.high %v326_v16, %v328_v17  ;;  %v258_v26 = vld [vmem:[#allocation2 + $0x1608] sm:$0xff] }
 0x107   :  { %1987 = vmatpush1.bf16.msra.mxu1 %v9383_v59  ;;  %v260_v27 = vld [vmem:[#allocation2 + $0x1648] sm:$0xff]  ;;  %v9419_v59 = vcombine.low %v326_v16, %v328_v17  ;;  %v9458_v16 = vcombine.high %v2127_v8, %v2129_v9 }
 0x108   :  { %1988 = vmatprep.subr.bf16.mxu1 %v9380_v32  ;;  %v322_v28 = vld [vmem:[#allocation2 + $0x1e08] sm:$0xff]  ;;  %v9352_v31 = vcombine.high %v258_v26, %v260_v27 }
 0x109   :  { %1946 = vmatpush1.bf16.msra.mxu0 %v9315_v38  ;;  %v324_v29 = vld [vmem:[#allocation2 + $0x1e48] sm:$0xff]  ;;  %v9351_v38 = vcombine.low %v258_v26, %v260_v27  ;;  %v9457_v27 = vcombine.low %v2127_v8, %v2129_v9  ;;  %v2171_v8 = vld [vmem:[#allocation2 + $0x910] sm:$0xff] }
 0x10a   :  { %1947 = vmatprep.subr.bf16.mxu0 %v9312_v40  ;;  %v9416_v32 = vcombine.high %v322_v28, %v324_v29  ;;  %v254_v34 = vld [vmem:[#allocation2 + $0x1588] sm:$0xff]  ;;  %v2173_v9 = vld [vmem:[#allocation2 + $0x950] sm:$0xff] }
 0x10b   :  { %1989 = vmatpush1.bf16.msra.mxu1 %v9379_v39  ;;  %v256_v35 = vld [vmem:[#allocation2 + $0x15c8] sm:$0xff]  ;;  %v9415_v39 = vcombine.low %v322_v28, %v324_v29 }
 0x10c   :  { %1990 = vmatprep.subr.bf16.mxu1 %v9376_v41  ;;  %v318_v36 = vld [vmem:[#allocation2 + $0x1d88] sm:$0xff]  ;;  %v9348_v40 = vcombine.high %v254_v34, %v256_v35 }
 0x10d   :  { %1948 = vmatpush1.bf16.msra.mxu0 %v9311_v48  ;;  %v320_v37 = vld [vmem:[#allocation2 + $0x1dc8] sm:$0xff]  ;;  %v9347_v48 = vcombine.low %v254_v34, %v256_v35  ;;  %v2183_v34 = vld [vmem:[#allocation2 + $0xa90] sm:$0xff] }
 0x10e   :  { %1949 = vmatprep.subr.bf16.mxu0 %v9308_v50  ;;  %v9412_v41 = vcombine.high %v318_v36, %v320_v37  ;;  %v250_v42 = vld [vmem:[#allocation2 + $0x1508] sm:$0xff]  ;;  %v2185_v35 = vld [vmem:[#allocation2 + $0xad0] sm:$0xff] }
 0x10f   :  { %1991 = vmatpush1.bf16.msra.mxu1 %v9375_v49  ;;  %v252_v43 = vld [vmem:[#allocation2 + $0x1548] sm:$0xff]  ;;  %v9411_v49 = vcombine.low %v318_v36, %v320_v37 }
 0x110   :  { %1992 = vmatprep.subr.bf16.mxu1 %v9372_v51  ;;  %v314_v44 = vld [vmem:[#allocation2 + $0x1d08] sm:$0xff]  ;;  %v9344_v50 = vcombine.high %v250_v42, %v252_v43 }
 0x111   :  { %1950 = vmatpush1.bf16.msra.mxu0 %v9307_v23  ;;  %v316_v45 = vld [vmem:[#allocation2 + $0x1d48] sm:$0xff]  ;;  %v9343_v23 = vcombine.low %v250_v42, %v252_v43 }
 0x112   :  { %1951 = vmatprep.subr.bf16.mxu0 %v9304_v54  ;;  %v9408_v51 = vcombine.high %v314_v44, %v316_v45  ;;  %v246_v52 = vld [vmem:[#allocation2 + $0x1488] sm:$0xff]  ;;  %v9407_v54 = vcombine.low %v314_v44, %v316_v45  ;;  %v9514_v44 = vcombine.high %v2183_v34, %v2185_v35  ;;  %v2115_v45 = vld [vmem:[#allocation2 + $0x210] sm:$0xff] }
 0x113   :  { %1993 = vmatpush1.bf16.msra.mxu1 %v9371_v24  ;;  %v248_v53 = vld [vmem:[#allocation2 + $0x14c8] sm:$0xff]  ;;  %v339_v24 = vlaneseq }
 0x114   :  { %1994 = vmatprep.subr.bf16.mxu1 %v9368_v55  ;;  %v310_v56 = vld [vmem:[#allocation2 + $0x1c88] sm:$0xff]  ;;  %v9340_v55 = vcombine.high %v246_v52, %v248_v53 }
 0x115   :  { %1952 = vmatpush1.bf16.msra.mxu0 %v9303_v2  ;;  %v312_v57 = vld [vmem:[#allocation2 + $0x1cc8] sm:$0xff] }
 0x116   :  { %1953 = vmatprep.subr.bf16.mxu0 %v9364_v4  ;;  %v9404_v61 = vcombine.high %v310_v56, %v312_v57  ;;  %v242_v62 = vld [vmem:[#allocation2 + $0x1408] sm:$0xff]  ;;  %v10887_v4 = vshrl.u32 %v339_v24, 7 }
 0x117   :  { %1995 = vmatpush1.bf16.msra.mxu1 %v9367_v3  ;;  %v244_v0 = vld [vmem:[#allocation2 + $0x1448] sm:$0xff]  ;;  %v9339_v3 = vcombine.low %v246_v52, %v248_v53 }
 0x118   :  { %1996 = vmatprep.subr.bf16.mxu1 %v9428_v5  ;;  %v306_v1 = vld [vmem:[#allocation2 + $0x1c08] sm:$0xff]  ;;  %v9403_v5 = vcombine.low %v310_v56, %v312_v57  ;;  %v9336_v6 = vcombine.high %v242_v62, %v244_v0  ;;  %v9513_v57 = vcombine.low %v2183_v34, %v2185_v35 }
 0x119   :  { %1954 = vmatpush2.bf16.msra.mxu0 %v9363_v10  ;;  %v308_v2 = vld [vmem:[#allocation2 + $0x1c48] sm:$0xff]  ;;  %v2191_v10 = vld [vmem:[#allocation2 + $0xb90] sm:$0xff] }
 0x11a   :  { %1955 = vmatprep.subr.bf16.mxu0 %v9360_v12  ;;  %v9400_v7 = vcombine.high %v306_v1, %v308_v2  ;;  %v9335_v12 = vcombine.low %v242_v62, %v244_v0  ;;  %v9399_v14 = vcombine.low %v306_v1, %v308_v2  ;;  %v2175_v62 = vld [vmem:[#allocation2 + $0x990] sm:$0xff] }
 0x11b   :  { %1997 = vmatpush2.bf16.msra.mxu1 %v9427_v11  ;;  %v2193_v11 = vld [vmem:[#allocation2 + $0xbd0] sm:$0xff] }
 0x11c   :  { %1998 = vmatprep.subr.bf16.mxu1 %v9424_v13  ;;  %v10890_v13 = vsub.s32 0, %v10887_v4  ;;  %v9522_v17 = vcombine.high %v2191_v10, %v2193_v11  ;;  %v9521_v28 = vcombine.low %v2191_v10, %v2193_v11  ;;  %v2177_v0 = vld [vmem:[#allocation2 + $0x9d0] sm:$0xff] }
 0x11d   :  { %1956 = vmatpush2.bf16.msra.mxu0 %v9359_v18  ;;  %v2123_v18 = vld [vmem:[#allocation2 + $0x310] sm:$0xff]  ;;  %v9505_v11 = vcombine.low %v2175_v62, %v2177_v0 }
 0x11e   :  { %1957 = vmatprep.subr.bf16.mxu0 %v9356_v20  ;;  %v2187_v20 = vld [vmem:[#allocation2 + $0xb10] sm:$0xff]  ;;  %v342_v26 = vrot.slane %v10892_v15, %v10890_v13 }
 0x11f   :  { %1999 = vmatpush2.bf16.msra.mxu1 %v9423_v19  ;;  %v2125_v19 = vld [vmem:[#allocation2 + $0x350] sm:$0xff] }
 0x120   :  { %2000 = vmatprep.subr.bf16.mxu1 %v9420_v22  ;;  %v2189_v22 = vld [vmem:[#allocation2 + $0xb50] sm:$0xff]  ;;  %v9454_v29 = vcombine.high %v2123_v18, %v2125_v19 }
 0x121   :  { %1958 = vmatpush2.bf16.msra.mxu0 %v9355_v30  ;;  %v9518_v30 = vcombine.high %v2187_v20, %v2189_v22 }
 0x122   :  { %1959 = vmatprep.subr.bf16.mxu0 %v9352_v31  ;;  %v2121_v31 = vld [vmem:[#allocation2 + $0x2d0] sm:$0xff] }
 0x123   :  { %2001 = vmatpush2.bf16.msra.mxu1 %v9419_v59  ;;  %v2119_v59 = vld [vmem:[#allocation2 + $0x290] sm:$0xff] }
 0x124   :  { %2002 = vmatprep.subr.bf16.mxu1 %v9416_v32  ;;  %v9449_v53 = vcombine.low %v2119_v59, %v2121_v31 }
 0x125   :  { %1960 = vmatpush2.bf16.msra.mxu0 %v9351_v38  ;;  %v9453_v38 = vcombine.low %v2123_v18, %v2125_v19  ;;  %v2167_v18 = vld [vmem:[#allocation2 + $0x890] sm:$0xff] }
 0x126   :  { %1961 = vmatprep.subr.bf16.mxu0 %v9348_v40  ;;  %v9517_v40 = vcombine.low %v2187_v20, %v2189_v22  ;;  %v2169_v19 = vld [vmem:[#allocation2 + $0x8d0] sm:$0xff]  ;;  %v9501_v22 = vcombine.low %v2171_v8, %v2173_v9 }
 0x127   :  { %2003 = vmatpush2.bf16.msra.mxu1 %v9415_v39 }
 0x128   :  { %2004 = vmatprep.subr.bf16.mxu1 %v9412_v41  ;;  %v9450_v41 = vcombine.high %v2119_v59, %v2121_v31  ;;  %v2165_v59 = vld [vmem:[#allocation2 + $0x850] sm:$0xff] }
 0x129   :  { %1962 = vmatpush2.bf16.msra.mxu0 %v9347_v48  ;;  %v2117_v48 = vld [vmem:[#allocation2 + $0x250] sm:$0xff] }
 0x12a   :  { %1963 = vmatprep.subr.bf16.mxu0 %v9344_v50  ;;  %v2179_v50 = vld [vmem:[#allocation2 + $0xa10] sm:$0xff]  ;;  %v9445_v1 = vcombine.low %v2115_v45, %v2117_v48 }
 0x12b   :  { %2005 = vmatpush2.bf16.msra.mxu1 %v9411_v49 }
 0x12c   :  { %2006 = vmatprep.subr.bf16.mxu1 %v9408_v51  ;;  %v2181_v51 = vld [vmem:[#allocation2 + $0xa50] sm:$0xff] }
 0x12d   :  { %1964 = vmatpush2.bf16.msra.mxu0 %v9343_v23  ;;  %v9446_v23 = vcombine.high %v2115_v45, %v2117_v48  ;;  %v9509_v2 = vcombine.low %v2179_v50, %v2181_v51 }
 0x12e   :  { %1965 = vmatprep.subr.bf16.mxu0 %v9340_v55  ;;  %v2111_v55 = vld [vmem:[#allocation2 + $0x190] sm:$0xff] }
 0x12f   :  { %2007 = vmatpush2.bf16.msra.mxu1 %v9407_v54  ;;  %v9510_v54 = vcombine.high %v2179_v50, %v2181_v51  ;;  %v2157_v50 = vld [vmem:[#allocation2 + $0x750] sm:$0xff] }
 0x130   :  { %2008 = vmatprep.subr.bf16.mxu1 %v9404_v61  ;;  %v2113_v61 = vld [vmem:[#allocation2 + $0x1d0] sm:$0xff] }
 0x131   :  { %1966 = vmatpush2.bf16.msra.mxu0 %v9339_v3  ;;  %v9442_v3 = vcombine.high %v2111_v55, %v2113_v61  ;;  %v9441_v10 = vcombine.low %v2111_v55, %v2113_v61  ;;  %v2219_v51 = vld [vmem:[#allocation2 + $0xf10] sm:$0xff] }
 0x132   :  { %1967 = vmatprep.subr.bf16.mxu0 %v9336_v6  ;;  %v2107_v6 = vld [vmem:[#allocation2 + $0x110] sm:$0xff] }
 0x133   :  { %2009 = vmatpush2.bf16.msra.mxu1 %v9403_v5  ;;  %v9506_v5 = vcombine.high %v2175_v62, %v2177_v0  ;;  %v2153_v55 = vld [vmem:[#allocation2 + $0x6d0] sm:$0xff] }
 0x134   :  { %2010 = vmatprep.subr.bf16.mxu1 %v9400_v7  ;;  %v2109_v7 = vld [vmem:[#allocation2 + $0x150] sm:$0xff] }
 0x135   :  { %1968 = vmatpush2.bf16.msra.mxu0 %v9335_v12  ;;  %v9438_v12 = vcombine.high %v2107_v6, %v2109_v7  ;;  %v9437_v20 = vcombine.low %v2107_v6, %v2109_v7  ;;  %v2215_v61 = vld [vmem:[#allocation2 + $0xe90] sm:$0xff] }
 0x136   :  { %3657 = vmatprep.subr.bf16.mxu0 %v9458_v16  ;;  %v2103_v16 = vld [vmem:[#allocation2 + $0x90] sm:$0xff] }
 0x137   :  { %2011 = vmatpush2.bf16.msra.mxu1 %v9399_v14  ;;  %v9502_v14 = vcombine.high %v2171_v8, %v2173_v9  ;;  %v2217_v62 = vld [vmem:[#allocation2 + $0xed0] sm:$0xff] }
 0x138   :  { %3700 = vmatprep.subr.bf16.mxu1 %v9522_v17  ;;  %v1713_v32 = vpop.f32.mrf.mxu0  ;;  %1970 = vmatmul.mubr.bf16.vlgmr.msra.gmra.mxu0 %v10873_v46  ;;  %v2105_v17 = vld [vmem:[#allocation2 + $0xd0] sm:$0xff] }
 0x139   :  { %v1714_v36 = vadd.f32 %v1713_v32, %v342_v26  ;;  %3658 = vmatpush1.bf16.msra.mxu0 %v9457_v27  ;;  %3689 = vmatprep.mubr.bf16.mxu0 %v10813_v58  ;;  %v9498_v27 = vcombine.high %v2167_v18, %v2169_v19  ;;  %v9433_v31 = vcombine.low %v2103_v16, %v2105_v17  ;;  %v2149_v6 = vld [vmem:[#allocation2 + $0x650] sm:$0xff] }
 0x13a   :  { %v1756_v37 = vpop.f32.mrf.mxu1  ;;  %2013 = vmatmul.mubr.bf16.vlgmr.msra.gmra.mxu1 %v10877_v47  ;;  %v10898_v39 = vpop.f32.mrf.mxu0  ;;  %3659 = vmatprep.subr.bf16.mxu0 %v9454_v29  ;;  %v2101_v29 = vld [vmem:[#allocation2 + $0x50] sm:$0xff]  ;;  %v9497_v32 = vcombine.low %v2167_v18, %v2169_v19 }
 0x13b   :  { %3701 = vmatpush1.bf16.msra.mxu1 %v9521_v28  ;;  %v10900_v42 = vadd.f32 %v1756_v37, %v1714_v36  ;;  %3732 = vmatprep.mubr.bf16.mxu1 %v10827_v63  ;;  %v2099_v28 = vld [vmem:[#allocation2 + $0x10] sm:$0xff] }
 0x13c   :  { %v10902_v43 = vpop.f32.mrf.mxu1  ;;  %3702 = vmatprep.subr.bf16.mxu1 %v9518_v30  ;;  %v1717_v49 = vpop.f32.mrf.mxu0  ;;  %v2163_v30 = vld [vmem:[#allocation2 + $0x810] sm:$0xff]  ;;  %v9430_v34 = vcombine.high %v2099_v28, %v2101_v29 }
 0x13d   :  { %v1718_v52 = vadd.f32 %v1717_v49, %v342_v26  ;;  %3660 = vmatpush1.bf16.msra.mxu0 %v9453_v38  ;;  %v9434_v26 = vcombine.high %v2103_v16, %v2105_v17  ;;  %v9494_v35 = vcombine.high %v2163_v30, %v2165_v59  ;;  %v2159_v36 = vld [vmem:[#allocation2 + $0x790] sm:$0xff] }
 0x13e   :  { %v1760_v56 = vpop.f32.mrf.mxu1  ;;  %3661 = vmatprep.subr.bf16.mxu0 %v9450_v41  ;;  %v2161_v37 = vld [vmem:[#allocation2 + $0x7d0] sm:$0xff]  ;;  %v9429_v41 = vcombine.low %v2099_v28, %v2101_v29 }
 0x13f   :  { %3703 = vmatpush1.bf16.msra.mxu1 %v9517_v40  ;;  %v10906_v24 = vadd.f32 %v1760_v56, %v1718_v52  ;;  %v2223_v38 = vld [vmem:[#allocation2 + $0xf90] sm:$0xff]  ;;  %v9490_v45 = vcombine.high %v2159_v36, %v2161_v37 }
 0x140   :  { %3704 = vmatprep.subr.bf16.mxu1 %v9514_v44  ;;  %v2225_v40 = vld [vmem:[#allocation2 + $0xfd0] sm:$0xff]  ;;  %v9493_v44 = vcombine.low %v2163_v30, %v2165_v59 }
 0x141   :  { %3662 = vmatpush1.bf16.msra.mxu0 %v9449_v53  ;;  %v9554_v48 = vcombine.high %v2223_v38, %v2225_v40  ;;  %v2155_v49 = vld [vmem:[#allocation2 + $0x710] sm:$0xff]  ;;  %v9489_v53 = vcombine.low %v2159_v36, %v2161_v37  ;;  %v9553_v56 = vcombine.low %v2223_v38, %v2225_v40 }
 0x142   :  { %3663 = vmatprep.subr.bf16.mxu0 %v9446_v23  ;;  %v2221_v52 = vld [vmem:[#allocation2 + $0xf50] sm:$0xff]  ;;  %v9485_v0 = vcombine.low %v2155_v49, %v2157_v50 }
 0x143   :  { %3705 = vmatpush1.bf16.msra.mxu1 %v9513_v57  ;;  %v9486_v57 = vcombine.high %v2155_v49, %v2157_v50  ;;  %v9550_v23 = vcombine.high %v2219_v51, %v2221_v52  ;;  %v2211_v7 = vld [vmem:[#allocation2 + $0xe10] sm:$0xff] }
 0x144   :  { %3706 = vmatprep.subr.bf16.mxu1 %v9510_v54  ;;  %v2151_v54 = vld [vmem:[#allocation2 + $0x690] sm:$0xff] }
 0x145   :  { %3664 = vmatpush1.bf16.msra.mxu0 %v9445_v1  ;;  %v9549_v1 = vcombine.low %v2219_v51, %v2221_v52  ;;  %v2213_v8 = vld [vmem:[#allocation2 + $0xe50] sm:$0xff]  ;;  %v9481_v9 = vcombine.low %v2151_v54, %v2153_v55 }
 0x146   :  { %3665 = vmatprep.subr.bf16.mxu0 %v9442_v3  ;;  %v9546_v3 = vcombine.high %v2215_v61, %v2217_v62  ;;  %v2145_v16 = vld [vmem:[#allocation2 + $0x5d0] sm:$0xff] }
 0x147   :  { %3707 = vmatpush1.bf16.msra.mxu1 %v9509_v2  ;;  %v9482_v2 = vcombine.high %v2151_v54, %v2153_v55  ;;  %v2207_v17 = vld [vmem:[#allocation2 + $0xd90] sm:$0xff] }
 0x148   :  { %3708 = vmatprep.subr.bf16.mxu1 %v9506_v5  ;;  %v2147_v5 = vld [vmem:[#allocation2 + $0x610] sm:$0xff] }
 0x149   :  { %3666 = vmatpush1.bf16.msra.mxu0 %v9441_v10  ;;  %v9545_v10 = vcombine.low %v2215_v61, %v2217_v62  ;;  %v2209_v18 = vld [vmem:[#allocation2 + $0xdd0] sm:$0xff]  ;;  %v9477_v19 = vcombine.low %v2147_v5, %v2149_v6 }
 0x14a   :  { %3667 = vmatprep.subr.bf16.mxu0 %v9438_v12  ;;  %v9542_v12 = vcombine.high %v2211_v7, %v2213_v8  ;;  %v2141_v28 = vld [vmem:[#allocation2 + $0x550] sm:$0xff] }
 0x14b   :  { %3709 = vmatpush1.bf16.msra.mxu1 %v9505_v11  ;;  %v9478_v11 = vcombine.high %v2147_v5, %v2149_v6  ;;  %v2203_v29 = vld [vmem:[#allocation2 + $0xd10] sm:$0xff] }
 0x14c   :  { %3710 = vmatprep.subr.bf16.mxu1 %v9502_v14  ;;  %v2143_v14 = vld [vmem:[#allocation2 + $0x590] sm:$0xff] }
 0x14d   :  { %3668 = vmatpush1.bf16.msra.mxu0 %v9437_v20  ;;  %v9541_v20 = vcombine.low %v2211_v7, %v2213_v8  ;;  %v2205_v30 = vld [vmem:[#allocation2 + $0xd50] sm:$0xff]  ;;  %v9473_v59 = vcombine.low %v2143_v14, %v2145_v16 }
 0x14e   :  { %3669 = vmatprep.subr.bf16.mxu0 %v9434_v26  ;;  %v9538_v26 = vcombine.high %v2207_v17, %v2209_v18  ;;  %v2137_v36 = vld [vmem:[#allocation2 + $0x4d0] sm:$0xff] }
 0x14f   :  { %3711 = vmatpush1.bf16.msra.mxu1 %v9501_v22  ;;  %v9474_v22 = vcombine.high %v2143_v14, %v2145_v16  ;;  %v2199_v37 = vld [vmem:[#allocation2 + $0xc90] sm:$0xff] }
 0x150   :  { %3712 = vmatprep.subr.bf16.mxu1 %v9498_v27  ;;  %v2139_v27 = vld [vmem:[#allocation2 + $0x510] sm:$0xff] }
 0x151   :  { %3670 = vmatpush1.bf16.msra.mxu0 %v9433_v31  ;;  %v9537_v31 = vcombine.low %v2207_v17, %v2209_v18  ;;  %v2201_v38 = vld [vmem:[#allocation2 + $0xcd0] sm:$0xff]  ;;  %v9469_v40 = vcombine.low %v2139_v27, %v2141_v28 }
 0x152   :  { %3671 = vmatprep.subr.bf16.mxu0 %v9430_v34  ;;  %v9534_v34 = vcombine.high %v2203_v29, %v2205_v30  ;;  %v2133_v49 = vld [vmem:[#allocation2 + $0x450] sm:$0xff] }
 0x153   :  { %3713 = vmatpush1.bf16.msra.mxu1 %v9497_v32  ;;  %v9470_v32 = vcombine.high %v2139_v27, %v2141_v28  ;;  %v2195_v50 = vld [vmem:[#allocation2 + $0xc10] sm:$0xff] }
 0x154   :  { %3714 = vmatprep.subr.bf16.mxu1 %v9494_v35  ;;  %v2135_v35 = vld [vmem:[#allocation2 + $0x490] sm:$0xff] }
 0x155   :  { %3672 = vmatpush1.bf16.msra.mxu0 %v9429_v41  ;;  %v9533_v41 = vcombine.low %v2203_v29, %v2205_v30  ;;  %v2197_v51 = vld [vmem:[#allocation2 + $0xc50] sm:$0xff]  ;;  %v9465_v52 = vcombine.low %v2135_v35, %v2137_v36 }
 0x156   :  { %3673 = vmatprep.subr.bf16.mxu0 %v9490_v45  ;;  %v9530_v45 = vcombine.high %v2199_v37, %v2201_v38  ;;  %v2257_v54 = vld [vmem:[#allocation2 + $0x13d0] sm:$0xff] }
 0x157   :  { %3715 = vmatpush1.bf16.msra.mxu1 %v9493_v44  ;;  %v9466_v44 = vcombine.high %v2135_v35, %v2137_v36  ;;  %v2319_v55 = vld [vmem:[#allocation2 + $0x1b90] sm:$0xff] }
 0x158   :  { %3716 = vmatprep.subr.bf16.mxu1 %v9554_v48  ;;  %v2131_v48 = vld [vmem:[#allocation2 + $0x410] sm:$0xff] }
 0x159   :  { %3674 = vmatpush2.bf16.msra.mxu0 %v9489_v53  ;;  %v9529_v53 = vcombine.low %v2199_v37, %v2201_v38  ;;  %v2321_v61 = vld [vmem:[#allocation2 + $0x1bd0] sm:$0xff]  ;;  %v9461_v62 = vcombine.low %v2131_v48, %v2133_v49 }
 0x15a   :  { %3675 = vmatprep.subr.bf16.mxu0 %v9486_v57  ;;  %v9526_v57 = vcombine.high %v2195_v50, %v2197_v51  ;;  %v2253_v5 = vld [vmem:[#allocation2 + $0x1350] sm:$0xff] }
 0x15b   :  { %3717 = vmatpush2.bf16.msra.mxu1 %v9553_v56  ;;  %v9462_v56 = vcombine.high %v2131_v48, %v2133_v49  ;;  %v2315_v6 = vld [vmem:[#allocation2 + $0x1b10] sm:$0xff] }
 0x15c   :  { %3718 = vmatprep.subr.bf16.mxu1 %v9550_v23  ;;  %v2255_v23 = vld [vmem:[#allocation2 + $0x1390] sm:$0xff] }
 0x15d   :  { %3676 = vmatpush2.bf16.msra.mxu0 %v9485_v0  ;;  %v9525_v0 = vcombine.low %v2195_v50, %v2197_v51  ;;  %v2317_v7 = vld [vmem:[#allocation2 + $0x1b50] sm:$0xff]  ;;  %v9585_v8 = vcombine.low %v2255_v23, %v2257_v54 }
 0x15e   :  { %3677 = vmatprep.subr.bf16.mxu0 %v9482_v2  ;;  %v9650_v2 = vcombine.high %v2319_v55, %v2321_v61  ;;  %v9646_v14 = vcombine.high %v2315_v6, %v2317_v7  ;;  %v2247_v16 = vld [vmem:[#allocation2 + $0x1290] sm:$0xff]  ;;  %v9645_v29 = vcombine.low %v2315_v6, %v2317_v7 }
 0x15f   :  { %3719 = vmatpush2.bf16.msra.mxu1 %v9549_v1  ;;  %v9586_v1 = vcombine.high %v2255_v23, %v2257_v54  ;;  %v2249_v17 = vld [vmem:[#allocation2 + $0x12d0] sm:$0xff] }
 0x160   :  { %3720 = vmatprep.subr.bf16.mxu1 %v9546_v3  ;;  %v2251_v3 = vld [vmem:[#allocation2 + $0x1310] sm:$0xff]  ;;  %v9578_v30 = vcombine.high %v2247_v16, %v2249_v17 }
 0x161   :  { %3678 = vmatpush2.bf16.msra.mxu0 %v9481_v9  ;;  %v10908_v9 = vpop.f32.mrf.mxu0  ;;  %v9581_v27 = vcombine.low %v2251_v3, %v2253_v5  ;;  %v2245_v35 = vld [vmem:[#allocation2 + $0x1250] sm:$0xff] }
 0x162   :  { %3679 = vmatprep.subr.bf16.mxu0 %v9478_v11  ;;  %v9582_v11 = vcombine.high %v2251_v3, %v2253_v5  ;;  %v2307_v36 = vld [vmem:[#allocation2 + $0x1a10] sm:$0xff] }
 0x163   :  { %3721 = vmatpush2.bf16.msra.mxu1 %v9545_v10  ;;  %v9649_v10 = vcombine.low %v2319_v55, %v2321_v61  ;;  %v2309_v37 = vld [vmem:[#allocation2 + $0x1a50] sm:$0xff] }
 0x164   :  { %3722 = vmatprep.subr.bf16.mxu1 %v9542_v12  ;;  %v10910_v12 = vpop.f32.mrf.mxu1  ;;  %v9638_v49 = vcombine.high %v2307_v36, %v2309_v37  ;;  %v2239_v50 = vld [vmem:[#allocation2 + $0x1190] sm:$0xff] }
 0x165   :  { %3680 = vmatpush2.bf16.msra.mxu0 %v9477_v19  ;;  %v2311_v19 = vld [vmem:[#allocation2 + $0x1a90] sm:$0xff] }
 0x166   :  { %3681 = vmatprep.subr.bf16.mxu0 %v9474_v22  ;;  %v2241_v51 = vld [vmem:[#allocation2 + $0x11d0] sm:$0xff] }
 0x167   :  { %3723 = vmatpush2.bf16.msra.mxu1 %v9541_v20  ;;  %v2313_v20 = vld [vmem:[#allocation2 + $0x1ad0] sm:$0xff]  ;;  %v9570_v54 = vcombine.high %v2239_v50, %v2241_v51  ;;  %v9569_v3 = vcombine.low %v2239_v50, %v2241_v51 }
 0x168   :  { %3724 = vmatprep.subr.bf16.mxu1 %v9538_v26 }
 0x169   :  { %3682 = vmatpush2.bf16.msra.mxu0 %v9473_v59 }
 0x16a   :  { %3683 = vmatprep.subr.bf16.mxu0 %v9470_v32  ;;  %v9642_v32 = vcombine.high %v2311_v19, %v2313_v20 }
 0x16b   :  { %3725 = vmatpush2.bf16.msra.mxu1 %v9537_v31 }
 0x16c   :  { %3726 = vmatprep.subr.bf16.mxu1 %v9534_v34  ;;  %v2243_v34 = vld [vmem:[#allocation2 + $0x1210] sm:$0xff] }
 0x16d   :  { %3684 = vmatpush2.bf16.msra.mxu0 %v9469_v40  ;;  %v9577_v40 = vcombine.low %v2247_v16, %v2249_v17  ;;  %v9573_v23 = vcombine.low %v2243_v34, %v2245_v35 }
 0x16e   :  { %3685 = vmatprep.subr.bf16.mxu0 %v9466_v44  ;;  %v9641_v44 = vcombine.low %v2311_v19, %v2313_v20  ;;  %v2227_v20 = vld [vmem:[#allocation2 + $0x1010] sm:$0xff] }
 0x16f   :  { %3727 = vmatpush2.bf16.msra.mxu1 %v9533_v41 }
 0x170   :  { %3728 = vmatprep.subr.bf16.mxu1 %v9530_v45  ;;  %v9574_v45 = vcombine.high %v2243_v34, %v2245_v35  ;;  %v2287_v34 = vld [vmem:[#allocation2 + $0x1790] sm:$0xff] }
 0x171   :  { %3686 = vmatpush2.bf16.msra.mxu0 %v9465_v52  ;;  %v2303_v52 = vld [vmem:[#allocation2 + $0x1990] sm:$0xff] }
 0x172   :  { %3687 = vmatprep.subr.bf16.mxu0 %v9462_v56  ;;  %v2289_v35 = vld [vmem:[#allocation2 + $0x17d0] sm:$0xff] }
 0x173   :  { %3729 = vmatpush2.bf16.msra.mxu1 %v9529_v53  ;;  %v2305_v53 = vld [vmem:[#allocation2 + $0x19d0] sm:$0xff]  ;;  %v9617_v50 = vcombine.low %v2287_v34, %v2289_v35 }
 0x174   :  { %3730 = vmatprep.subr.bf16.mxu1 %v9526_v57  ;;  %v9634_v61 = vcombine.high %v2303_v52, %v2305_v53  ;;  %v9633_v5 = vcombine.low %v2303_v52, %v2305_v53 }
 0x175   :  { %3688 = vmatpush2.bf16.msra.mxu0 %v9461_v62  ;;  %v2235_v62 = vld [vmem:[#allocation2 + $0x1110] sm:$0xff] }
 0x176   :  { %3743 = vmatprep.subr.bf16.mxu0 %v9586_v1  ;;  %v2299_v1 = vld [vmem:[#allocation2 + $0x1910] sm:$0xff] }
 0x177   :  { %3731 = vmatpush2.bf16.msra.mxu1 %v9525_v0  ;;  %v2237_v0 = vld [vmem:[#allocation2 + $0x1150] sm:$0xff] }
 0x178   :  { %3786 = vmatprep.subr.bf16.mxu1 %v9650_v2  ;;  %v1799_v18 = vpop.f32.mrf.mxu0  ;;  %3690 = vmatmul.mubr.bf16.vlgmr.msra.gmra.mxu0 %v10833_v21  ;;  %v2301_v2 = vld [vmem:[#allocation2 + $0x1950] sm:$0xff]  ;;  %v9566_v6 = vcombine.high %v2235_v62, %v2237_v0  ;;  %v9565_v16 = vcombine.low %v2235_v62, %v2237_v0 }
 0x179   :  { %v1800_v22 = vadd.f32 %v1799_v18, %v10900_v42  ;;  %3744 = vmatpush1.bf16.msra.mxu0 %v9585_v8  ;;  %3775 = vmatprep.mubr.bf16.mxu0 %v10861_v60  ;;  %v9630_v7 = vcombine.high %v2299_v1, %v2301_v2  ;;  %v2231_v8 = vld [vmem:[#allocation2 + $0x1090] sm:$0xff]  ;;  %v9629_v17 = vcombine.low %v2299_v1, %v2301_v2 }
 0x17a   :  { %v1842_v26 = vpop.f32.mrf.mxu1  ;;  %3733 = vmatmul.mubr.bf16.vlgmr.msra.gmra.mxu1 %v10847_v25  ;;  %v10915_v28 = vpop.f32.mrf.mxu0  ;;  %3745 = vmatprep.subr.bf16.mxu0 %v9582_v11  ;;  %v2295_v11 = vld [vmem:[#allocation2 + $0x1890] sm:$0xff] }
 0x17b   :  { %3787 = vmatpush1.bf16.msra.mxu1 %v9649_v10  ;;  %v1843_v59 = vadd.f32 %v1842_v26, %v1800_v22  ;;  %3818 = vmatprep.mubr.bf16.mxu1 %v10866_v33  ;;  %v2233_v10 = vld [vmem:[#allocation2 + $0x10d0] sm:$0xff] }
 0x17c   :  { %v10917_v31 = vpop.f32.mrf.mxu1  ;;  %3788 = vmatprep.subr.bf16.mxu1 %v9646_v14  ;;  %v1803_v42 = vpop.f32.mrf.mxu0  ;;  %v2297_v14 = vld [vmem:[#allocation2 + $0x18d0] sm:$0xff]  ;;  %v9562_v18 = vcombine.high %v2231_v8, %v2233_v10 }
 0x17d   :  { %v1804_v38 = vadd.f32 %v1803_v42, %v10906_v24  ;;  %3746 = vmatpush1.bf16.msra.mxu0 %v9581_v27  ;;  %v2023_v56 = vmax.f32 %v1843_v59, 0.0  ;;  %v9637_v24 = vcombine.low %v2307_v36, %v2309_v37  ;;  %v9626_v19 = vcombine.high %v2295_v11, %v2297_v14  ;;  %v2229_v22 = vld [vmem:[#allocation2 + $0x1050] sm:$0xff] }
 0x17e   :  { %v1846_v41 = vpop.f32.mrf.mxu1  ;;  %3747 = vmatprep.subr.bf16.mxu0 %v9578_v30  ;;  %v2291_v26 = vld [vmem:[#allocation2 + $0x1810] sm:$0xff]  ;;  %v9625_v30 = vcombine.low %v2295_v11, %v2297_v14  ;;  %v9558_v59 = vcombine.high %v2227_v20, %v2229_v22  ;;  %v9557_v37 = vcombine.low %v2227_v20, %v2229_v22 }
 0x17f   :  { %3789 = vmatpush1.bf16.msra.mxu1 %v9645_v29  ;;  %v1847_v48 = vadd.f32 %v1846_v41, %v1804_v38  ;;  %v2293_v27 = vld [vmem:[#allocation2 + $0x1850] sm:$0xff]  ;;  %v9561_v29 = vcombine.low %v2231_v8, %v2233_v10 }
 0x180   :  { %3790 = vmatprep.subr.bf16.mxu1 %v9642_v32  ;;  %v9622_v32 = vcombine.high %v2291_v26, %v2293_v27  ;;  %v2351_v42 = vld [vmem:[#allocation2 + $0x1f90] sm:$0xff]  ;;  %v9621_v38 = vcombine.low %v2291_v26, %v2293_v27 }
 0x181   :  { %v2027_v57 = vmax.f32 %v1847_v48, 0.0  ;;  %3748 = vmatpush1.bf16.msra.mxu0 %v9577_v40  ;;  %v2353_v36 = vld [vmem:[#allocation2 + $0x1fd0] sm:$0xff]  ;;  %v9618_v40 = vcombine.high %v2287_v34, %v2289_v35 }
 0x182   :  { %3749 = vmatprep.subr.bf16.mxu0 %v9574_v45  ;;  %v9682_v41 = vcombine.high %v2351_v42, %v2353_v36  ;;  %v2285_v45 = vld [vmem:[#allocation2 + $0x1750] sm:$0xff]  ;;  %v9681_v51 = vcombine.low %v2351_v42, %v2353_v36 }
 0x183   :  { %3791 = vmatpush1.bf16.msra.mxu1 %v9641_v44  ;;  %v10922_v55 = vpack.c.bf16 %v2027_v57, %v2023_v56  ;;  %v2283_v44 = vld [vmem:[#allocation2 + $0x1710] sm:$0xff] }
 0x184   :  { %3792 = vmatprep.subr.bf16.mxu1 %v9638_v49  ;;  %v2347_v48 = vld [vmem:[#allocation2 + $0x1f10] sm:$0xff]  ;;  %v9614_v52 = vcombine.high %v2283_v44, %v2285_v45 }
 0x185   :  { %3750 = vmatpush1.bf16.msra.mxu0 %v9573_v23  ;;  %v2349_v49 = vld [vmem:[#allocation2 + $0x1f50] sm:$0xff] }
 0x186   :  { %3751 = vmatprep.subr.bf16.mxu0 %v9570_v54  ;;  %v9678_v53 = vcombine.high %v2347_v48, %v2349_v49  ;;  %v2279_v56 = vld [vmem:[#allocation2 + $0x1690] sm:$0xff]  ;;  %v9613_v54 = vcombine.low %v2283_v44, %v2285_v45 }
 0x187   :  { %3793 = vmatpush1.bf16.msra.mxu1 %v9637_v24  ;;  %v2281_v57 = vld [vmem:[#allocation2 + $0x16d0] sm:$0xff] }
 0x188   :  { %3794 = vmatprep.subr.bf16.mxu1 %v9634_v61  ;;  %v2343_v23 = vld [vmem:[#allocation2 + $0x1e90] sm:$0xff]  ;;  %v9677_v61 = vcombine.low %v2347_v48, %v2349_v49  ;;  %v9610_v62 = vcombine.high %v2279_v56, %v2281_v57 }
 0x189   :  { %3752 = vmatpush1.bf16.msra.mxu0 %v9569_v3  ;;  %v2345_v24 = vld [vmem:[#allocation2 + $0x1ed0] sm:$0xff] }
 0x18a   :  { %3753 = vmatprep.subr.bf16.mxu0 %v9566_v6  ;;  %v9674_v0 = vcombine.high %v2343_v23, %v2345_v24  ;;  %v2275_v1 = vld [vmem:[#allocation2 + $0x1610] sm:$0xff]  ;;  %v9609_v6 = vcombine.low %v2279_v56, %v2281_v57 }
 0x18b   :  { %3795 = vmatpush1.bf16.msra.mxu1 %v9633_v5  ;;  %v2277_v2 = vld [vmem:[#allocation2 + $0x1650] sm:$0xff] }
 0x18c   :  { %3796 = vmatprep.subr.bf16.mxu1 %v9630_v7  ;;  %v2339_v3 = vld [vmem:[#allocation2 + $0x1e10] sm:$0xff]  ;;  %v9673_v7 = vcombine.low %v2343_v23, %v2345_v24  ;;  %v9606_v8 = vcombine.high %v2275_v1, %v2277_v2  ;;  %v2128_v23 = vld [vmem:[#allocation2 + $0x398] sm:$0xff] }
 0x18d   :  { %3754 = vmatpush1.bf16.msra.mxu0 %v9565_v16  ;;  %v2341_v5 = vld [vmem:[#allocation2 + $0x1e50] sm:$0xff]  ;;  %v2130_v24 = vld [vmem:[#allocation2 + $0x3d8] sm:$0xff] }
 0x18e   :  { %3755 = vmatprep.subr.bf16.mxu0 %v9562_v18  ;;  %v9670_v10 = vcombine.high %v2339_v3, %v2341_v5  ;;  %v2271_v11 = vld [vmem:[#allocation2 + $0x1590] sm:$0xff]  ;;  %v9605_v18 = vcombine.low %v2275_v1, %v2277_v2  ;;  %v9460_v2 = vcombine.high %v2128_v23, %v2130_v24 }
 0x18f   :  { %3797 = vmatpush1.bf16.msra.mxu1 %v9629_v17  ;;  %v2273_v14 = vld [vmem:[#allocation2 + $0x15d0] sm:$0xff] }
 0x190   :  { %3798 = vmatprep.subr.bf16.mxu1 %v9626_v19  ;;  %v2335_v16 = vld [vmem:[#allocation2 + $0x1d90] sm:$0xff]  ;;  %v9669_v19 = vcombine.low %v2339_v3, %v2341_v5  ;;  %v9602_v20 = vcombine.high %v2271_v11, %v2273_v14  ;;  %v10928_v5 = vsub.s32 3, %v10887_v4 }
 0x191   :  { %3756 = vmatpush1.bf16.msra.mxu0 %v9561_v29  ;;  %v2337_v17 = vld [vmem:[#allocation2 + $0x1dd0] sm:$0xff] }
 0x192   :  { %3757 = vmatprep.subr.bf16.mxu0 %v9558_v59  ;;  %v9666_v22 = vcombine.high %v2335_v16, %v2337_v17  ;;  %v2267_v26 = vld [vmem:[#allocation2 + $0x1510] sm:$0xff]  ;;  %v9601_v59 = vcombine.low %v2271_v11, %v2273_v14  ;;  %v9459_v14 = vcombine.low %v2128_v23, %v2130_v24 }
 0x193   :  { %3799 = vmatpush1.bf16.msra.mxu1 %v9625_v30  ;;  %v2269_v27 = vld [vmem:[#allocation2 + $0x1550] sm:$0xff] }
 0x194   :  { %3800 = vmatprep.subr.bf16.mxu1 %v9622_v32  ;;  %v2331_v29 = vld [vmem:[#allocation2 + $0x1d10] sm:$0xff]  ;;  %v9665_v32 = vcombine.low %v2335_v16, %v2337_v17  ;;  %v9598_v34 = vcombine.high %v2267_v26, %v2269_v27  ;;  %v10932_v16 = vpop.f32.mrf.mxu0 }
 0x195   :  { %3758 = vmatpush1.bf16.msra.mxu0 %v9557_v37  ;;  %v2333_v30 = vld [vmem:[#allocation2 + $0x1d50] sm:$0xff] }
 0x196   :  { %3759 = vmatprep.subr.bf16.mxu0 %v9618_v40  ;;  %v9662_v35 = vcombine.high %v2331_v29, %v2333_v30  ;;  %v2263_v42 = vld [vmem:[#allocation2 + $0x1490] sm:$0xff]  ;;  %v9597_v40 = vcombine.low %v2267_v26, %v2269_v27  ;;  %v2120_v26 = vld [vmem:[#allocation2 + $0x298] sm:$0xff] }
 0x197   :  { %3801 = vmatpush1.bf16.msra.mxu1 %v9621_v38  ;;  %v2265_v36 = vld [vmem:[#allocation2 + $0x14d0] sm:$0xff]  ;;  %v2122_v27 = vld [vmem:[#allocation2 + $0x2d8] sm:$0xff] }
 0x198   :  { %3802 = vmatprep.subr.bf16.mxu1 %v9682_v41  ;;  %v2327_v37 = vld [vmem:[#allocation2 + $0x1c90] sm:$0xff]  ;;  %v9661_v41 = vcombine.low %v2331_v29, %v2333_v30  ;;  %v9594_v44 = vcombine.high %v2263_v42, %v2265_v36  ;;  %v2184_v30 = vld [vmem:[#allocation2 + $0xa98] sm:$0xff] }
 0x199   :  { %3760 = vmatpush2.bf16.msra.mxu0 %v9617_v50  ;;  %v2329_v38 = vld [vmem:[#allocation2 + $0x1cd0] sm:$0xff] }
 0x19a   :  { %3761 = vmatprep.subr.bf16.mxu0 %v9614_v52  ;;  %v9658_v45 = vcombine.high %v2327_v37, %v2329_v38  ;;  %v2259_v48 = vld [vmem:[#allocation2 + $0x1410] sm:$0xff]  ;;  %v9593_v52 = vcombine.low %v2263_v42, %v2265_v36 }
 0x19b   :  { %3803 = vmatpush2.bf16.msra.mxu1 %v9681_v51  ;;  %v2261_v49 = vld [vmem:[#allocation2 + $0x1450] sm:$0xff] }
 0x19c   :  { %3804 = vmatprep.subr.bf16.mxu1 %v9678_v53  ;;  %v2323_v50 = vld [vmem:[#allocation2 + $0x1c10] sm:$0xff]  ;;  %v9657_v53 = vcombine.low %v2327_v37, %v2329_v38  ;;  %v9590_v56 = vcombine.high %v2259_v48, %v2261_v49  ;;  %v9452_v37 = vcombine.high %v2120_v26, %v2122_v27 }
 0x19d   :  { %3762 = vmatpush2.bf16.msra.mxu0 %v9613_v54  ;;  %v2325_v51 = vld [vmem:[#allocation2 + $0x1c50] sm:$0xff]  ;;  %v2192_v54 = vld [vmem:[#allocation2 + $0xb98] sm:$0xff] }
 0x19e   :  { %3763 = vmatprep.subr.bf16.mxu0 %v9610_v62  ;;  %v9654_v57 = vcombine.high %v2323_v50, %v2325_v51  ;;  %v9589_v62 = vcombine.low %v2259_v48, %v2261_v49  ;;  %v9653_v1 = vcombine.low %v2323_v50, %v2325_v51  ;;  %v2180_v49 = vld [vmem:[#allocation2 + $0xa18] sm:$0xff] }
 0x19f   :  { %3805 = vmatpush2.bf16.msra.mxu1 %v9677_v61  ;;  %v2194_v61 = vld [vmem:[#allocation2 + $0xbd8] sm:$0xff] }
 0x1a0   :  { %3806 = vmatprep.subr.bf16.mxu1 %v9674_v0  ;;  %v10925_v0 = vsub.s32 2, %v10887_v4  ;;  %v9524_v3 = vcombine.high %v2192_v54, %v2194_v61  ;;  %v9523_v17 = vcombine.low %v2192_v54, %v2194_v61  ;;  %v2182_v50 = vld [vmem:[#allocation2 + $0xa58] sm:$0xff] }
 0x1a1   :  { %3764 = vmatpush2.bf16.msra.mxu0 %v9609_v6  ;;  %v2124_v6 = vld [vmem:[#allocation2 + $0x318] sm:$0xff] }
 0x1a2   :  { %3765 = vmatprep.subr.bf16.mxu0 %v9606_v8  ;;  %v2188_v8 = vld [vmem:[#allocation2 + $0xb18] sm:$0xff]  ;;  %v350_v11 = vrot.slane %v10892_v15, %v10925_v0 }
 0x1a3   :  { %3807 = vmatpush2.bf16.msra.mxu1 %v9673_v7  ;;  %v2126_v7 = vld [vmem:[#allocation2 + $0x358] sm:$0xff] }
 0x1a4   :  { %3808 = vmatprep.subr.bf16.mxu1 %v9670_v10  ;;  %v2190_v10 = vld [vmem:[#allocation2 + $0xb58] sm:$0xff] }
 0x1a5   :  { %3766 = vmatpush2.bf16.msra.mxu0 %v9605_v18  ;;  %v9456_v18 = vcombine.high %v2124_v6, %v2126_v7  ;;  %v9519_v36 = vcombine.low %v2188_v8, %v2190_v10 }
 0x1a6   :  { %3767 = vmatprep.subr.bf16.mxu0 %v9602_v20  ;;  %v354_v20 = vrot.slane %v10892_v15, %v10928_v5 }
 0x1a7   :  { %3809 = vmatpush2.bf16.msra.mxu1 %v9669_v19  ;;  %v10934_v19 = vpop.f32.mrf.mxu1 }
 0x1a8   :  { %3810 = vmatprep.subr.bf16.mxu1 %v9666_v22  ;;  %v9520_v22 = vcombine.high %v2188_v8, %v2190_v10 }
 0x1a9   :  { %3768 = vmatpush2.bf16.msra.mxu0 %v9601_v59  ;;  %v2186_v59 = vld [vmem:[#allocation2 + $0xad8] sm:$0xff] }
 0x1aa   :  { %3769 = vmatprep.subr.bf16.mxu0 %v9598_v34  ;;  %v9515_v23 = vcombine.low %v2184_v30, %v2186_v59 }
 0x1ab   :  { %3811 = vmatpush2.bf16.msra.mxu1 %v9665_v32 }
 0x1ac   :  { %3812 = vmatprep.subr.bf16.mxu1 %v9662_v35  ;;  %v9455_v35 = vcombine.low %v2124_v6, %v2126_v7  ;;  %v2176_v6 = vld [vmem:[#allocation2 + $0x998] sm:$0xff] }
 0x1ad   :  { %3770 = vmatpush2.bf16.msra.mxu0 %v9597_v40  ;;  %v2178_v7 = vld [vmem:[#allocation2 + $0x9d8] sm:$0xff] }
 0x1ae   :  { %3771 = vmatprep.subr.bf16.mxu0 %v9594_v44  ;;  %v2116_v44 = vld [vmem:[#allocation2 + $0x218] sm:$0xff] }
 0x1af   :  { %3813 = vmatpush2.bf16.msra.mxu1 %v9661_v41  ;;  %v9516_v41 = vcombine.high %v2184_v30, %v2186_v59 }
 0x1b0   :  { %3814 = vmatprep.subr.bf16.mxu1 %v9658_v45  ;;  %v2118_v45 = vld [vmem:[#allocation2 + $0x258] sm:$0xff] }
 0x1b1   :  { %3772 = vmatpush2.bf16.msra.mxu0 %v9593_v52  ;;  %v9448_v24 = vcombine.high %v2116_v44, %v2118_v45  ;;  %v9447_v10 = vcombine.low %v2116_v44, %v2118_v45  ;;  %v2102_v44 = vld [vmem:[#allocation2 + $0x58] sm:$0xff] }
 0x1b2   :  { %3773 = vmatprep.subr.bf16.mxu0 %v9590_v56  ;;  %v9451_v56 = vcombine.low %v2120_v26, %v2122_v27  ;;  %v2174_v26 = vld [vmem:[#allocation2 + $0x958] sm:$0xff] }
 0x1b3   :  { %3815 = vmatpush2.bf16.msra.mxu1 %v9657_v53  ;;  %v2164_v45 = vld [vmem:[#allocation2 + $0x818] sm:$0xff] }
 0x1b4   :  { %3816 = vmatprep.subr.bf16.mxu1 %v9654_v57 }
 0x1b5   :  { %3774 = vmatpush2.bf16.msra.mxu0 %v9589_v62  ;;  %v9512_v62 = vcombine.high %v2180_v49, %v2182_v50 }
 0x1b6   :  { %3829 = vmatprep.subr.bf16.mxu0 %v9460_v2  ;;  %v2114_v2 = vld [vmem:[#allocation2 + $0x1d8] sm:$0xff] }
 0x1b7   :  { %3817 = vmatpush2.bf16.msra.mxu1 %v9653_v1  ;;  %v2112_v1 = vld [vmem:[#allocation2 + $0x198] sm:$0xff] }
 0x1b8   :  { %3872 = vmatprep.subr.bf16.mxu1 %v9524_v3  ;;  %v1885_v29 = vpop.f32.mrf.mxu0  ;;  %3776 = vmatmul.mubr.bf16.vlgmr.msra.gmra.mxu0 %v10873_v46  ;;  %v9443_v27 = vcombine.low %v2112_v1, %v2114_v2 }
 0x1b9   :  { %v1886_v32 = vadd.f32 %v1885_v29, %v350_v11  ;;  %3830 = vmatpush1.bf16.msra.mxu0 %v9459_v14  ;;  %3861 = vmatprep.mubr.bf16.mxu0 %v10813_v58  ;;  %v9444_v14 = vcombine.high %v2112_v1, %v2114_v2  ;;  %v9507_v29 = vcombine.low %v2176_v6, %v2178_v7 }
 0x1ba   :  { %v1928_v34 = vpop.f32.mrf.mxu1  ;;  %3819 = vmatmul.mubr.bf16.vlgmr.msra.gmra.mxu1 %v10877_v47  ;;  %v1887_v42 = vpop.f32.mrf.mxu0  ;;  %3831 = vmatprep.subr.bf16.mxu0 %v9456_v18  ;;  %v2108_v18 = vld [vmem:[#allocation2 + $0x118] sm:$0xff] }
 0x1bb   :  { %3873 = vmatpush1.bf16.msra.mxu1 %v9523_v17  ;;  %v10940_v15 = vadd.f32 %v1928_v34, %v1886_v32  ;;  %v1888_v38 = vadd.f32 %v1887_v42, %v354_v20  ;;  %3904 = vmatprep.mubr.bf16.mxu1 %v10827_v63  ;;  %v9508_v17 = vcombine.high %v2176_v6, %v2178_v7  ;;  %v2104_v32 = vld [vmem:[#allocation2 + $0x98] sm:$0xff] }
 0x1bc   :  { %v1930_v40 = vpop.f32.mrf.mxu1  ;;  %3874 = vmatprep.subr.bf16.mxu1 %v9520_v22  ;;  %v1889_v48 = vpop.f32.mrf.mxu0  ;;  %v2110_v22 = vld [vmem:[#allocation2 + $0x158] sm:$0xff] }
 0x1bd   :  { %v10944_v51 = vadd.f32 %v1930_v40, %v1888_v38  ;;  %v1890_v52 = vadd.f32 %v1889_v48, %v350_v11  ;;  %3832 = vmatpush1.bf16.msra.mxu0 %v9455_v35  ;;  %v9511_v11 = vcombine.low %v2180_v49, %v2182_v50  ;;  %v9440_v30 = vcombine.high %v2108_v18, %v2110_v22  ;;  %v2106_v34 = vld [vmem:[#allocation2 + $0xd8] sm:$0xff] }
 0x1be   :  { %v1932_v53 = vpop.f32.mrf.mxu1  ;;  %v1891_v57 = vpop.f32.mrf.mxu0  ;;  %3833 = vmatprep.subr.bf16.mxu0 %v9452_v37  ;;  %v2168_v35 = vld [vmem:[#allocation2 + $0x898] sm:$0xff]  ;;  %v9436_v38 = vcombine.high %v2104_v32, %v2106_v34  ;;  %v9435_v49 = vcombine.low %v2104_v32, %v2106_v34 }
 0x1bf   :  { %3875 = vmatpush1.bf16.msra.mxu1 %v9519_v36  ;;  %v10946_v54 = vadd.f32 %v1932_v53, %v1890_v52  ;;  %v1892_v61 = vadd.f32 %v1891_v57, %v354_v20  ;;  %v2172_v20 = vld [vmem:[#allocation2 + $0x918] sm:$0xff]  ;;  %v9439_v36 = vcombine.low %v2108_v18, %v2110_v22 }
 0x1c0   :  { %3876 = vmatprep.subr.bf16.mxu1 %v9516_v41  ;;  %v1934_v3 = vpop.f32.mrf.mxu1  ;;  %v9504_v59 = vcombine.high %v2172_v20, %v2174_v26  ;;  %v2170_v42 = vld [vmem:[#allocation2 + $0x8d8] sm:$0xff]  ;;  %v9503_v37 = vcombine.low %v2172_v20, %v2174_v26 }
 0x1c1   :  { %v10948_v8 = vadd.f32 %v1934_v3, %v1892_v61  ;;  %3834 = vmatpush1.bf16.msra.mxu0 %v9451_v56  ;;  %v9500_v40 = vcombine.high %v2168_v35, %v2170_v42  ;;  %v2100_v41 = vld [vmem:[#allocation2 + $0x18] sm:$0xff]  ;;  %v9499_v50 = vcombine.low %v2168_v35, %v2170_v42 }
 0x1c2   :  { %3835 = vmatprep.subr.bf16.mxu0 %v9448_v24  ;;  %v2166_v48 = vld [vmem:[#allocation2 + $0x858] sm:$0xff]  ;;  %v9432_v52 = vcombine.high %v2100_v41, %v2102_v44  ;;  %v9431_v61 = vcombine.low %v2100_v41, %v2102_v44 }
 0x1c3   :  { %3877 = vmatpush1.bf16.msra.mxu1 %v9515_v23  ;;  %v9496_v53 = vcombine.high %v2164_v45, %v2166_v48  ;;  %v2160_v56 = vld [vmem:[#allocation2 + $0x798] sm:$0xff] }
 0x1c4   :  { %3878 = vmatprep.subr.bf16.mxu1 %v9512_v62  ;;  %v2162_v57 = vld [vmem:[#allocation2 + $0x7d8] sm:$0xff]  ;;  %v9495_v62 = vcombine.low %v2164_v45, %v2166_v48 }
 0x1c5   :  { %3836 = vmatpush1.bf16.msra.mxu0 %v9447_v10  ;;  %v2224_v23 = vld [vmem:[#allocation2 + $0xf98] sm:$0xff]  ;;  %v9492_v1 = vcombine.high %v2160_v56, %v2162_v57 }
 0x1c6   :  { %3837 = vmatprep.subr.bf16.mxu0 %v9444_v14  ;;  %v2226_v24 = vld [vmem:[#allocation2 + $0xfd8] sm:$0xff] }
 0x1c7   :  { %3879 = vmatpush1.bf16.msra.mxu1 %v9511_v11  ;;  %v9556_v2 = vcombine.high %v2224_v23, %v2226_v24  ;;  %v2156_v3 = vld [vmem:[#allocation2 + $0x718] sm:$0xff]  ;;  %v9491_v11 = vcombine.low %v2160_v56, %v2162_v57  ;;  %v9555_v14 = vcombine.low %v2224_v23, %v2226_v24 }
 0x1c8   :  { %3880 = vmatprep.subr.bf16.mxu1 %v9508_v17  ;;  %v2158_v6 = vld [vmem:[#allocation2 + $0x758] sm:$0xff] }
 0x1c9   :  { %3838 = vmatpush1.bf16.msra.mxu0 %v9443_v27  ;;  %v2220_v7 = vld [vmem:[#allocation2 + $0xf18] sm:$0xff]  ;;  %v9488_v17 = vcombine.high %v2156_v3, %v2158_v6 }
 0x1ca   :  { %3839 = vmatprep.subr.bf16.mxu0 %v9440_v30  ;;  %v2222_v10 = vld [vmem:[#allocation2 + $0xf58] sm:$0xff] }
 0x1cb   :  { %3881 = vmatpush1.bf16.msra.mxu1 %v9507_v29  ;;  %v9552_v18 = vcombine.high %v2220_v7, %v2222_v10  ;;  %v2152_v22 = vld [vmem:[#allocation2 + $0x698] sm:$0xff]  ;;  %v9487_v29 = vcombine.low %v2156_v3, %v2158_v6  ;;  %v9551_v30 = vcombine.low %v2220_v7, %v2222_v10 }
 0x1cc   :  { %3882 = vmatprep.subr.bf16.mxu1 %v9504_v59  ;;  %v2154_v20 = vld [vmem:[#allocation2 + $0x6d8] sm:$0xff] }
 0x1cd   :  { %3840 = vmatpush1.bf16.msra.mxu0 %v9439_v36  ;;  %v2216_v26 = vld [vmem:[#allocation2 + $0xe98] sm:$0xff]  ;;  %v9484_v59 = vcombine.high %v2152_v22, %v2154_v20 }
 0x1ce   :  { %3841 = vmatprep.subr.bf16.mxu0 %v9436_v38  ;;  %v2218_v27 = vld [vmem:[#allocation2 + $0xed8] sm:$0xff] }
 0x1cf   :  { %3883 = vmatpush1.bf16.msra.mxu1 %v9503_v37  ;;  %v9548_v32 = vcombine.high %v2216_v26, %v2218_v27  ;;  %v2148_v34 = vld [vmem:[#allocation2 + $0x618] sm:$0xff]  ;;  %v9483_v37 = vcombine.low %v2152_v22, %v2154_v20  ;;  %v9547_v38 = vcombine.low %v2216_v26, %v2218_v27 }
 0x1d0   :  { %3884 = vmatprep.subr.bf16.mxu1 %v9500_v40  ;;  %v2150_v35 = vld [vmem:[#allocation2 + $0x658] sm:$0xff] }
 0x1d1   :  { %3842 = vmatpush1.bf16.msra.mxu0 %v9435_v49  ;;  %v2212_v42 = vld [vmem:[#allocation2 + $0xe18] sm:$0xff]  ;;  %v9480_v40 = vcombine.high %v2148_v34, %v2150_v35 }
 0x1d2   :  { %3843 = vmatprep.subr.bf16.mxu0 %v9432_v52  ;;  %v2214_v36 = vld [vmem:[#allocation2 + $0xe58] sm:$0xff] }
 0x1d3   :  { %3885 = vmatpush1.bf16.msra.mxu1 %v9499_v50  ;;  %v9544_v41 = vcombine.high %v2212_v42, %v2214_v36  ;;  %v2144_v44 = vld [vmem:[#allocation2 + $0x598] sm:$0xff]  ;;  %v9479_v50 = vcombine.low %v2148_v34, %v2150_v35  ;;  %v9543_v52 = vcombine.low %v2212_v42, %v2214_v36 }
 0x1d4   :  { %3886 = vmatprep.subr.bf16.mxu1 %v9496_v53  ;;  %v2146_v45 = vld [vmem:[#allocation2 + $0x5d8] sm:$0xff] }
 0x1d5   :  { %3844 = vmatpush1.bf16.msra.mxu0 %v9431_v61  ;;  %v2208_v48 = vld [vmem:[#allocation2 + $0xd98] sm:$0xff]  ;;  %v9476_v53 = vcombine.high %v2144_v44, %v2146_v45 }
 0x1d6   :  { %3845 = vmatprep.subr.bf16.mxu0 %v9492_v1  ;;  %v2210_v49 = vld [vmem:[#allocation2 + $0xdd8] sm:$0xff] }
 0x1d7   :  { %3887 = vmatpush1.bf16.msra.mxu1 %v9495_v62  ;;  %v9540_v56 = vcombine.high %v2208_v48, %v2210_v49  ;;  %v2140_v57 = vld [vmem:[#allocation2 + $0x518] sm:$0xff]  ;;  %v9475_v62 = vcombine.low %v2144_v44, %v2146_v45  ;;  %v9539_v1 = vcombine.low %v2208_v48, %v2210_v49 }
 0x1d8   :  { %3888 = vmatprep.subr.bf16.mxu1 %v9556_v2  ;;  %v2142_v23 = vld [vmem:[#allocation2 + $0x558] sm:$0xff] }
 0x1d9   :  { %3846 = vmatpush2.bf16.msra.mxu0 %v9491_v11  ;;  %v2204_v24 = vld [vmem:[#allocation2 + $0xd18] sm:$0xff]  ;;  %v9472_v2 = vcombine.high %v2140_v57, %v2142_v23 }
 0x1da   :  { %3847 = vmatprep.subr.bf16.mxu0 %v9488_v17  ;;  %v2206_v61 = vld [vmem:[#allocation2 + $0xd58] sm:$0xff] }
 0x1db   :  { %3889 = vmatpush2.bf16.msra.mxu1 %v9555_v14  ;;  %v9536_v3 = vcombine.high %v2204_v24, %v2206_v61  ;;  %v2136_v6 = vld [vmem:[#allocation2 + $0x498] sm:$0xff]  ;;  %v9471_v14 = vcombine.low %v2140_v57, %v2142_v23  ;;  %v9535_v17 = vcombine.low %v2204_v24, %v2206_v61 }
 0x1dc   :  { %3890 = vmatprep.subr.bf16.mxu1 %v9552_v18  ;;  %v2138_v7 = vld [vmem:[#allocation2 + $0x4d8] sm:$0xff] }
 0x1dd   :  { %3848 = vmatpush2.bf16.msra.mxu0 %v9487_v29  ;;  %v2200_v10 = vld [vmem:[#allocation2 + $0xc98] sm:$0xff]  ;;  %v9468_v18 = vcombine.high %v2136_v6, %v2138_v7 }
 0x1de   :  { %3849 = vmatprep.subr.bf16.mxu0 %v9484_v59  ;;  %v2202_v11 = vld [vmem:[#allocation2 + $0xcd8] sm:$0xff] }
 0x1df   :  { %3891 = vmatpush2.bf16.msra.mxu1 %v9551_v30  ;;  %v9532_v22 = vcombine.high %v2200_v10, %v2202_v11  ;;  %v2132_v20 = vld [vmem:[#allocation2 + $0x418] sm:$0xff]  ;;  %v9467_v30 = vcombine.low %v2136_v6, %v2138_v7  ;;  %v9531_v59 = vcombine.low %v2200_v10, %v2202_v11 }
 0x1e0   :  { %3892 = vmatprep.subr.bf16.mxu1 %v9548_v32  ;;  %v2134_v26 = vld [vmem:[#allocation2 + $0x458] sm:$0xff] }
 0x1e1   :  { %3850 = vmatpush2.bf16.msra.mxu0 %v9483_v37  ;;  %v2196_v27 = vld [vmem:[#allocation2 + $0xc18] sm:$0xff]  ;;  %v9464_v32 = vcombine.high %v2132_v20, %v2134_v26 }
 0x1e2   :  { %3851 = vmatprep.subr.bf16.mxu0 %v9480_v40  ;;  %v2198_v29 = vld [vmem:[#allocation2 + $0xc58] sm:$0xff] }
 0x1e3   :  { %3893 = vmatpush2.bf16.msra.mxu1 %v9547_v38  ;;  %v9528_v34 = vcombine.high %v2196_v27, %v2198_v29  ;;  %v2256_v35 = vld [vmem:[#allocation2 + $0x1398] sm:$0xff]  ;;  %v9463_v38 = vcombine.low %v2132_v20, %v2134_v26  ;;  %v9527_v40 = vcombine.low %v2196_v27, %v2198_v29 }
 0x1e4   :  { %3894 = vmatprep.subr.bf16.mxu1 %v9544_v41  ;;  %v2258_v42 = vld [vmem:[#allocation2 + $0x13d8] sm:$0xff] }
 0x1e5   :  { %3852 = vmatpush2.bf16.msra.mxu0 %v9479_v50  ;;  %v2320_v36 = vld [vmem:[#allocation2 + $0x1b98] sm:$0xff]  ;;  %v9588_v41 = vcombine.high %v2256_v35, %v2258_v42 }
 0x1e6   :  { %3853 = vmatprep.subr.bf16.mxu0 %v9476_v53  ;;  %v2322_v37 = vld [vmem:[#allocation2 + $0x1bd8] sm:$0xff] }
 0x1e7   :  { %3895 = vmatpush2.bf16.msra.mxu1 %v9543_v52  ;;  %v9652_v44 = vcombine.high %v2320_v36, %v2322_v37  ;;  %v2252_v45 = vld [vmem:[#allocation2 + $0x1318] sm:$0xff]  ;;  %v9587_v52 = vcombine.low %v2256_v35, %v2258_v42  ;;  %v9651_v53 = vcombine.low %v2320_v36, %v2322_v37 }
 0x1e8   :  { %3896 = vmatprep.subr.bf16.mxu1 %v9540_v56  ;;  %v2254_v48 = vld [vmem:[#allocation2 + $0x1358] sm:$0xff] }
 0x1e9   :  { %3854 = vmatpush2.bf16.msra.mxu0 %v9475_v62  ;;  %v2316_v49 = vld [vmem:[#allocation2 + $0x1b18] sm:$0xff]  ;;  %v9584_v56 = vcombine.high %v2252_v45, %v2254_v48  ;;  %v9583_v6 = vcombine.low %v2252_v45, %v2254_v48 }
 0x1ea   :  { %3855 = vmatprep.subr.bf16.mxu0 %v9472_v2  ;;  %v2318_v50 = vld [vmem:[#allocation2 + $0x1b58] sm:$0xff] }
 0x1eb   :  { %3897 = vmatpush2.bf16.msra.mxu1 %v9539_v1  ;;  %v9648_v57 = vcombine.high %v2316_v49, %v2318_v50  ;;  %v2248_v23 = vld [vmem:[#allocation2 + $0x1298] sm:$0xff]  ;;  %v9647_v10 = vcombine.low %v2316_v49, %v2318_v50 }
 0x1ec   :  { %3898 = vmatprep.subr.bf16.mxu1 %v9536_v3  ;;  %v2250_v24 = vld [vmem:[#allocation2 + $0x12d8] sm:$0xff] }
 0x1ed   :  { %3856 = vmatpush2.bf16.msra.mxu0 %v9471_v14  ;;  %v2312_v62 = vld [vmem:[#allocation2 + $0x1a98] sm:$0xff]  ;;  %v9580_v11 = vcombine.high %v2248_v23, %v2250_v24 }
 0x1ee   :  { %3857 = vmatprep.subr.bf16.mxu0 %v9468_v18  ;;  %v2314_v1 = vld [vmem:[#allocation2 + $0x1ad8] sm:$0xff] }
 0x1ef   :  { %3899 = vmatpush2.bf16.msra.mxu1 %v9535_v17  ;;  %v2244_v20 = vld [vmem:[#allocation2 + $0x1218] sm:$0xff]  ;;  %v9643_v35 = vcombine.low %v2312_v62, %v2314_v1 }
 0x1f0   :  { %3900 = vmatprep.subr.bf16.mxu1 %v9532_v22  ;;  %v9644_v22 = vcombine.high %v2312_v62, %v2314_v1  ;;  %v2246_v26 = vld [vmem:[#allocation2 + $0x1258] sm:$0xff] }
 0x1f1   :  { %3858 = vmatpush2.bf16.msra.mxu0 %v9467_v30  ;;  %v2308_v27 = vld [vmem:[#allocation2 + $0x1a18] sm:$0xff]  ;;  %v9576_v42 = vcombine.high %v2244_v20, %v2246_v26 }
 0x1f2   :  { %3859 = vmatprep.subr.bf16.mxu0 %v9464_v32  ;;  %v2310_v29 = vld [vmem:[#allocation2 + $0x1a58] sm:$0xff] }
 0x1f3   :  { %3901 = vmatpush2.bf16.msra.mxu1 %v9531_v59  ;;  %v2304_v45 = vld [vmem:[#allocation2 + $0x1998] sm:$0xff] }
 0x1f4   :  { %3902 = vmatprep.subr.bf16.mxu1 %v9528_v34  ;;  %v9579_v34 = vcombine.low %v2248_v23, %v2250_v24  ;;  %v2306_v48 = vld [vmem:[#allocation2 + $0x19d8] sm:$0xff] }
 0x1f5   :  { %3860 = vmatpush2.bf16.msra.mxu0 %v9463_v38  ;;  %v9640_v38 = vcombine.high %v2308_v27, %v2310_v29  ;;  %v9636_v24 = vcombine.high %v2304_v45, %v2306_v48  ;;  %v2238_v62 = vld [vmem:[#allocation2 + $0x1158] sm:$0xff] }
 0x1f6   :  { %3915 = vmatprep.subr.bf16.mxu0 %v9588_v41  ;;  %v2242_v41 = vld [vmem:[#allocation2 + $0x11d8] sm:$0xff] }
 0x1f7   :  { %3903 = vmatpush2.bf16.msra.mxu1 %v9527_v40  ;;  %v2240_v40 = vld [vmem:[#allocation2 + $0x1198] sm:$0xff] }
 0x1f8   :  { %3958 = vmatprep.subr.bf16.mxu1 %v9652_v44  ;;  %v1971_v61 = vpop.f32.mrf.mxu0  ;;  %3862 = vmatmul.mubr.bf16.vlgmr.msra.gmra.mxu0 %v10833_v21  ;;  %v2300_v1 = vld [vmem:[#allocation2 + $0x1918] sm:$0xff] }
 0x1f9   :  { %v1972_v2 = vadd.f32 %v1971_v61, %v10940_v15  ;;  %3916 = vmatpush1.bf16.msra.mxu0 %v9587_v52  ;;  %3947 = vmatprep.mubr.bf16.mxu0 %v10861_v60  ;;  %v9575_v52 = vcombine.low %v2244_v20, %v2246_v26  ;;  %v2236_v61 = vld [vmem:[#allocation2 + $0x1118] sm:$0xff] }
 0x1fa   :  { %v2014_v3 = vpop.f32.mrf.mxu1  ;;  %3905 = vmatmul.mubr.bf16.vlgmr.msra.gmra.mxu1 %v10847_v25  ;;  %v1973_v7 = vpop.f32.mrf.mxu0  ;;  %3917 = vmatprep.subr.bf16.mxu0 %v9584_v56  ;;  %v9572_v56 = vcombine.high %v2240_v40, %v2242_v41  ;;  %v9567_v20 = vcombine.low %v2236_v61, %v2238_v62 }
 0x1fb   :  { %3959 = vmatpush1.bf16.msra.mxu1 %v9651_v53  ;;  %v2015_v14 = vadd.f32 %v2014_v3, %v1972_v2  ;;  %v1974_v17 = vadd.f32 %v1973_v7, %v10944_v51  ;;  %3990 = vmatprep.mubr.bf16.mxu1 %v10866_v33  ;;  %v9639_v53 = vcombine.low %v2308_v27, %v2310_v29  ;;  %v2302_v2 = vld [vmem:[#allocation2 + $0x1958] sm:$0xff] }
 0x1fc   :  { %v2016_v18 = vpop.f32.mrf.mxu1  ;;  %3960 = vmatprep.subr.bf16.mxu1 %v9648_v57  ;;  %v1975_v15 = vpop.f32.mrf.mxu0  ;;  %v9635_v7 = vcombine.low %v2304_v45, %v2306_v48  ;;  %v9631_v26 = vcombine.low %v2300_v1, %v2302_v2  ;;  %v2228_v29 = vld [vmem:[#allocation2 + $0x1018] sm:$0xff] }
 0x1fd   :  { %v2017_v30 = vadd.f32 %v2016_v18, %v1974_v17  ;;  %v1976_v59 = vadd.f32 %v1975_v15, %v10946_v54  ;;  %3918 = vmatpush1.bf16.msra.mxu0 %v9583_v6  ;;  %v2025_v49 = vmax.f32 %v2015_v14, 0.0  ;;  %v9571_v6 = vcombine.low %v2240_v40, %v2242_v41  ;;  %v2232_v14 = vld [vmem:[#allocation2 + $0x1098] sm:$0xff] }
 0x1fe   :  { %v2018_v32 = vpop.f32.mrf.mxu1  ;;  %v1977_v51 = vpop.f32.mrf.mxu0  ;;  %3919 = vmatprep.subr.bf16.mxu0 %v9580_v11  ;;  %v9632_v11 = vcombine.high %v2300_v1, %v2302_v2  ;;  %v2234_v17 = vld [vmem:[#allocation2 + $0x10d8] sm:$0xff] }
 0x1ff   :  { %3961 = vmatpush1.bf16.msra.mxu1 %v9647_v10  ;;  %v2019_v36 = vadd.f32 %v2018_v32, %v1976_v59  ;;  %v1978_v37 = vadd.f32 %v1977_v51, %v10948_v8  ;;  %v2026_v57 = vmax.f32 %v2017_v30, 0.0  ;;  %v9568_v10 = vcombine.high %v2236_v61, %v2238_v62  ;;  %v2296_v18 = vld [vmem:[#allocation2 + $0x1898] sm:$0xff] }
 0x200   :  { %3962 = vmatprep.subr.bf16.mxu1 %v9644_v22  ;;  %v2020_v44 = vpop.f32.mrf.mxu1  ;;  %v2298_v22 = vld [vmem:[#allocation2 + $0x18d8] sm:$0xff]  ;;  %v9564_v15 = vcombine.high %v2232_v14, %v2234_v17 }
 0x201   :  { %v2029_v54 = vmax.f32 %v2019_v36, 0.0  ;;  %v2021_v50 = vadd.f32 %v2020_v44, %v1978_v37  ;;  %3920 = vmatpush1.bf16.msra.mxu0 %v9579_v34  ;;  %v9628_v27 = vcombine.high %v2296_v18, %v2298_v22  ;;  %v2230_v30 = vld [vmem:[#allocation2 + $0x1058] sm:$0xff]  ;;  %v9563_v34 = vcombine.low %v2232_v14, %v2234_v17 }
 0x202   :  { %3921 = vmatprep.subr.bf16.mxu0 %v9576_v42  ;;  %v2292_v59 = vld [vmem:[#allocation2 + $0x1818] sm:$0xff]  ;;  %v9627_v51 = vcombine.low %v2296_v18, %v2298_v22  ;;  %v9559_v41 = vcombine.low %v2228_v29, %v2230_v30 }
 0x203   :  { %3963 = vmatpush1.bf16.msra.mxu1 %v9643_v35  ;;  %v10958_v23 = vpack.c.bf16 %v2029_v54, %v2025_v49  ;;  %v2030_v8 = vmax.f32 %v2021_v50, 0.0  ;;  %v2294_v32 = vld [vmem:[#allocation2 + $0x1858] sm:$0xff]  ;;  %v9560_v35 = vcombine.high %v2228_v29, %v2230_v30 }
 0x204   :  { %3964 = vmatprep.subr.bf16.mxu1 %v9640_v38  ;;  %v9624_v42 = vcombine.high %v2292_v59, %v2294_v32  ;;  %v2288_v36 = vld [vmem:[#allocation2 + $0x1798] sm:$0xff]  ;;  %v9623_v44 = vcombine.low %v2292_v59, %v2294_v32 }
 0x205   :  { %v10960_v3 = vpack.c.bf16 %v2030_v8, %v2026_v57  ;;  %3922 = vmatpush1.bf16.msra.mxu0 %v9575_v52  ;;  %v2290_v37 = vld [vmem:[#allocation2 + $0x17d8] sm:$0xff] }
 0x206   :  { %3923 = vmatprep.subr.bf16.mxu0 %v9572_v56  ;;  %v2352_v38 = vld [vmem:[#allocation2 + $0x1f98] sm:$0xff]  ;;  %v9620_v45 = vcombine.high %v2288_v36, %v2290_v37 }
 0x207   :  { %3965 = vmatpush1.bf16.msra.mxu1 %v9639_v53  ;;  %v2354_v40 = vld [vmem:[#allocation2 + $0x1fd8] sm:$0xff]  ;;  %v9619_v53 = vcombine.low %v2288_v36, %v2290_v37 }
 0x208   :  { %3966 = vmatprep.subr.bf16.mxu1 %v9636_v24  ;;  %v9684_v48 = vcombine.high %v2352_v38, %v2354_v40  ;;  %v2284_v49 = vld [vmem:[#allocation2 + $0x1718] sm:$0xff]  ;;  %v9683_v56 = vcombine.low %v2352_v38, %v2354_v40 }
 0x209   :  { %3924 = vmatpush1.bf16.msra.mxu0 %v9571_v6  ;;  %v2286_v54 = vld [vmem:[#allocation2 + $0x1758] sm:$0xff] }
 0x20a   :  { %3925 = vmatprep.subr.bf16.mxu0 %v9568_v10  ;;  %v2348_v50 = vld [vmem:[#allocation2 + $0x1f18] sm:$0xff]  ;;  %v9616_v57 = vcombine.high %v2284_v49, %v2286_v54  ;;  %v9615_v2 = vcombine.low %v2284_v49, %v2286_v54 }
 0x20b   :  { %3967 = vmatpush1.bf16.msra.mxu1 %v9635_v7  ;;  %v2350_v52 = vld [vmem:[#allocation2 + $0x1f58] sm:$0xff] }
 0x20c   :  { %3968 = vmatprep.subr.bf16.mxu1 %v9632_v11  ;;  %v9680_v8 = vcombine.high %v2348_v50, %v2350_v52  ;;  %v2280_v24 = vld [vmem:[#allocation2 + $0x1698] sm:$0xff]  ;;  %v9679_v6 = vcombine.low %v2348_v50, %v2350_v52 }
 0x20d   :  { %3926 = vmatpush1.bf16.msra.mxu0 %v9567_v20  ;;  %v2282_v61 = vld [vmem:[#allocation2 + $0x16d8] sm:$0xff] }
 0x20e   :  { %3927 = vmatprep.subr.bf16.mxu0 %v9564_v15  ;;  %v2344_v62 = vld [vmem:[#allocation2 + $0x1e98] sm:$0xff]  ;;  %v9612_v7 = vcombine.high %v2280_v24, %v2282_v61  ;;  %v9611_v22 = vcombine.low %v2280_v24, %v2282_v61 }
 0x20f   :  { %3969 = vmatpush1.bf16.msra.mxu1 %v9631_v26  ;;  %v2346_v1 = vld [vmem:[#allocation2 + $0x1ed8] sm:$0xff] }
 0x210   :  { %3970 = vmatprep.subr.bf16.mxu1 %v9628_v27  ;;  %v9676_v10 = vcombine.high %v2344_v62, %v2346_v1  ;;  %v2276_v11 = vld [vmem:[#allocation2 + $0x1618] sm:$0xff]  ;;  %v9675_v20 = vcombine.low %v2344_v62, %v2346_v1 }
 0x211   :  { %3928 = vmatpush1.bf16.msra.mxu0 %v9563_v34  ;;  %v2278_v14 = vld [vmem:[#allocation2 + $0x1658] sm:$0xff] }
 0x212   :  { %3929 = vmatprep.subr.bf16.mxu0 %v9560_v35  ;;  %v2340_v17 = vld [vmem:[#allocation2 + $0x1e18] sm:$0xff]  ;;  %v9608_v26 = vcombine.high %v2276_v11, %v2278_v14  ;;  %v9607_v32 = vcombine.low %v2276_v11, %v2278_v14  ;;  %v10512_v14 = vld [vmem:[#allocation7 + $0x178] sm:$0xff]  }
 0x213   :  { %3971 = vmatpush1.bf16.msra.mxu1 %v9627_v51  ;;  %v2342_v18 = vld [vmem:[#allocation2 + $0x1e58] sm:$0xff] }
 0x214   :  { %3972 = vmatprep.subr.bf16.mxu1 %v9624_v42  ;;  %v9672_v15 = vcombine.high %v2340_v17, %v2342_v18  ;;  %v2272_v27 = vld [vmem:[#allocation2 + $0x1598] sm:$0xff]  ;;  %v9671_v34 = vcombine.low %v2340_v17, %v2342_v18  ;;  %v10513_v17 = vld [vmem:[#allocation7 + $0x138] sm:$0xff]   ;;  %v10514_v18 = vld [vmem:[#allocation7 + $0x170] sm:$0xff]  }
 0x215   :  { %3930 = vmatpush1.bf16.msra.mxu0 %v9559_v41  ;;  %v2274_v29 = vld [vmem:[#allocation2 + $0x15d8] sm:$0xff] }
 0x216   :  { %3931 = vmatprep.subr.bf16.mxu0 %v9620_v45  ;;  %v2336_v30 = vld [vmem:[#allocation2 + $0x1d98] sm:$0xff]  ;;  %v9604_v51 = vcombine.high %v2272_v27, %v2274_v29  ;;  %v9603_v40 = vcombine.low %v2272_v27, %v2274_v29  ;;  %v10519_v27 = vld [vmem:[#allocation7 + $0x120] sm:$0xff]   ;;  %v10544_v29 = vld [vmem:[#allocation7 + $0x1f8] sm:$0xff]  }
 0x217   :  { %3973 = vmatpush1.bf16.msra.mxu1 %v9623_v44  ;;  %v2338_v59 = vld [vmem:[#allocation2 + $0x1dd8] sm:$0xff] }
 0x218   :  { %3974 = vmatprep.subr.bf16.mxu1 %v9684_v48  ;;  %v9668_v35 = vcombine.high %v2336_v30, %v2338_v59  ;;  %v2268_v42 = vld [vmem:[#allocation2 + $0x1518] sm:$0xff]  ;;  %v9667_v41 = vcombine.low %v2336_v30, %v2338_v59  ;;  %v10545_v30 = vld [vmem:[#allocation7 + $0x1b8] sm:$0xff]  }
 0x219   :  { %3932 = vmatpush2.bf16.msra.mxu0 %v9619_v53  ;;  %v2270_v36 = vld [vmem:[#allocation2 + $0x1558] sm:$0xff]  ;;  %v10520_v59 = vld [vmem:[#allocation7 + $0x158] sm:$0xff]  }
 0x21a   :  { %3933 = vmatprep.subr.bf16.mxu0 %v9616_v57  ;;  %v2332_v37 = vld [vmem:[#allocation2 + $0x1d18] sm:$0xff]  ;;  %v9600_v44 = vcombine.high %v2268_v42, %v2270_v36  ;;  %v9599_v52 = vcombine.low %v2268_v42, %v2270_v36  ;;  %v10522_v42 = vld [vmem:[#allocation7 + $0x150] sm:$0xff]  }
 0x21b   :  { %3975 = vmatpush2.bf16.msra.mxu1 %v9683_v56  ;;  %v2334_v38 = vld [vmem:[#allocation2 + $0x1d58] sm:$0xff] }
 0x21c   :  { %3976 = vmatprep.subr.bf16.mxu1 %v9680_v8  ;;  %v9664_v45 = vcombine.high %v2332_v37, %v2334_v38  ;;  %v2264_v48 = vld [vmem:[#allocation2 + $0x1498] sm:$0xff]  ;;  %v9663_v53 = vcombine.low %v2332_v37, %v2334_v38  ;;  %v10523_v37 = vld [vmem:[#allocation7 + $0x110] sm:$0xff]   ;;  %v10550_v38 = vld [vmem:[#allocation7 + $0x1e0] sm:$0xff]  }
 0x21d   :  { %3934 = vmatpush2.bf16.msra.mxu0 %v9615_v2  ;;  %v2266_v49 = vld [vmem:[#allocation2 + $0x14d8] sm:$0xff] }
 0x21e   :  { %3935 = vmatprep.subr.bf16.mxu0 %v9612_v7  ;;  %v2328_v54 = vld [vmem:[#allocation2 + $0x1c98] sm:$0xff]  ;;  %v9596_v56 = vcombine.high %v2264_v48, %v2266_v49  ;;  %v9595_v1 = vcombine.low %v2264_v48, %v2266_v49  ;;  %v10526_v48 = vld [vmem:[#allocation7 + $0x140] sm:$0xff]  }
 0x21f   :  { %3977 = vmatpush2.bf16.msra.mxu1 %v9679_v6  ;;  %v2330_v50 = vld [vmem:[#allocation2 + $0x1cd8] sm:$0xff]  ;;  %v10527_v49 = vld [vmem:[#allocation7 + $0x100] sm:$0xff]  }
 0x220   :  { %3978 = vmatprep.subr.bf16.mxu1 %v9676_v10  ;;  %v9660_v57 = vcombine.high %v2328_v54, %v2330_v50  ;;  %v2260_v8 = vld [vmem:[#allocation2 + $0x1418] sm:$0xff]  ;;  %v9659_v2 = vcombine.low %v2328_v54, %v2330_v50  ;;  %v10528_v54 = vld [vmem:[#allocation7 + $0x78] sm:$0xff]  }
 0x221   :  { %3936 = vmatpush2.bf16.msra.mxu0 %v9611_v22  ;;  %v2262_v24 = vld [vmem:[#allocation2 + $0x1458] sm:$0xff]  ;;  %v10515_v22 = vld [vmem:[#allocation7 + $0x130] sm:$0xff]  }
 0x222   :  { %3937 = vmatprep.subr.bf16.mxu0 %v9608_v26  ;;  %v2324_v61 = vld [vmem:[#allocation2 + $0x1c18] sm:$0xff]  ;;  %v9592_v6 = vcombine.high %v2260_v8, %v2262_v24  ;;  %v9591_v10 = vcombine.low %v2260_v8, %v2262_v24 }
 0x223   :  { %3979 = vmatpush2.bf16.msra.mxu1 %v9675_v20  ;;  %v2326_v62 = vld [vmem:[#allocation2 + $0x1c58] sm:$0xff] }
 0x224   :  { %3980 = vmatprep.subr.bf16.mxu1 %v9672_v15  ;;  %v9656_v7 = vcombine.high %v2324_v61, %v2326_v62  ;;  %v9655_v11 = vcombine.low %v2324_v61, %v2326_v62  ;;  %v10516_v20 = vld [vmem:[#allocation7 + $0x168] sm:$0xff]   ;;  %v10518_v15 = vld [vmem:[#allocation7 + $0x160] sm:$0xff]  }
 0x225   :  { %3938 = vmatpush2.bf16.msra.mxu0 %v9607_v32  ;;  %v10517_v26 = vld [vmem:[#allocation7 + $0x128] sm:$0xff]   ;;  %v10546_v32 = vld [vmem:[#allocation7 + $0x1f0] sm:$0xff]  }
 0x226   :  { %3939 = vmatprep.subr.bf16.mxu0 %v9604_v51  ;;  %v10521_v51 = vld [vmem:[#allocation7 + $0x118] sm:$0xff]   ;;  %v10549_v36 = vld [vmem:[#allocation7 + $0x1a8] sm:$0xff]  }
 0x227   :  { %3981 = vmatpush2.bf16.msra.mxu1 %v9671_v34  ;;  %v10547_v34 = vld [vmem:[#allocation7 + $0x1b0] sm:$0xff]  }
 0x228   :  { %3982 = vmatprep.subr.bf16.mxu1 %v9668_v35  ;;  %v10548_v35 = vld [vmem:[#allocation7 + $0x1e8] sm:$0xff]  }
 0x229   :  { %3940 = vmatpush2.bf16.msra.mxu0 %v9603_v40  ;;  %v10524_v40 = vld [vmem:[#allocation7 + $0x148] sm:$0xff]  }
 0x22a   :  { %3941 = vmatprep.subr.bf16.mxu0 %v9600_v44  ;;  %v10525_v44 = vld [vmem:[#allocation7 + $0x108] sm:$0xff]  }
 0x22b   :  { %3983 = vmatpush2.bf16.msra.mxu1 %v9667_v41  ;;  %v10551_v41 = vld [vmem:[#allocation7 + $0x1a0] sm:$0xff]  }
 0x22c   :  { %3984 = vmatprep.subr.bf16.mxu1 %v9664_v45  ;;  %v10552_v45 = vld [vmem:[#allocation7 + $0x1d8] sm:$0xff]  }
 0x22d   :  { %3942 = vmatpush2.bf16.msra.mxu0 %v9599_v52 }
 0x22e   :  { %3943 = vmatprep.subr.bf16.mxu0 %v9596_v56 }
 0x22f   :  { %3985 = vmatpush2.bf16.msra.mxu1 %v9663_v53  ;;  %v10964_v53 = vld [vmem:[#allocation5 + $0x4] sm:$0xf] }
 0x230   :  { %3986 = vmatprep.subr.bf16.mxu1 %v9660_v57  ;;  %v10967_v57 = vsub.s32 1, %v10887_v4  ;;  %v2360_v61 = vrot.slane %v10964_v53, %v10890_v13 }
 0x231   :  { %3944 = vmatpush2.bf16.msra.mxu0 %v9595_v1  ;;  %v10640_v1 = vld [vmem:[#allocation5] sm:$0xf] }
 0x232   :  { %3945 = vmatprep.subr.bf16.mxu0 %v9592_v6  ;;  %v2364_v24 = vrot.slane %v10964_v53, %v10967_v57 }
 0x233   :  { %3987 = vmatpush2.bf16.msra.mxu1 %v9659_v2  ;;  %v346_v2 = vrot.slane %v10640_v1, %v10967_v57 }
 0x234   :  { %3988 = vmatprep.subr.bf16.mxu1 %v9656_v7 }
 0x235   :  { %3946 = vmatpush2.bf16.msra.mxu0 %v9591_v10  ;;  %v1720_v7 = vadd.f32 %v10908_v9, %v346_v2  ;;  %v1716_v4 = vadd.f32 %v10898_v39, %v346_v2  ;;  %v10559_v2 = vld [vmem:[#allocation7 + $0x180] sm:$0xff]  }
 0x236   :  { %10326 = vmatprep.subr.bf16.mxu0 %v10512_v14 }
 0x237   :  { %3989 = vmatpush2.bf16.msra.mxu1 %v9655_v11  ;;  %v1759_v9 = vadd.f32 %v10902_v43, %v1716_v4  ;;  %v10560_v4 = vld [vmem:[#allocation7 + $0xf8] sm:$0xff]  }
 0x238   :  { %3948 = vmatmul.mubr.bf16.vlgmr.msra.gmra.mxu0 %v10873_v46  ;;  %10348 = vmatprep.subr.bf16.mxu1 %v10544_v29  ;;  %v3691_v50 = vpop.f32.mrf.mxu0 }
 0x239   :  { %10327 = vmatpush3.bf16.msra.mxu0 %v10513_v17  ;;  %v3692_v11 = vadd.f32 %v3691_v50, %v2360_v61 }
 0x23a   :  { %3991 = vmatmul.mubr.bf16.vlgmr.msra.gmra.mxu1 %v10877_v47  ;;  %10328 = vmatprep.subr.bf16.mxu0 %v10514_v18  ;;  %v3734_v52 = vpop.f32.mrf.mxu1  ;;  %v3693_v56 = vpop.f32.mrf.mxu0 }
 0x23b   :  { %10349 = vmatpush3.bf16.msra.mxu1 %v10545_v30  ;;  %v3694_v10 = vadd.f32 %v3693_v56, %v2364_v24  ;;  %v3735_v30 = vadd.f32 %v3734_v52, %v3692_v11 }
 0x23c   :  { %10350 = vmatprep.subr.bf16.mxu1 %v10546_v32  ;;  %v3736_v8 = vpop.f32.mrf.mxu1  ;;  %v3695_v62 = vpop.f32.mrf.mxu0  ;;  %v10554_v32 = vld [vmem:[#allocation7 + $0x1d0] sm:$0xff]  }
 0x23d   :  { %10329 = vmatpush3.bf16.msra.mxu0 %v10515_v22  ;;  %v3696_v17 = vadd.f32 %v3695_v62, %v2360_v61  ;;  %v10553_v22 = vld [vmem:[#allocation7 + $0x198] sm:$0xff]  }
 0x23e   :  { %10330 = vmatprep.subr.bf16.mxu0 %v10516_v20  ;;  %v3738_v6 = vpop.f32.mrf.mxu1  ;;  %v3697_v14 = vpop.f32.mrf.mxu0 }
 0x23f   :  { %10351 = vmatpush3.bf16.msra.mxu1 %v10547_v34 }
 0x240   :  { %10352 = vmatprep.subr.bf16.mxu1 %v10548_v35  ;;  %v3740_v18 = vpop.f32.mrf.mxu1 }
 0x241   :  { %10331 = vmatpush3.bf16.msra.mxu0 %v10517_v26  ;;  %v1763_v26 = vadd.f32 %v10910_v12, %v1720_v7  ;;  %v1802_v12 = vadd.f32 %v10915_v28, %v1759_v9  ;;  %v10542_v9 = vld [vmem:[#allocation7 + $0x40] sm:$0xff]  }
 0x242   :  { %10332 = vmatprep.subr.bf16.mxu0 %v10518_v15  ;;  %v3737_v15 = vadd.f32 %v3736_v8, %v3694_v10  ;;  %v10529_v10 = vld [vmem:[#allocation7 + $0x38] sm:$0xff]  }
 0x243   :  { %10353 = vmatpush3.bf16.msra.mxu1 %v10549_v36  ;;  %v1806_v34 = vadd.f32 %v10932_v16, %v1763_v26  ;;  %v1845_v56 = vadd.f32 %v10917_v31, %v1802_v12  ;;  %v10531_v31 = vld [vmem:[#allocation7 + $0x30] sm:$0xff]   ;;  %v10535_v26 = vld [vmem:[#allocation7 + $0x20] sm:$0xff]  }
 0x244   :  { %10354 = vmatprep.subr.bf16.mxu1 %v10550_v38 }
 0x245   :  { %10333 = vmatpush3.bf16.msra.mxu0 %v10519_v27  ;;  %v3698_v27 = vadd.f32 %v3697_v14, %v2364_v24  ;;  %v10558_v24 = vld [vmem:[#allocation7 + $0x1c0] sm:$0xff]   ;;  %v10530_v14 = vld [vmem:[#allocation7 + $0x70] sm:$0xff]  }
 0x246   :  { %10334 = vmatprep.subr.bf16.mxu0 %v10520_v59 }
 0x247   :  { %10355 = vmatpush3.bf16.msra.mxu1 %v10551_v41  ;;  %v3741_v38 = vadd.f32 %v3740_v18, %v3698_v27  ;;  %v10532_v18 = vld [vmem:[#allocation7 + $0x68] sm:$0xff]   ;;  %v10537_v27 = vld [vmem:[#allocation7 + $0x18] sm:$0xff]  }
 0x248   :  { %10356 = vmatprep.subr.bf16.mxu1 %v10552_v45  ;;  %v10556_v45 = vld [vmem:[#allocation7 + $0x1c8] sm:$0xff]  }
 0x249   :  { %10335 = vmatpush3.bf16.msra.mxu0 %v10521_v51  ;;  %v3739_v51 = vadd.f32 %v3738_v6, %v3696_v17 }
 0x24a   :  { %10336 = vmatprep.subr.bf16.mxu0 %v10522_v42  ;;  %v10555_v42 = vld [vmem:[#allocation7 + $0x190] sm:$0xff]  }
 0x24b   :  { %10357 = vmatpush3.bf16.msra.mxu1 %v10553_v22  ;;  %v10533_v22 = vld [vmem:[#allocation7 + $0x28] sm:$0xff]  }
 0x24c   :  { %10358 = vmatprep.subr.bf16.mxu1 %v10554_v32  ;;  %v10541_v32 = vld [vmem:[#allocation7 + $0x8] sm:$0xff]  }
 0x24d   :  { %10337 = vmatpush3.bf16.msra.mxu0 %v10523_v37 }
 0x24e   :  { %10338 = vmatprep.subr.bf16.mxu0 %v10524_v40 }
 0x24f   :  { %10359 = vmatpush3.bf16.msra.mxu1 %v10555_v42  ;;  %v4649_v42 = vld [vmem:[#allocation2 + $0x320] sm:$0xff] }
 0x250   :  { %10360 = vmatprep.subr.bf16.mxu1 %v10556_v45  ;;  %v4641_v45 = vld [vmem:[#allocation2 + $0x220] sm:$0xff] }
 0x251   :  { %10339 = vmatpush3.bf16.msra.mxu0 %v10525_v44 }
 0x252   :  { %10340 = vmatprep.subr.bf16.mxu0 %v10526_v48  ;;  %v1849_v48 = vadd.f32 %v10934_v19, %v1806_v34  ;;  %v2024_v19 = vmax.f32 %v1845_v56, 0.0  ;;  %v4653_v34 = vld [vmem:[#allocation2 + $0x3a0] sm:$0xff] }
 0x253   :  { %v4633_v56 = vld [vmem:[#allocation2 + $0x120] sm:$0xff] }
 0x254   :  { %v2028_v61 = vmax.f32 %v1849_v48, 0.0  ;;  %v4643_v48 = vld [vmem:[#allocation2 + $0x260] sm:$0xff] }
 0x255   :  { %10341 = vmatpush3.bf16.msra.mxu0 %v10527_v49 }
 0x256   :  { %10370 = vmatprep.subr.bf16.mxu0 %v10528_v54  ;;  %v10557_v54 = vld [vmem:[#allocation7 + $0x188] sm:$0xff]   ;;  %v2032_v17 = vpack.c.bf16 %v2028_v61, %v2024_v19  ;;  %v4631_v61 = vld [vmem:[#allocation2 + $0xe0] sm:$0xff] }
 0x257   :  { %10361 = vmatpush3.bf16.msra.mxu1 %v10557_v54  ;;  %v4639_v54 = vld [vmem:[#allocation2 + $0x1e0] sm:$0xff] }
 0x258   :  { %10362 = vmatprep.subr.bf16.mxu1 %v10558_v24  ;;  %v4629_v24 = vld [vmem:[#allocation2 + $0xa0] sm:$0xff] }
 0x259   :  { %v9753_v19 = vcombine.low %v4629_v24, %v4631_v61 }
 0x25b   :  { %10363 = vmatpush3.bf16.msra.mxu1 %v10559_v2  ;;  %v4625_v2 = vld [vmem:[#allocation2 + $0x20] sm:$0xff] }
 0x25c   :  { %10392 = vmatprep.subr.bf16.mxu1 %v10560_v4 }
 0x278   :  { %v3777_v20 = vpop.f32.mrf.mxu0 }
 0x279   :  { %v3778_v36 = vadd.f32 %v3777_v20, %v3735_v30  ;;  %v10534_v20 = vld [vmem:[#allocation7 + $0x60] sm:$0xff]   ;;  %v10539_v30 = vld [vmem:[#allocation7 + $0x10] sm:$0xff]  }
 0x27a   :  { %v3820_v29 = vpop.f32.mrf.mxu1  ;;  %v3779_v59 = vpop.f32.mrf.mxu0 }
 0x27b   :  { %v3780_v35 = vadd.f32 %v3779_v59, %v3737_v15  ;;  %v3821_v50 = vadd.f32 %v3820_v29, %v3778_v36  ;;  %v10536_v15 = vld [vmem:[#allocation7 + $0x58] sm:$0xff]   ;;  %v10538_v29 = vld [vmem:[#allocation7 + $0x50] sm:$0xff]   ;;  %v10540_v59 = vld [vmem:[#allocation7 + $0x48] sm:$0xff]  }
 0x27c   :  { %v3822_v39 = vpop.f32.mrf.mxu1  ;;  %v3781_v37 = vpop.f32.mrf.mxu0  ;;  %v4651_v36 = vld [vmem:[#allocation2 + $0x360] sm:$0xff] }
 0x27d   :  { %v3782_v40 = vadd.f32 %v3781_v37, %v3739_v51  ;;  %v3823_v43 = vadd.f32 %v3822_v39, %v3780_v35  ;;  %v4001_v6 = vmax.f32 %v3821_v50, 0.0  ;;  %v4655_v51 = vld [vmem:[#allocation2 + $0x3e0] sm:$0xff]  ;;  %v10543_v35 = vld [vmem:[#allocation7] sm:$0xff]   ;;  %v9774_v12 = vcombine.high %v4649_v42, %v4651_v36 }
 0x27e   :  { %v3824_v41 = vpop.f32.mrf.mxu1  ;;  %v3783_v44 = vpop.f32.mrf.mxu0  ;;  %v9778_v39 = vcombine.high %v4653_v34, %v4655_v51  ;;  %v9777_v37 = vcombine.low %v4653_v34, %v4655_v51  ;;  %v9765_v50 = vcombine.low %v4641_v45, %v4643_v48  ;;  %v4671_v34 = vld [vmem:[#allocation2 + $0x5e0] sm:$0xff] }
 0x27f   :  { %v3825_v49 = vadd.f32 %v3824_v41, %v3782_v40  ;;  %v3784_v16 = vadd.f32 %v3783_v44, %v3741_v38  ;;  %v4002_v62 = vmax.f32 %v3823_v43, 0.0  ;;  %v4645_v38 = vld [vmem:[#allocation2 + $0x2a0] sm:$0xff]  ;;  %v9773_v41 = vcombine.low %v4649_v42, %v4651_v36 }
 0x280   :  { %v3826_v52 = vpop.f32.mrf.mxu1  ;;  %v4647_v40 = vld [vmem:[#allocation2 + $0x2e0] sm:$0xff] }
 0x281   :  { %v3827_v8 = vadd.f32 %v3826_v52, %v3784_v16  ;;  %v4005_v28 = vmax.f32 %v3825_v49, 0.0  ;;  %v9770_v44 = vcombine.high %v4645_v38, %v4647_v40  ;;  %v9769_v43 = vcombine.low %v4645_v38, %v4647_v40  ;;  %v4637_v16 = vld [vmem:[#allocation2 + $0x1a0] sm:$0xff] }
 0x282   :  { %v9766_v49 = vcombine.high %v4641_v45, %v4643_v48  ;;  %v9762_v52 = vcombine.high %v4637_v16, %v4639_v54  ;;  %v4667_v42 = vld [vmem:[#allocation2 + $0x560] sm:$0xff] }
 0x283   :  { %v4006_v1 = vmax.f32 %v3827_v8, 0.0  ;;  %v4009_v11 = vpack.c.bf16 %v4005_v28, %v4001_v6  ;;  %v9761_v8 = vcombine.low %v4637_v16, %v4639_v54  ;;  %v4627_v6 = vld [vmem:[#allocation2 + $0x60] sm:$0xff] }
 0x284   :  { %v4663_v38 = vld [vmem:[#allocation2 + $0x4e0] sm:$0xff] }
 0x285   :  { %v4010_v7 = vpack.c.bf16 %v4006_v1, %v4002_v62  ;;  %v9754_v1 = vcombine.high %v4629_v24, %v4631_v61  ;;  %v4659_v45 = vld [vmem:[#allocation2 + $0x460] sm:$0xff] }
 0x286   :  { %v4783_v16 = vld [vmem:[#allocation2 + $0x13e0] sm:$0xff] }
 0x287   :  { %4301 = vmatprep.mubr.bf16.mxu0 %v4010_v7  ;;  %v9750_v7 = vcombine.high %v4625_v2, %v4627_v6  ;;  %v4775_v24 = vld [vmem:[#allocation2 + $0x12e0] sm:$0xff] }
 0x288   :  { %4302 = vmatmul.mubr.bf16.vlgmr.msra.gmra.mxu0 %v4009_v11  ;;  %v4687_v11 = vld [vmem:[#allocation2 + $0x7e0] sm:$0xff] }
 0x289   :  { %10371 = vmatpush3.bf16.msra.mxu0 %v10529_v10  ;;  %4575 = vmatprep.mubr.bf16.mxu0 %v2032_v17  ;;  %v4685_v10 = vld [vmem:[#allocation2 + $0x7a0] sm:$0xff] }
 0x28a   :  { %10372 = vmatprep.subr.bf16.mxu0 %v10530_v14  ;;  %v9749_v14 = vcombine.low %v4625_v2, %v4627_v6  ;;  %v9810_v4 = vcombine.high %v4685_v10, %v4687_v11  ;;  %v4681_v17 = vld [vmem:[#allocation2 + $0x720] sm:$0xff] }
 0x28b   :  { %v4769_v6 = vld [vmem:[#allocation2 + $0x1220] sm:$0xff] }
 0x28d   :  { %10373 = vmatpush3.bf16.msra.mxu0 %v10531_v31  ;;  %v4683_v31 = vld [vmem:[#allocation2 + $0x760] sm:$0xff] }
 0x28e   :  { %10374 = vmatprep.subr.bf16.mxu0 %v10532_v18  ;;  %v9809_v18 = vcombine.low %v4685_v10, %v4687_v11 }
 0x291   :  { %10375 = vmatpush3.bf16.msra.mxu0 %v10533_v22  ;;  %v9806_v22 = vcombine.high %v4681_v17, %v4683_v31 }
 0x292   :  { %10376 = vmatprep.subr.bf16.mxu0 %v10534_v20  ;;  %v4677_v20 = vld [vmem:[#allocation2 + $0x6a0] sm:$0xff] }
 0x295   :  { %10377 = vmatpush3.bf16.msra.mxu0 %v10535_v26  ;;  %v4679_v26 = vld [vmem:[#allocation2 + $0x6e0] sm:$0xff] }
 0x296   :  { %10378 = vmatprep.subr.bf16.mxu0 %v10536_v15  ;;  %v9805_v15 = vcombine.low %v4681_v17, %v4683_v31  ;;  %v4767_v17 = vld [vmem:[#allocation2 + $0x11e0] sm:$0xff]  ;;  %v2372_v31 = vrot.slane %v10964_v53, %v10928_v5 }
 0x299   :  { %10379 = vmatpush3.bf16.msra.mxu0 %v10537_v27  ;;  %v9802_v27 = vcombine.high %v4677_v20, %v4679_v26 }
 0x29a   :  { %10380 = vmatprep.subr.bf16.mxu0 %v10538_v29  ;;  %v4673_v29 = vld [vmem:[#allocation2 + $0x620] sm:$0xff] }
 0x29d   :  { %10381 = vmatpush3.bf16.msra.mxu0 %v10539_v30  ;;  %v4675_v30 = vld [vmem:[#allocation2 + $0x660] sm:$0xff] }
 0x29e   :  { %10382 = vmatprep.subr.bf16.mxu0 %v10540_v59  ;;  %v9801_v59 = vcombine.low %v4677_v20, %v4679_v26  ;;  %v9797_v51 = vcombine.low %v4673_v29, %v4675_v30 }
 0x2a1   :  { %10383 = vmatpush3.bf16.msra.mxu0 %v10541_v32  ;;  %v9798_v32 = vcombine.high %v4673_v29, %v4675_v30  ;;  %v4763_v29 = vld [vmem:[#allocation2 + $0x1160] sm:$0xff] }
 0x2a2   :  { %10384 = vmatprep.subr.bf16.mxu0 %v10542_v9  ;;  %v4669_v9 = vld [vmem:[#allocation2 + $0x5a0] sm:$0xff] }
 0x2a3   :  { %v9793_v36 = vcombine.low %v4669_v9, %v4671_v34 }
 0x2a5   :  { %10385 = vmatpush3.bf16.msra.mxu0 %v10543_v35  ;;  %v9794_v35 = vcombine.high %v4669_v9, %v4671_v34 }
 0x2a6   :  { %6183 = vmatprep.subr.bf16.mxu0 %v9778_v39  ;;  %v4665_v39 = vld [vmem:[#allocation2 + $0x520] sm:$0xff] }
 0x2a7   :  { %v9789_v40 = vcombine.low %v4665_v39, %v4667_v42 }
 0x2a8   :  { %4576 = vmatmul.mubr.bf16.vlgmr.msra.gmra.mxu0 %v10922_v55  ;;  %v4635_v55 = vld [vmem:[#allocation2 + $0x160] sm:$0xff] }
 0x2a9   :  { %6184 = vmatpush1.bf16.msra.mxu0 %v9777_v37  ;;  %6215 = vmatprep.mubr.bf16.mxu0 %v10813_v58  ;;  %v9758_v28 = vcombine.high %v4633_v56, %v4635_v55  ;;  %v9757_v62 = vcombine.low %v4633_v56, %v4635_v55  ;;  %v9790_v37 = vcombine.high %v4665_v39, %v4667_v42  ;;  %v4779_v56 = vld [vmem:[#allocation2 + $0x1360] sm:$0xff] }
 0x2aa   :  { %6185 = vmatprep.subr.bf16.mxu0 %v9774_v12  ;;  %v4661_v12 = vld [vmem:[#allocation2 + $0x4a0] sm:$0xff] }
 0x2ab   :  { %v9785_v48 = vcombine.low %v4661_v12, %v4663_v38  ;;  %v4757_v39 = vld [vmem:[#allocation2 + $0x10a0] sm:$0xff] }
 0x2ac   :  { %v4759_v42 = vld [vmem:[#allocation2 + $0x10e0] sm:$0xff] }
 0x2ad   :  { %6186 = vmatpush1.bf16.msra.mxu0 %v9773_v41  ;;  %v9786_v41 = vcombine.high %v4661_v12, %v4663_v38 }
 0x2ae   :  { %6187 = vmatprep.subr.bf16.mxu0 %v9770_v44  ;;  %v4657_v44 = vld [vmem:[#allocation2 + $0x420] sm:$0xff] }
 0x2af   :  { %v9781_v54 = vcombine.low %v4657_v44, %v4659_v45 }
 0x2b1   :  { %6188 = vmatpush1.bf16.msra.mxu0 %v9769_v43  ;;  %v9782_v43 = vcombine.high %v4657_v44, %v4659_v45  ;;  %v9882_v44 = vcombine.high %v4757_v39, %v4759_v42 }
 0x2b2   :  { %6189 = vmatprep.subr.bf16.mxu0 %v9766_v49  ;;  %v4781_v49 = vld [vmem:[#allocation2 + $0x13a0] sm:$0xff] }
 0x2b3   :  { %v9905_v55 = vcombine.low %v4781_v49, %v4783_v16 }
 0x2b5   :  { %6190 = vmatpush1.bf16.msra.mxu0 %v9765_v50  ;;  %v9906_v50 = vcombine.high %v4781_v49, %v4783_v16  ;;  %v4753_v49 = vld [vmem:[#allocation2 + $0x1020] sm:$0xff] }
 0x2b6   :  { %6191 = vmatprep.subr.bf16.mxu0 %v9762_v52  ;;  %v4777_v52 = vld [vmem:[#allocation2 + $0x1320] sm:$0xff] }
 0x2b7   :  { %v9901_v61 = vcombine.low %v4777_v52, %v4779_v56  ;;  %v4755_v16 = vld [vmem:[#allocation2 + $0x1060] sm:$0xff] }
 0x2b9   :  { %6192 = vmatpush1.bf16.msra.mxu0 %v9761_v8  ;;  %v9902_v8 = vcombine.high %v4777_v52, %v4779_v56 }
 0x2ba   :  { %6193 = vmatprep.subr.bf16.mxu0 %v9758_v28  ;;  %v4773_v28 = vld [vmem:[#allocation2 + $0x12a0] sm:$0xff]  ;;  %v3906_v2 = vpop.f32.mrf.mxu1 }
 0x2bd   :  { %6194 = vmatpush1.bf16.msra.mxu0 %v9757_v62  ;;  %v3863_v62 = vpop.f32.mrf.mxu0 }
 0x2be   :  { %6195 = vmatprep.subr.bf16.mxu0 %v9754_v1  ;;  %v9898_v1 = vcombine.high %v4773_v28, %v4775_v24 }
 0x2bf   :  { %v3865_v10 = vpop.f32.mrf.mxu0 }
 0x2c0   :  { %v3866_v30 = vadd.f32 %v3865_v10, %v2372_v31 }
 0x2c1   :  { %6196 = vmatpush1.bf16.msra.mxu0 %v9753_v19  ;;  %v4771_v19 = vld [vmem:[#allocation2 + $0x1260] sm:$0xff]  ;;  %v3867_v20 = vpop.f32.mrf.mxu0 }
 0x2c2   :  { %6197 = vmatprep.subr.bf16.mxu0 %v9750_v7  ;;  %v9897_v7 = vcombine.low %v4773_v28, %v4775_v24  ;;  %v9894_v11 = vcombine.high %v4769_v6, %v4771_v19  ;;  %v9878_v24 = vcombine.high %v4753_v49, %v4755_v16 }
 0x2c3   :  { %v3869_v9 = vpop.f32.mrf.mxu0 }
 0x2c5   :  { %6198 = vmatpush1.bf16.msra.mxu0 %v9749_v14  ;;  %v3908_v14 = vpop.f32.mrf.mxu1 }
 0x2c6   :  { %6199 = vmatprep.subr.bf16.mxu0 %v9810_v4  ;;  %v4765_v4 = vld [vmem:[#allocation2 + $0x11a0] sm:$0xff] }
 0x2c7   :  { %v9890_v26 = vcombine.high %v4765_v4, %v4767_v17 }
 0x2c9   :  { %6200 = vmatpush2.bf16.msra.mxu0 %v9809_v18  ;;  %v9893_v18 = vcombine.low %v4769_v6, %v4771_v19  ;;  %v4815_v6 = vld [vmem:[#allocation2 + $0x17e0] sm:$0xff] }
 0x2ca   :  { %6201 = vmatprep.subr.bf16.mxu0 %v9806_v22  ;;  %v2368_v22 = vrot.slane %v10964_v53, %v10925_v0  ;;  %v3870_v53 = vadd.f32 %v3869_v9, %v2372_v31  ;;  %v4807_v9 = vld [vmem:[#allocation2 + $0x16e0] sm:$0xff] }
 0x2cd   :  { %6202 = vmatpush2.bf16.msra.mxu0 %v9805_v15  ;;  %v3910_v15 = vpop.f32.mrf.mxu1 }
 0x2ce   :  { %6203 = vmatprep.subr.bf16.mxu0 %v9802_v27  ;;  %v4761_v27 = vld [vmem:[#allocation2 + $0x1120] sm:$0xff] }
 0x2cf   :  { %v9886_v34 = vcombine.high %v4761_v27, %v4763_v29  ;;  %v9885_v38 = vcombine.low %v4761_v27, %v4763_v29  ;;  %v10562_v29 = vld [vmem:[#allocation7 + $0xf0] sm:$0xff]  }
 0x2d1   :  { %6204 = vmatpush2.bf16.msra.mxu0 %v9801_v59  ;;  %v9889_v59 = vcombine.low %v4765_v4, %v4767_v17 }
 0x2d2   :  { %6205 = vmatprep.subr.bf16.mxu0 %v9798_v32  ;;  %v3864_v32 = vadd.f32 %v3863_v62, %v2368_v22 }
 0x2d5   :  { %6206 = vmatpush2.bf16.msra.mxu0 %v9797_v51  ;;  %v3868_v51 = vadd.f32 %v3867_v20, %v2368_v22  ;;  %v4809_v22 = vld [vmem:[#allocation2 + $0x1720] sm:$0xff] }
 0x2d6   :  { %6207 = vmatprep.subr.bf16.mxu0 %v9794_v35  ;;  %v3912_v35 = vpop.f32.mrf.mxu1  ;;  %v4811_v20 = vld [vmem:[#allocation2 + $0x1760] sm:$0xff] }
 0x2d7   :  { %v3911_v45 = vadd.f32 %v3910_v15, %v3868_v51  ;;  %v3913_v52 = vadd.f32 %v3912_v35, %v3870_v53  ;;  %v10561_v15 = vld [vmem:[#allocation7 + $0xb8] sm:$0xff]   ;;  %v10564_v51 = vld [vmem:[#allocation7 + $0xe8] sm:$0xff]   ;;  %v9933_v35 = vcombine.low %v4809_v22, %v4811_v20  ;;  %v10566_v53 = vld [vmem:[#allocation7 + $0xe0] sm:$0xff]  }
 0x2d9   :  { %6208 = vmatpush2.bf16.msra.mxu0 %v9793_v36 }
 0x2da   :  { %6209 = vmatprep.subr.bf16.mxu0 %v9790_v37  ;;  %v3909_v37 = vadd.f32 %v3908_v14, %v3866_v30 }
 0x2dd   :  { %6210 = vmatpush2.bf16.msra.mxu0 %v9789_v40  ;;  %v3907_v40 = vadd.f32 %v3906_v2, %v3864_v32  ;;  %v4813_v2 = vld [vmem:[#allocation2 + $0x17a0] sm:$0xff] }
 0x2de   :  { %6211 = vmatprep.subr.bf16.mxu0 %v9786_v41  ;;  %v9938_v4 = vcombine.high %v4813_v2, %v4815_v6  ;;  %v9937_v30 = vcombine.low %v4813_v2, %v4815_v6  ;;  %v4805_v32 = vld [vmem:[#allocation2 + $0x16a0] sm:$0xff]  ;;  %v10573_v2 = vld [vmem:[#allocation7 + $0x88] sm:$0xff]   ;;  %v10574_v6 = vld [vmem:[#allocation7 + $0xc0] sm:$0xff]  }
 0x2e1   :  { %6212 = vmatpush2.bf16.msra.mxu0 %v9785_v48 }
 0x2e2   :  { %6213 = vmatprep.subr.bf16.mxu0 %v9782_v43 }
 0x2e5   :  { %6214 = vmatpush2.bf16.msra.mxu0 %v9781_v54 }
 0x2e6   :  { %6269 = vmatprep.subr.bf16.mxu0 %v9906_v50 }
 0x2e8   :  { %6216 = vmatmul.mubr.bf16.vlgmr.msra.gmra.mxu0 %v10833_v21 }
 0x2e9   :  { %6270 = vmatpush1.bf16.msra.mxu0 %v9905_v55  ;;  %6301 = vmatprep.mubr.bf16.mxu0 %v10861_v60 }
 0x2ea   :  { %6271 = vmatprep.subr.bf16.mxu0 %v9902_v8  ;;  %v9881_v8 = vcombine.low %v4757_v39, %v4759_v42  ;;  %v9930_v39 = vcombine.high %v4805_v32, %v4807_v9  ;;  %v4801_v42 = vld [vmem:[#allocation2 + $0x1620] sm:$0xff] }
 0x2ed   :  { %6272 = vmatpush1.bf16.msra.mxu0 %v9901_v61 }
 0x2ee   :  { %6273 = vmatprep.subr.bf16.mxu0 %v9898_v1 }
 0x2f1   :  { %6274 = vmatpush1.bf16.msra.mxu0 %v9897_v7 }
 0x2f2   :  { %6275 = vmatprep.subr.bf16.mxu0 %v9894_v11  ;;  %v9877_v11 = vcombine.low %v4753_v49, %v4755_v16  ;;  %v4795_v49 = vld [vmem:[#allocation2 + $0x1560] sm:$0xff]  ;;  %v10569_v16 = vld [vmem:[#allocation7 + $0x98] sm:$0xff]  }
 0x2f5   :  { %6276 = vmatpush1.bf16.msra.mxu0 %v9893_v18 }
 0x2f6   :  { %6277 = vmatprep.subr.bf16.mxu0 %v9890_v26 }
 0x2f8   :  { %v3949_v36 = vpop.f32.mrf.mxu0 }
 0x2f9   :  { %6278 = vmatpush1.bf16.msra.mxu0 %v9889_v59  ;;  %v3950_v54 = vadd.f32 %v3949_v36, %v3907_v40  ;;  %v9934_v59 = vcombine.high %v4809_v22, %v4811_v20  ;;  %v4803_v36 = vld [vmem:[#allocation2 + $0x1660] sm:$0xff] }
 0x2fa   :  { %v3992_v12 = vpop.f32.mrf.mxu1  ;;  %v3951_v41 = vpop.f32.mrf.mxu0  ;;  %6279 = vmatprep.subr.bf16.mxu0 %v9886_v34  ;;  %v10563_v34 = vld [vmem:[#allocation7 + $0xb0] sm:$0xff]  }
 0x2fb   :  { %v3952_v48 = vadd.f32 %v3951_v41, %v3909_v37  ;;  %v3993_v19 = vadd.f32 %v3992_v12, %v3950_v54  ;;  %v10565_v37 = vld [vmem:[#allocation7 + $0xa8] sm:$0xff]   ;;  %v9929_v12 = vcombine.low %v4805_v32, %v4807_v9  ;;  %v4797_v40 = vld [vmem:[#allocation2 + $0x15a0] sm:$0xff] }
 0x2fc   :  { %v3994_v43 = vpop.f32.mrf.mxu1  ;;  %v3953_v50 = vpop.f32.mrf.mxu0  ;;  %v4799_v41 = vld [vmem:[#allocation2 + $0x15e0] sm:$0xff] }
 0x2fd   :  { %v3954_v56 = vadd.f32 %v3953_v50, %v3911_v45  ;;  %6280 = vmatpush1.bf16.msra.mxu0 %v9885_v38  ;;  %v3995_v61 = vadd.f32 %v3994_v43, %v3952_v48  ;;  %v4003_v18 = vmax.f32 %v3993_v19, 0.0  ;;  %v9926_v38 = vcombine.high %v4801_v42, %v4803_v36  ;;  %v4793_v43 = vld [vmem:[#allocation2 + $0x1520] sm:$0xff] }
 0x2fe   :  { %v3996_v55 = vpop.f32.mrf.mxu1  ;;  %v3955_v28 = vpop.f32.mrf.mxu0  ;;  %6281 = vmatprep.subr.bf16.mxu0 %v9882_v44  ;;  %v10568_v44 = vld [vmem:[#allocation7 + $0xd8] sm:$0xff]   ;;  %v9925_v45 = vcombine.low %v4801_v42, %v4803_v36  ;;  %v9922_v48 = vcombine.high %v4797_v40, %v4799_v41  ;;  %v10570_v54 = vld [vmem:[#allocation7 + $0xd0] sm:$0xff]   ;;  %v9921_v50 = vcombine.low %v4797_v40, %v4799_v41 }
 0x2ff   :  { %v3997_v62 = vadd.f32 %v3996_v55, %v3954_v56  ;;  %v3956_v1 = vadd.f32 %v3955_v28, %v3913_v52  ;;  %v4004_v17 = vmax.f32 %v3995_v61, 0.0  ;;  %v9918_v52 = vcombine.high %v4793_v43, %v4795_v49  ;;  %v4789_v56 = vld [vmem:[#allocation2 + $0x14a0] sm:$0xff]  ;;  %v10572_v28 = vld [vmem:[#allocation7 + $0xc8] sm:$0xff]   ;;  %v4644_v40 = vld [vmem:[#allocation2 + $0x268] sm:$0xff] }
 0x300   :  { %v3998_v7 = vpop.f32.mrf.mxu1  ;;  %v4791_v55 = vld [vmem:[#allocation2 + $0x14e0] sm:$0xff] }
 0x301   :  { %v3999_v10 = vadd.f32 %v3998_v7, %v3956_v1  ;;  %6282 = vmatpush1.bf16.msra.mxu0 %v9881_v8  ;;  %v4007_v14 = vmax.f32 %v3997_v62, 0.0  ;;  %v10571_v8 = vld [vmem:[#allocation7 + $0x90] sm:$0xff]   ;;  %v9914_v61 = vcombine.high %v4789_v56, %v4791_v55  ;;  %v9913_v19 = vcombine.low %v4789_v56, %v4791_v55 }
 0x302   :  { %6283 = vmatprep.subr.bf16.mxu0 %v9878_v24  ;;  %v9917_v24 = vcombine.low %v4793_v43, %v4795_v49  ;;  %v4785_v62 = vld [vmem:[#allocation2 + $0x1420] sm:$0xff]  ;;  %v4638_v49 = vld [vmem:[#allocation2 + $0x1a8] sm:$0xff] }
 0x303   :  { %v4008_v31 = vmax.f32 %v3999_v10, 0.0  ;;  %v4011_v27 = vpack.c.bf16 %v4007_v14, %v4003_v18  ;;  %v4787_v1 = vld [vmem:[#allocation2 + $0x1460] sm:$0xff]  ;;  %v4654_v14 = vld [vmem:[#allocation2 + $0x3a8] sm:$0xff] }
 0x304   :  { %v4717_v7 = vld [vmem:[#allocation2 + $0xba0] sm:$0xff]  ;;  %v9909_v18 = vcombine.low %v4785_v62, %v4787_v1 }
 0x305   :  { %v4012_v26 = vpack.c.bf16 %v4008_v31, %v4004_v17  ;;  %6284 = vmatpush1.bf16.msra.mxu0 %v9877_v11  ;;  %v4719_v10 = vld [vmem:[#allocation2 + $0xbe0] sm:$0xff]  ;;  %v9910_v11 = vcombine.high %v4785_v62, %v4787_v1  ;;  %v10575_v17 = vld [vmem:[#allocation7 + $0x80] sm:$0xff]  }
 0x306   :  { %6285 = vmatprep.subr.bf16.mxu0 %v9938_v4  ;;  %v4656_v4 = vld [vmem:[#allocation2 + $0x3e8] sm:$0xff]  ;;  %v9842_v31 = vcombine.high %v4717_v7, %v4719_v10  ;;  %v4713_v22 = vld [vmem:[#allocation2 + $0xb20] sm:$0xff] }
 0x307   :  { %4342 = vmatprep.mubr.bf16.mxu1 %v4012_v26  ;;  %v4715_v20 = vld [vmem:[#allocation2 + $0xb60] sm:$0xff]  ;;  %v9780_v26 = vcombine.high %v4654_v14, %v4656_v4  ;;  %v9779_v9 = vcombine.low %v4654_v14, %v4656_v4 }
 0x308   :  { %4343 = vmatmul.mubr.bf16.vlgmr.msra.gmra.mxu1 %v4011_v27  ;;  %v4650_v27 = vld [vmem:[#allocation2 + $0x328] sm:$0xff]  ;;  %v4711_v32 = vld [vmem:[#allocation2 + $0xae0] sm:$0xff] }
 0x309   :  { %10393 = vmatpush3.bf16.msra.mxu1 %v10561_v15  ;;  %4616 = vmatprep.mubr.bf16.mxu1 %v10960_v3  ;;  %v10567_v3 = vld [vmem:[#allocation7 + $0xa0] sm:$0xff]   ;;  %v9841_v15 = vcombine.low %v4717_v7, %v4719_v10  ;;  %v4705_v36 = vld [vmem:[#allocation2 + $0xa20] sm:$0xff]  ;;  %v4630_v7 = vld [vmem:[#allocation2 + $0xa8] sm:$0xff] }
 0x30a   :  { %10394 = vmatprep.subr.bf16.mxu1 %v10562_v29  ;;  %6286 = vmatpush2.bf16.msra.mxu0 %v9937_v30  ;;  %v4652_v29 = vld [vmem:[#allocation2 + $0x368] sm:$0xff]  ;;  %v9838_v30 = vcombine.high %v4713_v22, %v4715_v20  ;;  %v4693_v62 = vld [vmem:[#allocation2 + $0x8a0] sm:$0xff] }
 0x30b   :  { %6287 = vmatprep.subr.bf16.mxu0 %v9934_v59  ;;  %v4709_v59 = vld [vmem:[#allocation2 + $0xaa0] sm:$0xff]  ;;  %v4632_v10 = vld [vmem:[#allocation2 + $0xe8] sm:$0xff] }
 0x30c   :  { %v9834_v42 = vcombine.high %v4709_v59, %v4711_v32  ;;  %v4695_v1 = vld [vmem:[#allocation2 + $0x8e0] sm:$0xff] }
 0x30d   :  { %10395 = vmatpush3.bf16.msra.mxu1 %v10563_v34  ;;  %v9776_v34 = vcombine.high %v4650_v27, %v4652_v29  ;;  %v4689_v14 = vld [vmem:[#allocation2 + $0x820] sm:$0xff] }
 0x30e   :  { %10396 = vmatprep.subr.bf16.mxu1 %v10564_v51  ;;  %6288 = vmatpush2.bf16.msra.mxu0 %v9933_v35  ;;  %v9837_v51 = vcombine.low %v4713_v22, %v4715_v20  ;;  %v4646_v35 = vld [vmem:[#allocation2 + $0x2a8] sm:$0xff]  ;;  %v4691_v4 = vld [vmem:[#allocation2 + $0x860] sm:$0xff] }
 0x30f   :  { %6289 = vmatprep.subr.bf16.mxu0 %v9930_v39  ;;  %v4648_v39 = vld [vmem:[#allocation2 + $0x2e8] sm:$0xff] }
 0x310   :  { %v4626_v22 = vld [vmem:[#allocation2 + $0x28] sm:$0xff] }
 0x311   :  { %10397 = vmatpush3.bf16.msra.mxu1 %v10565_v37  ;;  %v4707_v37 = vld [vmem:[#allocation2 + $0xa60] sm:$0xff]  ;;  %v4628_v20 = vld [vmem:[#allocation2 + $0x68] sm:$0xff] }
 0x312   :  { %10398 = vmatprep.subr.bf16.mxu1 %v10566_v53  ;;  %6290 = vmatpush2.bf16.msra.mxu0 %v9929_v12  ;;  %v9775_v53 = vcombine.low %v4650_v27, %v4652_v29  ;;  %v9772_v12 = vcombine.high %v4646_v35, %v4648_v39  ;;  %v9830_v41 = vcombine.high %v4705_v36, %v4707_v37  ;;  %v4751_v27 = vld [vmem:[#allocation2 + $0xfe0] sm:$0xff] }
 0x313   :  { %6291 = vmatprep.subr.bf16.mxu0 %v9926_v38  ;;  %v4642_v38 = vld [vmem:[#allocation2 + $0x228] sm:$0xff]  ;;  %v9829_v43 = vcombine.low %v4705_v36, %v4707_v37  ;;  %v9755_v29 = vcombine.low %v4630_v7, %v4632_v10 }
 0x314   :  { %v9767_v56 = vcombine.low %v4642_v38, %v4644_v40  ;;  %v4682_v37 = vld [vmem:[#allocation2 + $0x728] sm:$0xff] }
 0x315   :  { %10399 = vmatpush3.bf16.msra.mxu1 %v10567_v3  ;;  %v4701_v3 = vld [vmem:[#allocation2 + $0x9a0] sm:$0xff] }
 0x316   :  { %10400 = vmatprep.subr.bf16.mxu1 %v10568_v44  ;;  %6292 = vmatpush2.bf16.msra.mxu0 %v9925_v45  ;;  %v4703_v44 = vld [vmem:[#allocation2 + $0x9e0] sm:$0xff]  ;;  %v9771_v45 = vcombine.low %v4646_v35, %v4648_v39  ;;  %v9751_v39 = vcombine.low %v4626_v22, %v4628_v20 }
 0x317   :  { %6293 = vmatprep.subr.bf16.mxu0 %v9922_v48  ;;  %v9768_v48 = vcombine.high %v4642_v38, %v4644_v40  ;;  %v4747_v35 = vld [vmem:[#allocation2 + $0xf60] sm:$0xff] }
 0x318   :  { %v4743_v38 = vld [vmem:[#allocation2 + $0xee0] sm:$0xff] }
 0x319   :  { %10401 = vmatpush3.bf16.msra.mxu1 %v10569_v16  ;;  %v4640_v16 = vld [vmem:[#allocation2 + $0x1e8] sm:$0xff] }
 0x31a   :  { %10402 = vmatprep.subr.bf16.mxu1 %v10570_v54  ;;  %6294 = vmatpush2.bf16.msra.mxu0 %v9921_v50  ;;  %v9826_v54 = vcombine.high %v4701_v3, %v4703_v44  ;;  %v4697_v50 = vld [vmem:[#allocation2 + $0x920] sm:$0xff]  ;;  %v9764_v55 = vcombine.high %v4638_v49, %v4640_v16 }
 0x31b   :  { %6295 = vmatprep.subr.bf16.mxu0 %v9918_v52  ;;  %v4699_v52 = vld [vmem:[#allocation2 + $0x960] sm:$0xff] }
 0x31d   :  { %10403 = vmatpush3.bf16.msra.mxu1 %v10571_v8  ;;  %v9825_v8 = vcombine.low %v4701_v3, %v4703_v44 }
 0x31e   :  { %10404 = vmatprep.subr.bf16.mxu1 %v10572_v28  ;;  %6296 = vmatpush2.bf16.msra.mxu0 %v9917_v24  ;;  %v4634_v28 = vld [vmem:[#allocation2 + $0x128] sm:$0xff] }
 0x31f   :  { %6297 = vmatprep.subr.bf16.mxu0 %v9914_v61  ;;  %v4636_v24 = vld [vmem:[#allocation2 + $0x168] sm:$0xff]  ;;  %v9822_v61 = vcombine.high %v4697_v50, %v4699_v52 }
 0x321   :  { %10405 = vmatpush3.bf16.msra.mxu1 %v10573_v2  ;;  %v9763_v2 = vcombine.low %v4638_v49, %v4640_v16 }
 0x322   :  { %10406 = vmatprep.subr.bf16.mxu1 %v10574_v6  ;;  %6298 = vmatpush2.bf16.msra.mxu0 %v9913_v19  ;;  %v9760_v6 = vcombine.high %v4634_v28, %v4636_v24  ;;  %v9821_v19 = vcombine.low %v4697_v50, %v4699_v52  ;;  %v4739_v50 = vld [vmem:[#allocation2 + $0xe60] sm:$0xff] }
 0x323   :  { %6299 = vmatprep.subr.bf16.mxu0 %v9910_v11  ;;  %v9818_v11 = vcombine.high %v4693_v62, %v4695_v1 }
 0x325   :  { %10407 = vmatpush3.bf16.msra.mxu1 %v10575_v17  ;;  %v9759_v17 = vcombine.low %v4634_v28, %v4636_v24  ;;  %v4674_v28 = vld [vmem:[#allocation2 + $0x628] sm:$0xff] }
 0x326   :  { %6226 = vmatprep.subr.bf16.mxu1 %v9842_v31  ;;  %6300 = vmatpush2.bf16.msra.mxu0 %v9909_v18  ;;  %v9756_v31 = vcombine.high %v4630_v7, %v4632_v10  ;;  %v9817_v18 = vcombine.low %v4693_v62, %v4695_v1  ;;  %v4676_v24 = vld [vmem:[#allocation2 + $0x668] sm:$0xff] }
 0x327   :  { %6355 = vmatprep.subr.bf16.mxu0 %v9780_v26  ;;  %v9814_v26 = vcombine.high %v4689_v14, %v4691_v4  ;;  %v9800_v7 = vcombine.high %v4674_v28, %v4676_v24 }
 0x328   :  { %4617 = vmatmul.mubr.bf16.vlgmr.msra.gmra.mxu1 %v10958_v23  ;;  %v9833_v23 = vcombine.low %v4709_v59, %v4711_v32  ;;  %v9813_v59 = vcombine.low %v4689_v14, %v4691_v4  ;;  %v4686_v32 = vld [vmem:[#allocation2 + $0x7a8] sm:$0xff] }
 0x329   :  { %6227 = vmatpush1.bf16.msra.mxu1 %v9841_v15  ;;  %6258 = vmatprep.mubr.bf16.mxu1 %v10827_v63  ;;  %v4749_v15 = vld [vmem:[#allocation2 + $0xfa0] sm:$0xff]  ;;  %v4672_v14 = vld [vmem:[#allocation2 + $0x5e8] sm:$0xff] }
 0x32a   :  { %6228 = vmatprep.subr.bf16.mxu1 %v9838_v30  ;;  %6302 = vmatmul.mubr.bf16.vlgmr.msra.gmra.mxu0 %v10873_v46  ;;  %v9752_v30 = vcombine.high %v4626_v22, %v4628_v20  ;;  %v9873_v36 = vcombine.low %v4749_v15, %v4751_v27 }
 0x32b   :  { %6356 = vmatpush1.bf16.msra.mxu0 %v9779_v9  ;;  %6387 = vmatprep.mubr.bf16.mxu0 %v10813_v58  ;;  %v4688_v9 = vld [vmem:[#allocation2 + $0x7e8] sm:$0xff] }
 0x32c   :  { %6357 = vmatprep.subr.bf16.mxu0 %v9776_v34  ;;  %v9874_v34 = vcombine.high %v4749_v15, %v4751_v27  ;;  %v9811_v40 = vcombine.low %v4686_v32, %v4688_v9  ;;  %v4668_v15 = vld [vmem:[#allocation2 + $0x568] sm:$0xff] }
 0x32d   :  { %6229 = vmatpush1.bf16.msra.mxu1 %v9837_v51  ;;  %v4745_v51 = vld [vmem:[#allocation2 + $0xf20] sm:$0xff] }
 0x32e   :  { %6230 = vmatprep.subr.bf16.mxu1 %v9834_v42  ;;  %v9812_v42 = vcombine.high %v4686_v32, %v4688_v9  ;;  %v9869_v44 = vcombine.low %v4745_v51, %v4747_v35 }
 0x32f   :  { %6358 = vmatpush1.bf16.msra.mxu0 %v9775_v53  ;;  %v4684_v53 = vld [vmem:[#allocation2 + $0x768] sm:$0xff] }
 0x330   :  { %6359 = vmatprep.subr.bf16.mxu0 %v9772_v12  ;;  %v9870_v12 = vcombine.high %v4745_v51, %v4747_v35  ;;  %v9808_v3 = vcombine.high %v4682_v37, %v4684_v53  ;;  %v9807_v52 = vcombine.low %v4682_v37, %v4684_v53  ;;  %v4664_v51 = vld [vmem:[#allocation2 + $0x4e8] sm:$0xff] }
 0x331   :  { %6231 = vmatpush1.bf16.msra.mxu1 %v9833_v23  ;;  %v4741_v23 = vld [vmem:[#allocation2 + $0xea0] sm:$0xff] }
 0x332   :  { %6232 = vmatprep.subr.bf16.mxu1 %v9830_v41  ;;  %v9866_v49 = vcombine.high %v4741_v23, %v4743_v38 }
 0x333   :  { %6360 = vmatpush1.bf16.msra.mxu0 %v9771_v45  ;;  %v4678_v45 = vld [vmem:[#allocation2 + $0x6a8] sm:$0xff] }
 0x334   :  { %6361 = vmatprep.subr.bf16.mxu0 %v9768_v48  ;;  %v4680_v48 = vld [vmem:[#allocation2 + $0x6e8] sm:$0xff] }
 0x335   :  { %6233 = vmatpush1.bf16.msra.mxu1 %v9829_v43 }
 0x336   :  { %6234 = vmatprep.subr.bf16.mxu1 %v9826_v54  ;;  %v4737_v54 = vld [vmem:[#allocation2 + $0xe20] sm:$0xff] }
 0x337   :  { %6362 = vmatpush1.bf16.msra.mxu0 %v9767_v56  ;;  %v9862_v62 = vcombine.high %v4737_v54, %v4739_v50  ;;  %v9861_v10 = vcombine.low %v4737_v54, %v4739_v50  ;;  %v4841_v54 = vld [vmem:[#allocation2 + $0x1b20] sm:$0xff] }
 0x338   :  { %6363 = vmatprep.subr.bf16.mxu0 %v9764_v55  ;;  %v9804_v55 = vcombine.high %v4678_v45, %v4680_v48  ;;  %v4843_v50 = vld [vmem:[#allocation2 + $0x1b60] sm:$0xff] }
 0x339   :  { %6235 = vmatpush1.bf16.msra.mxu1 %v9825_v8  ;;  %v9865_v8 = vcombine.low %v4741_v23, %v4743_v38  ;;  %v4660_v23 = vld [vmem:[#allocation2 + $0x468] sm:$0xff] }
 0x33a   :  { %6236 = vmatprep.subr.bf16.mxu1 %v9822_v61 }
 0x33b   :  { %6364 = vmatpush1.bf16.msra.mxu0 %v9763_v2  ;;  %v4733_v2 = vld [vmem:[#allocation2 + $0xda0] sm:$0xff] }
 0x33c   :  { %6365 = vmatprep.subr.bf16.mxu0 %v9760_v6  ;;  %v4735_v6 = vld [vmem:[#allocation2 + $0xde0] sm:$0xff] }
 0x33d   :  { %6237 = vmatpush1.bf16.msra.mxu1 %v9821_v19  ;;  %v9803_v19 = vcombine.low %v4678_v45, %v4680_v48  ;;  %v9858_v4 = vcombine.high %v4733_v2, %v4735_v6  ;;  %v9857_v20 = vcombine.low %v4733_v2, %v4735_v6  ;;  %v4782_v48 = vld [vmem:[#allocation2 + $0x13a8] sm:$0xff] }
 0x33e   :  { %6238 = vmatprep.subr.bf16.mxu1 %v9818_v11  ;;  %v4670_v11 = vld [vmem:[#allocation2 + $0x5a8] sm:$0xff] }
 0x33f   :  { %6366 = vmatpush1.bf16.msra.mxu0 %v9759_v17  ;;  %v4729_v17 = vld [vmem:[#allocation2 + $0xd20] sm:$0xff]  ;;  %v9796_v22 = vcombine.high %v4670_v11, %v4672_v14 }
 0x340   :  { %6367 = vmatprep.subr.bf16.mxu0 %v9756_v31  ;;  %v4731_v31 = vld [vmem:[#allocation2 + $0xd60] sm:$0xff] }
 0x341   :  { %6239 = vmatpush1.bf16.msra.mxu1 %v9817_v18  ;;  %v9799_v18 = vcombine.low %v4674_v28, %v4676_v24  ;;  %v9854_v27 = vcombine.high %v4729_v17, %v4731_v31  ;;  %v9853_v9 = vcombine.low %v4729_v17, %v4731_v31  ;;  %v4780_v28 = vld [vmem:[#allocation2 + $0x1368] sm:$0xff]  ;;  %v9966_v24 = vcombine.high %v4841_v54, %v4843_v50  ;;  %v4833_v31 = vld [vmem:[#allocation2 + $0x1a20] sm:$0xff] }
 0x342   :  { %6240 = vmatprep.subr.bf16.mxu1 %v9814_v26  ;;  %v4666_v26 = vld [vmem:[#allocation2 + $0x528] sm:$0xff] }
 0x343   :  { %6368 = vmatpush1.bf16.msra.mxu0 %v9755_v29  ;;  %v4725_v29 = vld [vmem:[#allocation2 + $0xca0] sm:$0xff]  ;;  %v9792_v32 = vcombine.high %v4666_v26, %v4668_v15 }
 0x344   :  { %6369 = vmatprep.subr.bf16.mxu0 %v9752_v30  ;;  %v4727_v30 = vld [vmem:[#allocation2 + $0xce0] sm:$0xff] }
 0x345   :  { %6241 = vmatpush1.bf16.msra.mxu1 %v9813_v59  ;;  %v9795_v59 = vcombine.low %v4670_v11, %v4672_v14  ;;  %v9850_v35 = vcombine.high %v4725_v29, %v4727_v30  ;;  %v9849_v53 = vcombine.low %v4725_v29, %v4727_v30  ;;  %v4776_v11 = vld [vmem:[#allocation2 + $0x12e8] sm:$0xff] }
 0x346   :  { %6242 = vmatprep.subr.bf16.mxu1 %v9874_v34  ;;  %v4662_v34 = vld [vmem:[#allocation2 + $0x4a8] sm:$0xff] }
 0x347   :  { %6370 = vmatpush1.bf16.msra.mxu0 %v9751_v39  ;;  %v4721_v39 = vld [vmem:[#allocation2 + $0xc20] sm:$0xff]  ;;  %v9788_v37 = vcombine.high %v4662_v34, %v4664_v51  ;;  %v4772_v29 = vld [vmem:[#allocation2 + $0x1268] sm:$0xff] }
 0x348   :  { %v10342_v41 = vpop.f32.mrf.mxu0  ;;  %6371 = vmatprep.subr.bf16.mxu0 %v9812_v42  ;;  %v4723_v42 = vld [vmem:[#allocation2 + $0xc60] sm:$0xff] }
 0x349   :  { %6243 = vmatpush2.bf16.msra.mxu1 %v9873_v36  ;;  %v9791_v36 = vcombine.low %v4666_v26, %v4668_v15  ;;  %v9846_v38 = vcombine.high %v4721_v39, %v4723_v42  ;;  %v9845_v45 = vcombine.low %v4721_v39, %v4723_v42  ;;  %v4766_v42 = vld [vmem:[#allocation2 + $0x11a8] sm:$0xff] }
 0x34a   :  { %v10343_v43 = vpop.f32.mrf.mxu0  ;;  %6244 = vmatprep.subr.bf16.mxu1 %v9870_v12  ;;  %v4658_v12 = vld [vmem:[#allocation2 + $0x428] sm:$0xff] }
 0x34b   :  { %v10995_v16 = vadd.f32 %v10343_v43, %v10342_v41  ;;  %6372 = vmatpush2.bf16.msra.mxu0 %v9811_v40  ;;  %v4845_v40 = vld [vmem:[#allocation2 + $0x1ba0] sm:$0xff]  ;;  %v4784_v43 = vld [vmem:[#allocation2 + $0x13e8] sm:$0xff] }
 0x34c   :  { %v10345_v56 = vpop.f32.mrf.mxu0  ;;  %6373 = vmatprep.subr.bf16.mxu0 %v9808_v3  ;;  %v4847_v41 = vld [vmem:[#allocation2 + $0x1be0] sm:$0xff]  ;;  %v9787_v3 = vcombine.low %v4662_v34, %v4664_v51  ;;  %v9907_v2 = vcombine.low %v4782_v48, %v4784_v43 }
 0x34d   :  { %6245 = vmatpush2.bf16.msra.mxu1 %v9869_v44  ;;  %v9784_v44 = vcombine.high %v4658_v12, %v4660_v23  ;;  %v4831_v34 = vld [vmem:[#allocation2 + $0x19e0] sm:$0xff] }
 0x34e   :  { %v10346_v61 = vpop.f32.mrf.mxu0  ;;  %6246 = vmatprep.subr.bf16.mxu1 %v9866_v49  ;;  %v9970_v49 = vcombine.high %v4845_v40, %v4847_v41 }
 0x34f   :  { %v10997_v1 = vadd.f32 %v10346_v61, %v10345_v56  ;;  %6374 = vmatpush2.bf16.msra.mxu0 %v9807_v52  ;;  %v9783_v52 = vcombine.low %v4658_v12, %v4660_v23  ;;  %v9908_v56 = vcombine.high %v4782_v48, %v4784_v43  ;;  %v4837_v61 = vld [vmem:[#allocation2 + $0x1aa0] sm:$0xff] }
 0x350   :  { %6375 = vmatprep.subr.bf16.mxu0 %v9804_v55  ;;  %v9969_v55 = vcombine.low %v4845_v40, %v4847_v41  ;;  %v4827_v12 = vld [vmem:[#allocation2 + $0x1960] sm:$0xff]  ;;  %v4762_v41 = vld [vmem:[#allocation2 + $0x1128] sm:$0xff] }
 0x351   :  { %6247 = vmatpush2.bf16.msra.mxu1 %v9865_v8  ;;  %v4778_v8 = vld [vmem:[#allocation2 + $0x1328] sm:$0xff]  ;;  %v4823_v48 = vld [vmem:[#allocation2 + $0x18e0] sm:$0xff] }
 0x352   :  { %6248 = vmatprep.subr.bf16.mxu1 %v9862_v62  ;;  %v4839_v62 = vld [vmem:[#allocation2 + $0x1ae0] sm:$0xff] }
 0x353   :  { %6376 = vmatpush2.bf16.msra.mxu0 %v9803_v19  ;;  %v9904_v19 = vcombine.high %v4778_v8, %v4780_v28  ;;  %v9961_v15 = vcombine.low %v4837_v61, %v4839_v62 }
 0x354   :  { %6377 = vmatprep.subr.bf16.mxu0 %v9800_v7  ;;  %v9965_v7 = vcombine.low %v4841_v54, %v4843_v50  ;;  %v4758_v50 = vld [vmem:[#allocation2 + $0x10a8] sm:$0xff] }
 0x355   :  { %6249 = vmatpush2.bf16.msra.mxu1 %v9861_v10  ;;  %v4774_v10 = vld [vmem:[#allocation2 + $0x12a8] sm:$0xff] }
 0x356   :  { %6250 = vmatprep.subr.bf16.mxu1 %v9858_v4  ;;  %v9962_v4 = vcombine.high %v4837_v61, %v4839_v62  ;;  %v9900_v26 = vcombine.high %v4774_v10, %v4776_v11  ;;  %v9899_v51 = vcombine.low %v4774_v10, %v4776_v11  ;;  %v4754_v62 = vld [vmem:[#allocation2 + $0x1028] sm:$0xff] }
 0x357   :  { %6378 = vmatpush2.bf16.msra.mxu0 %v9799_v18  ;;  %v4835_v18 = vld [vmem:[#allocation2 + $0x1a60] sm:$0xff] }
 0x358   :  { %6379 = vmatprep.subr.bf16.mxu0 %v9796_v22  ;;  %v9903_v22 = vcombine.low %v4778_v8, %v4780_v28  ;;  %v9957_v39 = vcombine.low %v4833_v31, %v4835_v18  ;;  %v4819_v8 = vld [vmem:[#allocation2 + $0x1860] sm:$0xff] }
 0x359   :  { %6251 = vmatpush2.bf16.msra.mxu1 %v9857_v20 }
 0x35a   :  { %6252 = vmatprep.subr.bf16.mxu1 %v9854_v27  ;;  %v4770_v27 = vld [vmem:[#allocation2 + $0x1228] sm:$0xff] }
 0x35b   :  { %6380 = vmatpush2.bf16.msra.mxu0 %v9795_v59  ;;  %v9958_v59 = vcombine.high %v4833_v31, %v4835_v18  ;;  %v9895_v23 = vcombine.low %v4770_v27, %v4772_v29  ;;  %v4816_v31 = vld [vmem:[#allocation2 + $0x17e8] sm:$0xff] }
 0x35c   :  { %6381 = vmatprep.subr.bf16.mxu0 %v9792_v32 }
 0x35d   :  { %6253 = vmatpush2.bf16.msra.mxu1 %v9853_v9  ;;  %v4829_v9 = vld [vmem:[#allocation2 + $0x19a0] sm:$0xff] }
 0x35e   :  { %6254 = vmatprep.subr.bf16.mxu1 %v9850_v35  ;;  %v9896_v35 = vcombine.high %v4770_v27, %v4772_v29  ;;  %v9953_v40 = vcombine.low %v4829_v9, %v4831_v34  ;;  %v4810_v29 = vld [vmem:[#allocation2 + $0x1728] sm:$0xff] }
 0x35f   :  { %6382 = vmatpush2.bf16.msra.mxu0 %v9791_v36  ;;  %v4768_v36 = vld [vmem:[#allocation2 + $0x11e8] sm:$0xff] }
 0x360   :  { %6383 = vmatprep.subr.bf16.mxu0 %v9788_v37  ;;  %v9954_v37 = vcombine.high %v4829_v9, %v4831_v34  ;;  %v9891_v43 = vcombine.low %v4766_v42, %v4768_v36  ;;  %v4869_v9 = vld [vmem:[#allocation2 + $0x1ea0] sm:$0xff] }
 0x361   :  { %6255 = vmatpush2.bf16.msra.mxu1 %v9849_v53  ;;  %v4825_v53 = vld [vmem:[#allocation2 + $0x1920] sm:$0xff] }
 0x362   :  { %6256 = vmatprep.subr.bf16.mxu1 %v9846_v38  ;;  %v9892_v38 = vcombine.high %v4766_v42, %v4768_v36  ;;  %v9949_v54 = vcombine.low %v4825_v53, %v4827_v12  ;;  %v4871_v34 = vld [vmem:[#allocation2 + $0x1ee0] sm:$0xff]  ;;  %v4806_v42 = vld [vmem:[#allocation2 + $0x16a8] sm:$0xff] }
 0x363   :  { %6384 = vmatpush2.bf16.msra.mxu0 %v9787_v3  ;;  %v4764_v3 = vld [vmem:[#allocation2 + $0x1168] sm:$0xff] }
 0x364   :  { %6385 = vmatprep.subr.bf16.mxu0 %v9784_v44  ;;  %v9950_v44 = vcombine.high %v4825_v53, %v4827_v12  ;;  %v9887_v28 = vcombine.low %v4762_v41, %v4764_v3  ;;  %v4808_v36 = vld [vmem:[#allocation2 + $0x16e8] sm:$0xff]  ;;  %v4865_v53 = vld [vmem:[#allocation2 + $0x1e20] sm:$0xff] }
 0x365   :  { %6257 = vmatpush2.bf16.msra.mxu1 %v9845_v45  ;;  %v4821_v45 = vld [vmem:[#allocation2 + $0x18a0] sm:$0xff] }
 0x366   :  { %6312 = vmatprep.subr.bf16.mxu1 %v9970_v49  ;;  %v9888_v49 = vcombine.high %v4762_v41, %v4764_v3  ;;  %v9945_v61 = vcombine.low %v4821_v45, %v4823_v48  ;;  %v4867_v12 = vld [vmem:[#allocation2 + $0x1e60] sm:$0xff]  ;;  %v4802_v41 = vld [vmem:[#allocation2 + $0x1628] sm:$0xff] }
 0x367   :  { %6386 = vmatpush2.bf16.msra.mxu0 %v9783_v52  ;;  %v4760_v52 = vld [vmem:[#allocation2 + $0x10e8] sm:$0xff] }
 0x368   :  { %v10386_v6 = vpop.f32.mrf.mxu0  ;;  %6259 = vmatmul.mubr.bf16.vlgmr.msra.gmra.mxu1 %v10847_v25  ;;  %6441 = vmatprep.subr.bf16.mxu0 %v9908_v56  ;;  %v9946_v56 = vcombine.high %v4821_v45, %v4823_v48  ;;  %v9883_v10 = vcombine.low %v4758_v50, %v4760_v52  ;;  %v4804_v3 = vld [vmem:[#allocation2 + $0x1668] sm:$0xff]  ;;  %v4861_v45 = vld [vmem:[#allocation2 + $0x1da0] sm:$0xff] }
 0x369   :  { %6313 = vmatpush1.bf16.msra.mxu1 %v9969_v55  ;;  %6344 = vmatprep.mubr.bf16.mxu1 %v10866_v33  ;;  %v4817_v55 = vld [vmem:[#allocation2 + $0x1820] sm:$0xff] }
 0x36a   :  { %v10387_v14 = vpop.f32.mrf.mxu0  ;;  %6314 = vmatprep.subr.bf16.mxu1 %v9966_v24  ;;  %6388 = vmatmul.mubr.bf16.vlgmr.msra.gmra.mxu0 %v10833_v21  ;;  %v9884_v24 = vcombine.high %v4758_v50, %v4760_v52  ;;  %v4863_v48 = vld [vmem:[#allocation2 + $0x1de0] sm:$0xff]  ;;  %v4798_v50 = vld [vmem:[#allocation2 + $0x15a8] sm:$0xff] }
 0x36b   :  { %v11002_v17 = vadd.f32 %v10387_v14, %v10386_v6  ;;  %6442 = vmatpush1.bf16.msra.mxu0 %v9907_v2  ;;  %6473 = vmatprep.mubr.bf16.mxu0 %v10861_v60  ;;  %v4756_v2 = vld [vmem:[#allocation2 + $0x1068] sm:$0xff]  ;;  %v9942_v6 = vcombine.high %v4817_v55, %v4819_v8  ;;  %v9941_v14 = vcombine.low %v4817_v55, %v4819_v8  ;;  %v4857_v55 = vld [vmem:[#allocation2 + $0x1d20] sm:$0xff] }
 0x36c   :  { %v10389_v20 = vpop.f32.mrf.mxu0  ;;  %6443 = vmatprep.subr.bf16.mxu0 %v9904_v19  ;;  %v4877_v19 = vld [vmem:[#allocation2 + $0x1fa0] sm:$0xff]  ;;  %v9880_v11 = vcombine.high %v4754_v62, %v4756_v2  ;;  %v4800_v52 = vld [vmem:[#allocation2 + $0x15e8] sm:$0xff] }
 0x36d   :  { %6315 = vmatpush1.bf16.msra.mxu1 %v9965_v7  ;;  %v4879_v7 = vld [vmem:[#allocation2 + $0x1fe0] sm:$0xff] }
 0x36e   :  { %v10390_v30 = vpop.f32.mrf.mxu0  ;;  %6316 = vmatprep.subr.bf16.mxu1 %v9962_v4  ;;  %v4814_v4 = vld [vmem:[#allocation2 + $0x17a8] sm:$0xff]  ;;  %v10002_v18 = vcombine.high %v4877_v19, %v4879_v7  ;;  %v10001_v27 = vcombine.low %v4877_v19, %v4879_v7  ;;  %v4859_v8 = vld [vmem:[#allocation2 + $0x1d60] sm:$0xff] }
 0x36f   :  { %v11005_v32 = vadd.f32 %v10390_v30, %v10389_v20  ;;  %6444 = vmatpush1.bf16.msra.mxu0 %v9903_v22  ;;  %v4873_v22 = vld [vmem:[#allocation2 + $0x1f20] sm:$0xff]  ;;  %v4812_v30 = vld [vmem:[#allocation2 + $0x1768] sm:$0xff] }
 0x370   :  { %6445 = vmatprep.subr.bf16.mxu0 %v9900_v26  ;;  %v4875_v20 = vld [vmem:[#allocation2 + $0x1f60] sm:$0xff]  ;;  %v9879_v26 = vcombine.low %v4754_v62, %v4756_v2  ;;  %v4794_v62 = vld [vmem:[#allocation2 + $0x1528] sm:$0xff] }
 0x371   :  { %6317 = vmatpush1.bf16.msra.mxu1 %v9961_v15  ;;  %v9940_v15 = vcombine.high %v4814_v4, %v4816_v31  ;;  %v4796_v2 = vld [vmem:[#allocation2 + $0x1568] sm:$0xff]  ;;  %v4853_v19 = vld [vmem:[#allocation2 + $0x1ca0] sm:$0xff] }
 0x372   :  { %6318 = vmatprep.subr.bf16.mxu1 %v9958_v59  ;;  %v9998_v59 = vcombine.high %v4873_v22, %v4875_v20  ;;  %v4855_v7 = vld [vmem:[#allocation2 + $0x1ce0] sm:$0xff] }
 0x373   :  { %6446 = vmatpush1.bf16.msra.mxu0 %v9899_v51  ;;  %v9939_v51 = vcombine.low %v4814_v4, %v4816_v31  ;;  %v4790_v4 = vld [vmem:[#allocation2 + $0x14a8] sm:$0xff] }
 0x374   :  { %6447 = vmatprep.subr.bf16.mxu0 %v9896_v35  ;;  %v9936_v35 = vcombine.high %v4810_v29, %v4812_v30  ;;  %v4792_v31 = vld [vmem:[#allocation2 + $0x14e8] sm:$0xff] }
 0x375   :  { %6319 = vmatpush1.bf16.msra.mxu1 %v9957_v39  ;;  %v9997_v39 = vcombine.low %v4873_v22, %v4875_v20  ;;  %v4849_v22 = vld [vmem:[#allocation2 + $0x1c20] sm:$0xff] }
 0x376   :  { %6320 = vmatprep.subr.bf16.mxu1 %v9954_v37  ;;  %v9994_v37 = vcombine.high %v4869_v9, %v4871_v34  ;;  %v4851_v20 = vld [vmem:[#allocation2 + $0x1c60] sm:$0xff] }
 0x377   :  { %6448 = vmatpush1.bf16.msra.mxu0 %v9895_v23  ;;  %v9935_v23 = vcombine.low %v4810_v29, %v4812_v30  ;;  %v4786_v29 = vld [vmem:[#allocation2 + $0x1428] sm:$0xff] }
 0x378   :  { %6449 = vmatprep.subr.bf16.mxu0 %v9892_v38  ;;  %v9932_v38 = vcombine.high %v4806_v42, %v4808_v36  ;;  %v4788_v30 = vld [vmem:[#allocation2 + $0x1468] sm:$0xff] }
 0x379   :  { %6321 = vmatpush1.bf16.msra.mxu1 %v9953_v40  ;;  %v9993_v40 = vcombine.low %v4869_v9, %v4871_v34  ;;  %v4718_v9 = vld [vmem:[#allocation2 + $0xba8] sm:$0xff] }
 0x37a   :  { %6322 = vmatprep.subr.bf16.mxu1 %v9950_v44  ;;  %v9990_v44 = vcombine.high %v4865_v53, %v4867_v12  ;;  %v4720_v34 = vld [vmem:[#allocation2 + $0xbe8] sm:$0xff] }
 0x37b   :  { %6450 = vmatpush1.bf16.msra.mxu0 %v9891_v43  ;;  %v9931_v43 = vcombine.low %v4806_v42, %v4808_v36  ;;  %v9844_v42 = vcombine.high %v4718_v9, %v4720_v34  ;;  %v4714_v36 = vld [vmem:[#allocation2 + $0xb28] sm:$0xff] }
 0x37c   :  { %6451 = vmatprep.subr.bf16.mxu0 %v9888_v49  ;;  %v9928_v49 = vcombine.high %v4802_v41, %v4804_v3 }
 0x37d   :  { %6323 = vmatpush1.bf16.msra.mxu1 %v9949_v54  ;;  %v9989_v54 = vcombine.low %v4865_v53, %v4867_v12  ;;  %v9911_v53 = vcombine.low %v4786_v29, %v4788_v30  ;;  %v9843_v12 = vcombine.low %v4718_v9, %v4720_v34  ;;  %v4746_v34 = vld [vmem:[#allocation2 + $0xf28] sm:$0xff] }
 0x37e   :  { %6324 = vmatprep.subr.bf16.mxu1 %v9946_v56  ;;  %v9986_v56 = vcombine.high %v4861_v45, %v4863_v48 }
 0x37f   :  { %6452 = vmatpush1.bf16.msra.mxu0 %v9887_v28  ;;  %v9927_v28 = vcombine.low %v4802_v41, %v4804_v3 }
 0x380   :  { %6453 = vmatprep.subr.bf16.mxu0 %v9884_v24  ;;  %v9924_v24 = vcombine.high %v4798_v50, %v4800_v52 }
 0x381   :  { %6325 = vmatpush1.bf16.msra.mxu1 %v9945_v61  ;;  %v9985_v61 = vcombine.low %v4861_v45, %v4863_v48  ;;  %v4708_v45 = vld [vmem:[#allocation2 + $0xa68] sm:$0xff] }
 0x382   :  { %6326 = vmatprep.subr.bf16.mxu1 %v9942_v6  ;;  %v9982_v6 = vcombine.high %v4857_v55, %v4859_v8 }
 0x383   :  { %6454 = vmatpush1.bf16.msra.mxu0 %v9883_v10  ;;  %v9923_v10 = vcombine.low %v4798_v50, %v4800_v52  ;;  %v10576_v52 = vld [vmem:[#allocation7 + $0x278] sm:$0xff]  }
 0x384   :  { %6455 = vmatprep.subr.bf16.mxu0 %v9880_v11  ;;  %v9920_v11 = vcombine.high %v4794_v62, %v4796_v2 }
 0x385   :  { %6327 = vmatpush1.bf16.msra.mxu1 %v9941_v14  ;;  %v9981_v14 = vcombine.low %v4857_v55, %v4859_v8  ;;  %v10578_v55 = vld [vmem:[#allocation7 + $0x270] sm:$0xff]  }
 0x386   :  { %6328 = vmatprep.subr.bf16.mxu1 %v10002_v18  ;;  %v9978_v18 = vcombine.high %v4853_v19, %v4855_v7 }
 0x387   :  { %6456 = vmatpush1.bf16.msra.mxu0 %v9879_v26  ;;  %v9919_v26 = vcombine.low %v4794_v62, %v4796_v2  ;;  %v10580_v2 = vld [vmem:[#allocation7 + $0x268] sm:$0xff]  }
 0x388   :  { %6457 = vmatprep.subr.bf16.mxu0 %v9940_v15  ;;  %v9916_v15 = vcombine.high %v4790_v4, %v4792_v31 }
 0x389   :  { %6329 = vmatpush2.bf16.msra.mxu1 %v10001_v27  ;;  %v9977_v27 = vcombine.low %v4853_v19, %v4855_v7  ;;  %v4694_v19 = vld [vmem:[#allocation2 + $0x8a8] sm:$0xff] }
 0x38a   :  { %6330 = vmatprep.subr.bf16.mxu1 %v9998_v59  ;;  %v9974_v59 = vcombine.high %v4849_v22, %v4851_v20  ;;  %v4696_v7 = vld [vmem:[#allocation2 + $0x8e8] sm:$0xff] }
 0x38b   :  { %6458 = vmatpush2.bf16.msra.mxu0 %v9939_v51  ;;  %v9915_v51 = vcombine.low %v4790_v4, %v4792_v31  ;;  %v9820_v4 = vcombine.high %v4694_v19, %v4696_v7  ;;  %v4690_v31 = vld [vmem:[#allocation2 + $0x828] sm:$0xff] }
 0x38c   :  { %6459 = vmatprep.subr.bf16.mxu0 %v9936_v35  ;;  %v9912_v35 = vcombine.high %v4786_v29, %v4788_v30  ;;  %v4752_v29 = vld [vmem:[#allocation2 + $0xfe8] sm:$0xff] }
 0x38d   :  { %6331 = vmatpush2.bf16.msra.mxu1 %v9997_v39  ;;  %v9973_v39 = vcombine.low %v4849_v22, %v4851_v20  ;;  %v10583_v22 = vld [vmem:[#allocation7 + $0x220] sm:$0xff]   ;;  %v9819_v20 = vcombine.low %v4694_v19, %v4696_v7  ;;  %v10585_v30 = vld [vmem:[#allocation7 + $0x218] sm:$0xff]  }
 0x38e   :  { %6332 = vmatprep.subr.bf16.mxu1 %v9994_v37  ;;  %v4716_v37 = vld [vmem:[#allocation2 + $0xb68] sm:$0xff] }
 0x38f   :  { %6460 = vmatpush2.bf16.msra.mxu0 %v9935_v23  ;;  %v9840_v23 = vcombine.high %v4714_v36, %v4716_v37  ;;  %v9839_v41 = vcombine.low %v4714_v36, %v4716_v37  ;;  %v4744_v36 = vld [vmem:[#allocation2 + $0xee8] sm:$0xff] }
 0x390   :  { %6461 = vmatprep.subr.bf16.mxu0 %v9932_v38  ;;  %v4710_v38 = vld [vmem:[#allocation2 + $0xaa8] sm:$0xff] }
 0x391   :  { %6333 = vmatpush2.bf16.msra.mxu1 %v9993_v40  ;;  %v4712_v40 = vld [vmem:[#allocation2 + $0xae8] sm:$0xff] }
 0x392   :  { %6334 = vmatprep.subr.bf16.mxu1 %v9990_v44  ;;  %v9836_v3 = vcombine.high %v4710_v38, %v4712_v40  ;;  %v4706_v44 = vld [vmem:[#allocation2 + $0xa28] sm:$0xff]  ;;  %v9835_v48 = vcombine.low %v4710_v38, %v4712_v40 }
 0x393   :  { %6462 = vmatpush2.bf16.msra.mxu0 %v9931_v43  ;;  %v9832_v43 = vcombine.high %v4706_v44, %v4708_v45  ;;  %v9831_v50 = vcombine.low %v4706_v44, %v4708_v45  ;;  %v4738_v40 = vld [vmem:[#allocation2 + $0xe28] sm:$0xff] }
 0x394   :  { %6463 = vmatprep.subr.bf16.mxu0 %v9928_v49  ;;  %v4702_v49 = vld [vmem:[#allocation2 + $0x9a8] sm:$0xff] }
 0x395   :  { %6335 = vmatpush2.bf16.msra.mxu1 %v9989_v54  ;;  %v4704_v54 = vld [vmem:[#allocation2 + $0x9e8] sm:$0xff] }
 0x396   :  { %6336 = vmatprep.subr.bf16.mxu1 %v9986_v56  ;;  %v10577_v56 = vld [vmem:[#allocation7 + $0x238] sm:$0xff]   ;;  %v9828_v8 = vcombine.high %v4702_v49, %v4704_v54  ;;  %v9827_v62 = vcombine.low %v4702_v49, %v4704_v54 }
 0x397   :  { %6464 = vmatpush2.bf16.msra.mxu0 %v9927_v28  ;;  %v4698_v28 = vld [vmem:[#allocation2 + $0x928] sm:$0xff] }
 0x398   :  { %6465 = vmatprep.subr.bf16.mxu0 %v9924_v24  ;;  %v4700_v24 = vld [vmem:[#allocation2 + $0x968] sm:$0xff] }
 0x399   :  { %6337 = vmatpush2.bf16.msra.mxu1 %v9985_v61  ;;  %v10579_v61 = vld [vmem:[#allocation7 + $0x230] sm:$0xff]   ;;  %v4734_v54 = vld [vmem:[#allocation2 + $0xda8] sm:$0xff] }
 0x39a   :  { %6338 = vmatprep.subr.bf16.mxu1 %v9982_v6  ;;  %v9824_v6 = vcombine.high %v4698_v28, %v4700_v24  ;;  %v4722_v7 = vld [vmem:[#allocation2 + $0xc28] sm:$0xff] }
 0x39b   :  { %6466 = vmatpush2.bf16.msra.mxu0 %v9923_v10  ;;  %v10581_v10 = vld [vmem:[#allocation7 + $0x228] sm:$0xff]  }
 0x39c   :  { %6467 = vmatprep.subr.bf16.mxu0 %v9920_v11  ;;  %v9823_v11 = vcombine.low %v4698_v28, %v4700_v24  ;;  %v4730_v28 = vld [vmem:[#allocation2 + $0xd28] sm:$0xff] }
 0x39d   :  { %6339 = vmatpush2.bf16.msra.mxu1 %v9981_v14  ;;  %v10582_v14 = vld [vmem:[#allocation7 + $0x260] sm:$0xff]   ;;  %v4732_v24 = vld [vmem:[#allocation2 + $0xd68] sm:$0xff] }
 0x39e   :  { %6340 = vmatprep.subr.bf16.mxu1 %v9978_v18  ;;  %v4692_v18 = vld [vmem:[#allocation2 + $0x868] sm:$0xff]  ;;  %v9855_v19 = vcombine.low %v4730_v28, %v4732_v24 }
 0x39f   :  { %6468 = vmatpush2.bf16.msra.mxu0 %v9919_v26  ;;  %v10584_v26 = vld [vmem:[#allocation7 + $0x258] sm:$0xff]  }
 0x3a0   :  { %6469 = vmatprep.subr.bf16.mxu0 %v9916_v15  ;;  %v9816_v15 = vcombine.high %v4690_v31, %v4692_v18 }
 0x3a1   :  { %6341 = vmatpush2.bf16.msra.mxu1 %v9977_v27  ;;  %v4750_v27 = vld [vmem:[#allocation2 + $0xfa8] sm:$0xff] }
 0x3a2   :  { %6342 = vmatprep.subr.bf16.mxu1 %v9974_v59  ;;  %v9815_v59 = vcombine.low %v4690_v31, %v4692_v18  ;;  %v9876_v9 = vcombine.high %v4750_v27, %v4752_v29  ;;  %v4842_v18 = vld [vmem:[#allocation2 + $0x1b28] sm:$0xff] }
 0x3a3   :  { %6470 = vmatpush2.bf16.msra.mxu0 %v9915_v51  ;;  %v4748_v51 = vld [vmem:[#allocation2 + $0xf68] sm:$0xff] }
 0x3a4   :  { %6471 = vmatprep.subr.bf16.mxu0 %v9912_v35  ;;  %v9875_v35 = vcombine.low %v4750_v27, %v4752_v29  ;;  %v4840_v27 = vld [vmem:[#allocation2 + $0x1ae8] sm:$0xff] }
 0x3a5   :  { %6343 = vmatpush2.bf16.msra.mxu1 %v9973_v39  ;;  %v9872_v39 = vcombine.high %v4746_v34, %v4748_v51 }
 0x3a6   :  { %6398 = vmatprep.subr.bf16.mxu1 %v9844_v42  ;;  %v4742_v42 = vld [vmem:[#allocation2 + $0xea8] sm:$0xff] }
 0x3a7   :  { %6472 = vmatpush2.bf16.msra.mxu0 %v9911_v53  ;;  %v9871_v53 = vcombine.low %v4746_v34, %v4748_v51  ;;  %v9867_v45 = vcombine.low %v4742_v42, %v4744_v36 }
 0x3a8   :  { %6345 = vmatmul.mubr.bf16.vlgmr.msra.gmra.mxu1 %v10877_v47  ;;  %10414 = vmatprep.subr.bf16.mxu0 %v10576_v52 }
 0x3a9   :  { %6399 = vmatpush1.bf16.msra.mxu1 %v9843_v12  ;;  %6430 = vmatprep.mubr.bf16.mxu1 %v10827_v63 }
 0x3aa   :  { %6400 = vmatprep.subr.bf16.mxu1 %v9840_v23  ;;  %6474 = vmatmul.mubr.bf16.vlgmr.msra.gmra.mxu0 %v10873_v46  ;;  %v9868_v23 = vcombine.high %v4742_v42, %v4744_v36  ;;  %v4836_v42 = vld [vmem:[#allocation2 + $0x1a68] sm:$0xff] }
 0x3ab   :  { %10415 = vmatpush3.bf16.msra.mxu0 %v10577_v56 }
 0x3ac   :  { %10416 = vmatprep.subr.bf16.mxu0 %v10578_v55 }
 0x3ad   :  { %6401 = vmatpush1.bf16.msra.mxu1 %v9839_v41  ;;  %v4740_v41 = vld [vmem:[#allocation2 + $0xe68] sm:$0xff] }
 0x3ae   :  { %6402 = vmatprep.subr.bf16.mxu1 %v9836_v3  ;;  %v9863_v55 = vcombine.low %v4738_v40, %v4740_v41 }
 0x3af   :  { %10417 = vmatpush3.bf16.msra.mxu0 %v10579_v61 }
 0x3b0   :  { %10418 = vmatprep.subr.bf16.mxu0 %v10580_v2  ;;  %v4726_v2 = vld [vmem:[#allocation2 + $0xca8] sm:$0xff] }
 0x3b1   :  { %6403 = vmatpush1.bf16.msra.mxu1 %v9835_v48 }
 0x3b2   :  { %6404 = vmatprep.subr.bf16.mxu1 %v9832_v43  ;;  %v9864_v43 = vcombine.high %v4738_v40, %v4740_v41 }
 0x3b3   :  { %10419 = vmatpush3.bf16.msra.mxu0 %v10581_v10 }
 0x3b4   :  { %10420 = vmatprep.subr.bf16.mxu0 %v10582_v14  ;;  %v4846_v14 = vld [vmem:[#allocation2 + $0x1ba8] sm:$0xff] }
 0x3b5   :  { %6405 = vmatpush1.bf16.msra.mxu1 %v9831_v50  ;;  %v4736_v50 = vld [vmem:[#allocation2 + $0xde8] sm:$0xff] }
 0x3b6   :  { %6406 = vmatprep.subr.bf16.mxu1 %v9828_v8  ;;  %v9860_v8 = vcombine.high %v4734_v54, %v4736_v50  ;;  %v9859_v61 = vcombine.low %v4734_v54, %v4736_v50  ;;  %v4826_v50 = vld [vmem:[#allocation2 + $0x1928] sm:$0xff] }
 0x3b7   :  { %10421 = vmatpush3.bf16.msra.mxu0 %v10583_v22  ;;  %v4844_v22 = vld [vmem:[#allocation2 + $0x1b68] sm:$0xff] }
 0x3b8   :  { %10422 = vmatprep.subr.bf16.mxu0 %v10584_v26  ;;  %v9968_v26 = vcombine.high %v4842_v18, %v4844_v22 }
 0x3b9   :  { %6407 = vmatpush1.bf16.msra.mxu1 %v9827_v62  ;;  %v9856_v62 = vcombine.high %v4730_v28, %v4732_v24  ;;  %v4824_v28 = vld [vmem:[#allocation2 + $0x18e8] sm:$0xff] }
 0x3ba   :  { %6408 = vmatprep.subr.bf16.mxu1 %v9824_v6  ;;  %v4728_v6 = vld [vmem:[#allocation2 + $0xce8] sm:$0xff] }
 0x3bb   :  { %10423 = vmatpush3.bf16.msra.mxu0 %v10585_v30  ;;  %v9851_v10 = vcombine.low %v4726_v2, %v4728_v6  ;;  %v10586_v30 = vld [vmem:[#allocation7 + $0x250] sm:$0xff]  }
 0x3bc   :  { %10424 = vmatprep.subr.bf16.mxu0 %v10586_v30  ;;  %v4864_v30 = vld [vmem:[#allocation2 + $0x1de8] sm:$0xff] }
 0x3bd   :  { %6409 = vmatpush1.bf16.msra.mxu1 %v9823_v11 }
 0x3be   :  { %6410 = vmatprep.subr.bf16.mxu1 %v9820_v4  ;;  %v4848_v4 = vld [vmem:[#allocation2 + $0x1be8] sm:$0xff] }
 0x3bf   :  { %v9972_v31 = vcombine.high %v4846_v14, %v4848_v4 }
 0x3c1   :  { %6411 = vmatpush1.bf16.msra.mxu1 %v9819_v20  ;;  %v9971_v20 = vcombine.low %v4846_v14, %v4848_v4 }
 0x3c2   :  { %6412 = vmatprep.subr.bf16.mxu1 %v9816_v15  ;;  %v4838_v15 = vld [vmem:[#allocation2 + $0x1aa8] sm:$0xff] }
 0x3c3   :  { %v9964_v51 = vcombine.high %v4838_v15, %v4840_v27 }
 0x3c5   :  { %6413 = vmatpush1.bf16.msra.mxu1 %v9815_v59  ;;  %v9967_v59 = vcombine.low %v4842_v18, %v4844_v22 }
 0x3c6   :  { %6414 = vmatprep.subr.bf16.mxu1 %v9876_v9  ;;  %v10587_v9 = vld [vmem:[#allocation7 + $0x210] sm:$0xff]  }
 0x3c7   :  { %10425 = vmatpush3.bf16.msra.mxu0 %v10587_v9 }
 0x3c8   :  { %v10364_v37 = vpop.f32.mrf.mxu1 }
 0x3c9   :  { %6415 = vmatpush2.bf16.msra.mxu1 %v9875_v35 }
 0x3ca   :  { %v10365_v12 = vpop.f32.mrf.mxu1  ;;  %6416 = vmatprep.subr.bf16.mxu1 %v9872_v39  ;;  %v4834_v39 = vld [vmem:[#allocation2 + $0x1a28] sm:$0xff] }
 0x3cb   :  { %v10366_v38 = vadd.f32 %v10365_v12, %v10364_v37  ;;  %v10588_v37 = vld [vmem:[#allocation7 + $0x248] sm:$0xff]   ;;  %v9963_v12 = vcombine.low %v4838_v15, %v4840_v27  ;;  %v9960_v40 = vcombine.high %v4834_v39, %v4836_v42 }
 0x3cc   :  { %v10367_v3 = vpop.f32.mrf.mxu1  ;;  %10426 = vmatprep.subr.bf16.mxu0 %v10588_v37 }
 0x3cd   :  { %v4345_v44 = vadd.f32 %v10366_v38, %v10995_v16  ;;  %6417 = vmatpush2.bf16.msra.mxu1 %v9871_v53 }
 0x3ce   :  { %v10368_v48 = vpop.f32.mrf.mxu1  ;;  %6418 = vmatprep.subr.bf16.mxu1 %v9868_v23  ;;  %v10589_v23 = vld [vmem:[#allocation7 + $0x208] sm:$0xff]  }
 0x3cf   :  { %v10369_v49 = vadd.f32 %v10368_v48, %v10367_v3  ;;  %v4578_v52 = vadd.f32 %v11002_v17, %v4345_v44  ;;  %v9852_v17 = vcombine.high %v4726_v2, %v4728_v6  ;;  %v4830_v3 = vld [vmem:[#allocation2 + $0x19a8] sm:$0xff]  ;;  %10427 = vmatpush3.bf16.msra.mxu0 %v10589_v23 }
 0x3d0   :  { %v4832_v44 = vld [vmem:[#allocation2 + $0x19e8] sm:$0xff] }
 0x3d1   :  { %v4348_v56 = vadd.f32 %v10369_v49, %v10997_v1  ;;  %6419 = vmatpush2.bf16.msra.mxu1 %v9867_v45  ;;  %v4724_v1 = vld [vmem:[#allocation2 + $0xc68] sm:$0xff]  ;;  %v10590_v45 = vld [vmem:[#allocation7 + $0x240] sm:$0xff]   ;;  %v9956_v54 = vcombine.high %v4830_v3, %v4832_v44 }
 0x3d2   :  { %6420 = vmatprep.subr.bf16.mxu1 %v9864_v43  ;;  %v9848_v11 = vcombine.high %v4722_v7, %v4724_v1  ;;  %v9959_v43 = vcombine.low %v4834_v39, %v4836_v42  ;;  %v10591_v49 = vld [vmem:[#allocation7 + $0x200] sm:$0xff]   ;;  %10428 = vmatprep.subr.bf16.mxu0 %v10590_v45  ;;  %v4854_v42 = vld [vmem:[#allocation2 + $0x1ca8] sm:$0xff] }
 0x3d3   :  { %v4581_v16 = vadd.f32 %v11005_v32, %v4348_v56  ;;  %v9847_v32 = vcombine.low %v4722_v7, %v4724_v1  ;;  %10429 = vmatpush3.bf16.msra.mxu0 %v10591_v49  ;;  %v9955_v56 = vcombine.low %v4830_v3, %v4832_v44  ;;  %v4850_v23 = vld [vmem:[#allocation2 + $0x1c28] sm:$0xff]  ;;  %v11021_v44 = vld [vmem:[#allocation2 + $0x3b0] sm:$0xff] }
 0x3d4   :  { %v11023_v45 = vld [vmem:[#allocation2 + $0x3f0] sm:$0xff] }
 0x3d5   :  { %6421 = vmatpush2.bf16.msra.mxu1 %v9863_v55  ;;  %v10066_v49 = vcombine.high %v11021_v44, %v11023_v45 }
 0x3d6   :  { %6422 = vmatprep.subr.bf16.mxu1 %v9860_v8  ;;  %v4822_v8 = vld [vmem:[#allocation2 + $0x18a8] sm:$0xff] }
 0x3d7   :  { %v9947_v2 = vcombine.low %v4822_v8, %v4824_v28  ;;  %8437 = vmatprep.subr.bf16.mxu0 %v10066_v49 }
 0x3d9   :  { %6423 = vmatpush2.bf16.msra.mxu1 %v9859_v61  ;;  %v4818_v61 = vld [vmem:[#allocation2 + $0x1828] sm:$0xff] }
 0x3da   :  { %6424 = vmatprep.subr.bf16.mxu1 %v9856_v62  ;;  %v4820_v62 = vld [vmem:[#allocation2 + $0x1868] sm:$0xff] }
 0x3db   :  { %v9944_v6 = vcombine.high %v4818_v61, %v4820_v62  ;;  %v9943_v7 = vcombine.low %v4818_v61, %v4820_v62  ;;  %v10601_v61 = vld [vmem:[#allocation7 + $0x298] sm:$0xff]   ;;  %v6217_v62 = vpop.f32.mrf.mxu0 }
 0x3dd   :  { %6425 = vmatpush2.bf16.msra.mxu1 %v9855_v19  ;;  %v4878_v19 = vld [vmem:[#allocation2 + $0x1fa8] sm:$0xff] }
 0x3de   :  { %6426 = vmatprep.subr.bf16.mxu1 %v9852_v17  ;;  %v4880_v17 = vld [vmem:[#allocation2 + $0x1fe8] sm:$0xff] }
 0x3df   :  { %v10004_v1 = vcombine.high %v4878_v19, %v4880_v17  ;;  %v10003_v14 = vcombine.low %v4878_v19, %v4880_v17 }
 0x3e1   :  { %6427 = vmatpush2.bf16.msra.mxu1 %v9851_v10  ;;  %v4874_v10 = vld [vmem:[#allocation2 + $0x1f28] sm:$0xff] }
 0x3e2   :  { %6428 = vmatprep.subr.bf16.mxu1 %v9848_v11  ;;  %v4876_v11 = vld [vmem:[#allocation2 + $0x1f68] sm:$0xff] }
 0x3e3   :  { %v10000_v4 = vcombine.high %v4874_v10, %v4876_v11  ;;  %v9999_v18 = vcombine.low %v4874_v10, %v4876_v11 }
 0x3e5   :  { %6429 = vmatpush2.bf16.msra.mxu1 %v9847_v32  ;;  %v4870_v32 = vld [vmem:[#allocation2 + $0x1ea8] sm:$0xff] }
 0x3e6   :  { %6484 = vmatprep.subr.bf16.mxu1 %v9972_v31  ;;  %v4872_v31 = vld [vmem:[#allocation2 + $0x1ee8] sm:$0xff] }
 0x3e7   :  { %v9996_v22 = vcombine.high %v4870_v32, %v4872_v31  ;;  %v9995_v15 = vcombine.low %v4870_v32, %v4872_v31 }
 0x3e8   :  { %v10408_v29 = vpop.f32.mrf.mxu1  ;;  %6431 = vmatmul.mubr.bf16.vlgmr.msra.gmra.mxu1 %v10847_v25 }
 0x3e9   :  { %6485 = vmatpush1.bf16.msra.mxu1 %v9971_v20  ;;  %6516 = vmatprep.mubr.bf16.mxu1 %v10866_v33  ;;  %v4866_v20 = vld [vmem:[#allocation2 + $0x1e28] sm:$0xff] }
 0x3ea   :  { %v10409_v34 = vpop.f32.mrf.mxu1  ;;  %6486 = vmatprep.subr.bf16.mxu1 %v9968_v26  ;;  %v4868_v26 = vld [vmem:[#allocation2 + $0x1e68] sm:$0xff] }
 0x3eb   :  { %v10410_v35 = vadd.f32 %v10409_v34, %v10408_v29  ;;  %v9992_v27 = vcombine.high %v4866_v20, %v4868_v26  ;;  %v4862_v29 = vld [vmem:[#allocation2 + $0x1da8] sm:$0xff] }
 0x3ec   :  { %v10411_v36 = vpop.f32.mrf.mxu1  ;;  %v9988_v9 = vcombine.high %v4862_v29, %v4864_v30  ;;  %v4858_v34 = vld [vmem:[#allocation2 + $0x1d28] sm:$0xff] }
 0x3ed   :  { %v11016_v53 = vadd.f32 %v10410_v35, %v4578_v52  ;;  %6487 = vmatpush1.bf16.msra.mxu1 %v9967_v59  ;;  %v4828_v52 = vld [vmem:[#allocation2 + $0x1968] sm:$0xff]  ;;  %v9991_v59 = vcombine.low %v4866_v20, %v4868_v26  ;;  %v9987_v35 = vcombine.low %v4862_v29, %v4864_v30  ;;  %v10602_v30 = vld [vmem:[#allocation7 + $0x2d0] sm:$0xff]  }
 0x3ee   :  { %v10412_v38 = vpop.f32.mrf.mxu1  ;;  %6488 = vmatprep.subr.bf16.mxu1 %v9964_v51  ;;  %v9952_v55 = vcombine.high %v4826_v50, %v4828_v52  ;;  %v9951_v24 = vcombine.low %v4826_v50, %v4828_v52  ;;  %v4860_v51 = vld [vmem:[#allocation2 + $0x1d68] sm:$0xff]  ;;  %v10594_v52 = vld [vmem:[#allocation7 + $0x2f0] sm:$0xff]  }
 0x3ef   :  { %v10413_v41 = vadd.f32 %v10412_v38, %v10411_v36  ;;  %v9984_v39 = vcombine.high %v4858_v34, %v4860_v51  ;;  %v4856_v36 = vld [vmem:[#allocation2 + $0x1ce8] sm:$0xff]  ;;  %v9983_v37 = vcombine.low %v4858_v34, %v4860_v51  ;;  %v10603_v34 = vld [vmem:[#allocation7 + $0x290] sm:$0xff]  }
 0x3f0   :  { %v4852_v38 = vld [vmem:[#allocation2 + $0x1c68] sm:$0xff] }
 0x3f1   :  { %v11018_v48 = vadd.f32 %v10413_v41, %v4581_v16  ;;  %6489 = vmatpush1.bf16.msra.mxu1 %v9963_v12  ;;  %v9948_v16 = vcombine.high %v4822_v8, %v4824_v28  ;;  %v9980_v12 = vcombine.high %v4854_v42, %v4856_v36  ;;  %v9976_v41 = vcombine.high %v4850_v23, %v4852_v38  ;;  %v10593_v50 = vld [vmem:[#allocation7 + $0x2b8] sm:$0xff]   ;;  %v10597_v8 = vld [vmem:[#allocation7 + $0x2a8] sm:$0xff]   ;;  %v10598_v28 = vld [vmem:[#allocation7 + $0x2e0] sm:$0xff]  }
 0x3f2   :  { %6490 = vmatprep.subr.bf16.mxu1 %v9960_v40  ;;  %v9979_v40 = vcombine.low %v4854_v42, %v4856_v36  ;;  %v9975_v3 = vcombine.low %v4850_v23, %v4852_v38  ;;  %v10605_v38 = vld [vmem:[#allocation7 + $0x288] sm:$0xff]  }
 0x3f5   :  { %6491 = vmatpush1.bf16.msra.mxu1 %v9959_v43  ;;  %v10065_v43 = vcombine.low %v11021_v44, %v11023_v45  ;;  %v6889_v44 = vld [vmem:[#allocation2 + $0x170] sm:$0xff] }
 0x3f6   :  { %6492 = vmatprep.subr.bf16.mxu1 %v9956_v54  ;;  %v10592_v54 = vld [vmem:[#allocation7 + $0x2f8] sm:$0xff]  }
 0x3f9   :  { %6493 = vmatpush1.bf16.msra.mxu1 %v9955_v56  ;;  %v10595_v56 = vld [vmem:[#allocation7 + $0x2b0] sm:$0xff]  }
 0x3fa   :  { %6494 = vmatprep.subr.bf16.mxu1 %v9952_v55  ;;  %v10596_v55 = vld [vmem:[#allocation7 + $0x2e8] sm:$0xff]  }
 0x3fd   :  { %6495 = vmatpush1.bf16.msra.mxu1 %v9951_v24  ;;  %v10599_v24 = vld [vmem:[#allocation7 + $0x2a0] sm:$0xff]  }
 0x3fe   :  { %6496 = vmatprep.subr.bf16.mxu1 %v9948_v16  ;;  %v10600_v16 = vld [vmem:[#allocation7 + $0x2d8] sm:$0xff]  }
 0x401   :  { %6497 = vmatpush1.bf16.msra.mxu1 %v9947_v2  ;;  %v6219_v2 = vpop.f32.mrf.mxu0 }
 0x402   :  { %6498 = vmatprep.subr.bf16.mxu1 %v9944_v6 }
 0x403   :  { %v6221_v6 = vpop.f32.mrf.mxu0 }
 0x405   :  { %6499 = vmatpush1.bf16.msra.mxu1 %v9943_v7  ;;  %v6223_v19 = vpop.f32.mrf.mxu0  ;;  %v11029_v7 = vld [vmem:[#allocation5 + $0x8] sm:$0xf] }
 0x406   :  { %6500 = vmatprep.subr.bf16.mxu1 %v10004_v1  ;;  %v4890_v11 = vrot.slane %v11029_v7, %v10967_v57 }
 0x407   :  { %v6303_v10 = vpop.f32.mrf.mxu0 }
 0x408   :  { %v6220_v31 = vadd.f32 %v6219_v2, %v4890_v11  ;;  %v11037_v2 = vld [vmem:[#allocation2 + $0xbf0] sm:$0xff] }
 0x409   :  { %6501 = vmatpush2.bf16.msra.mxu1 %v10003_v14  ;;  %v4886_v14 = vrot.slane %v11029_v7, %v10890_v13  ;;  %v6305_v32 = vpop.f32.mrf.mxu0 }
 0x40a   :  { %6502 = vmatprep.subr.bf16.mxu1 %v10000_v4 }
 0x40b   :  { %v6307_v26 = vpop.f32.mrf.mxu0 }
 0x40d   :  { %6503 = vmatpush2.bf16.msra.mxu1 %v9999_v18  ;;  %v6218_v18 = vadd.f32 %v6217_v62, %v4886_v14  ;;  %v11035_v62 = vld [vmem:[#allocation2 + $0xbb0] sm:$0xff] }
 0x40e   :  { %6504 = vmatprep.subr.bf16.mxu1 %v9996_v22  ;;  %v6222_v22 = vadd.f32 %v6221_v6, %v4886_v14  ;;  %v6901_v14 = vld [vmem:[#allocation2 + $0x2f0] sm:$0xff] }
 0x411   :  { %6505 = vmatpush2.bf16.msra.mxu1 %v9995_v15  ;;  %v6224_v15 = vadd.f32 %v6223_v19, %v4890_v11  ;;  %v10130_v19 = vcombine.high %v11035_v62, %v11037_v2  ;;  %v6899_v11 = vld [vmem:[#allocation2 + $0x2b0] sm:$0xff] }
 0x412   :  { %6506 = vmatprep.subr.bf16.mxu1 %v9992_v27 }
 0x415   :  { %6507 = vmatpush2.bf16.msra.mxu1 %v9991_v59 }
 0x416   :  { %6508 = vmatprep.subr.bf16.mxu1 %v9988_v9 }
 0x419   :  { %6509 = vmatpush2.bf16.msra.mxu1 %v9987_v35  ;;  %v6309_v35 = vpop.f32.mrf.mxu0 }
 0x41a   :  { %6510 = vmatprep.subr.bf16.mxu1 %v9984_v39 }
 0x41d   :  { %6511 = vmatpush2.bf16.msra.mxu1 %v9983_v37  ;;  %v10604_v37 = vld [vmem:[#allocation7 + $0x2c8] sm:$0xff]  }
 0x41e   :  { %6512 = vmatprep.subr.bf16.mxu1 %v9980_v12 }
 0x421   :  { %6513 = vmatpush2.bf16.msra.mxu1 %v9979_v40 }
 0x422   :  { %6514 = vmatprep.subr.bf16.mxu1 %v9976_v41 }
 0x425   :  { %6515 = vmatpush2.bf16.msra.mxu1 %v9975_v3 }
 0x426   :  { %10436 = vmatprep.subr.bf16.mxu1 %v10592_v54 }
 0x428   :  { %6517 = vmatmul.mubr.bf16.vlgmr.msra.gmra.mxu1 %v10877_v47  ;;  %v6260_v17 = vpop.f32.mrf.mxu1 }
 0x429   :  { %10437 = vmatpush3.bf16.msra.mxu1 %v10593_v50  ;;  %v6261_v59 = vadd.f32 %v6260_v17, %v6218_v18  ;;  %v6897_v18 = vld [vmem:[#allocation2 + $0x270] sm:$0xff] }
 0x42a   :  { %10438 = vmatprep.subr.bf16.mxu1 %v10594_v52  ;;  %v6262_v1 = vpop.f32.mrf.mxu1  ;;  %v10606_v52 = vld [vmem:[#allocation7 + $0x2c0] sm:$0xff]  }
 0x42b   :  { %v6263_v27 = vadd.f32 %v6262_v1, %v6220_v31  ;;  %v6304_v12 = vadd.f32 %v6303_v10, %v6261_v59  ;;  %v10129_v10 = vcombine.low %v11035_v62, %v11037_v2  ;;  %v6895_v31 = vld [vmem:[#allocation2 + $0x230] sm:$0xff] }
 0x42c   :  { %v6264_v4 = vpop.f32.mrf.mxu1  ;;  %v6883_v59 = vld [vmem:[#allocation2 + $0xb0] sm:$0xff] }
 0x42d   :  { %10439 = vmatpush3.bf16.msra.mxu1 %v10595_v56  ;;  %v6265_v29 = vadd.f32 %v6264_v4, %v6222_v22  ;;  %v6306_v42 = vadd.f32 %v6305_v32, %v6263_v27  ;;  %v10058_v32 = vcombine.high %v6899_v11, %v6901_v14  ;;  %v10057_v22 = vcombine.low %v6899_v11, %v6901_v14 }
 0x42e   :  { %10440 = vmatprep.subr.bf16.mxu1 %v10596_v55  ;;  %v6266_v20 = vpop.f32.mrf.mxu1  ;;  %v10607_v55 = vld [vmem:[#allocation7 + $0x280] sm:$0xff]   ;;  %v10053_v27 = vcombine.low %v6895_v31, %v6897_v18 }
 0x42f   :  { %v6267_v51 = vadd.f32 %v6266_v20, %v6224_v15  ;;  %v6308_v36 = vadd.f32 %v6307_v26, %v6265_v29  ;;  %v10054_v20 = vcombine.high %v6895_v31, %v6897_v18  ;;  %v6891_v26 = vld [vmem:[#allocation2 + $0x1b0] sm:$0xff] }
 0x430   :  { %v6893_v15 = vld [vmem:[#allocation2 + $0x1f0] sm:$0xff] }
 0x431   :  { %10441 = vmatpush3.bf16.msra.mxu1 %v10597_v8  ;;  %v6310_v40 = vadd.f32 %v6309_v35, %v6267_v51  ;;  %v10050_v29 = vcombine.high %v6891_v26, %v6893_v15  ;;  %v10049_v45 = vcombine.low %v6891_v26, %v6893_v15  ;;  %v6879_v35 = vld [vmem:[#allocation2 + $0x30] sm:$0xff] }
 0x432   :  { %10442 = vmatprep.subr.bf16.mxu1 %v10598_v28 }
 0x435   :  { %10443 = vmatpush3.bf16.msra.mxu1 %v10599_v24  ;;  %v6903_v24 = vld [vmem:[#allocation2 + $0x330] sm:$0xff] }
 0x436   :  { %10444 = vmatprep.subr.bf16.mxu1 %v10600_v16  ;;  %v6905_v16 = vld [vmem:[#allocation2 + $0x370] sm:$0xff] }
 0x437   :  { %v10062_v1 = vcombine.high %v6903_v24, %v6905_v16  ;;  %v10061_v4 = vcombine.low %v6903_v24, %v6905_v16  ;;  %v6923_v16 = vld [vmem:[#allocation2 + $0x5b0] sm:$0xff] }
 0x439   :  { %10445 = vmatpush3.bf16.msra.mxu1 %v10601_v61 }
 0x43a   :  { %10446 = vmatprep.subr.bf16.mxu1 %v10602_v30  ;;  %v6887_v30 = vld [vmem:[#allocation2 + $0x130] sm:$0xff] }
 0x43d   :  { %10447 = vmatpush3.bf16.msra.mxu1 %v10603_v34  ;;  %v10045_v34 = vcombine.low %v6887_v30, %v6889_v44 }
 0x43e   :  { %10448 = vmatprep.subr.bf16.mxu1 %v10604_v37  ;;  %v6939_v37 = vld [vmem:[#allocation2 + $0x7b0] sm:$0xff] }
 0x441   :  { %10449 = vmatpush3.bf16.msra.mxu1 %v10605_v38 }
 0x442   :  { %10450 = vmatprep.subr.bf16.mxu1 %v10606_v52 }
 0x445   :  { %10451 = vmatpush3.bf16.msra.mxu1 %v10607_v55  ;;  %v6927_v55 = vld [vmem:[#allocation2 + $0x630] sm:$0xff] }
 0x446   :  { %8480 = vmatprep.subr.bf16.mxu1 %v10130_v19 }
 0x468   :  { %v6346_v9 = vpop.f32.mrf.mxu1 }
 0x469   :  { %v6347_v49 = vadd.f32 %v6346_v9, %v6304_v12  ;;  %v6885_v9 = vld [vmem:[#allocation2 + $0xf0] sm:$0xff] }
 0x46a   :  { %v6348_v39 = vpop.f32.mrf.mxu1  ;;  %v10042_v51 = vcombine.high %v6883_v59, %v6885_v9  ;;  %v6941_v12 = vld [vmem:[#allocation2 + $0x7f0] sm:$0xff] }
 0x46b   :  { %v6349_v41 = vadd.f32 %v6348_v39, %v6306_v42  ;;  %v6527_v61 = vmax.f32 %v6347_v49, 0.0  ;;  %v6881_v39 = vld [vmem:[#allocation2 + $0x70] sm:$0xff]  ;;  %v10041_v42 = vcombine.low %v6883_v59, %v6885_v9  ;;  %v10098_v38 = vcombine.high %v6939_v37, %v6941_v12 }
 0x46c   :  { %v6350_v23 = vpop.f32.mrf.mxu1 }
 0x46d   :  { %v6351_v3 = vadd.f32 %v6350_v23, %v6308_v36  ;;  %v6528_v8 = vmax.f32 %v6349_v41, 0.0  ;;  %v10038_v36 = vcombine.high %v6879_v35, %v6881_v39  ;;  %v10037_v23 = vcombine.low %v6879_v35, %v6881_v39  ;;  %v6937_v41 = vld [vmem:[#allocation2 + $0x770] sm:$0xff] }
 0x46e   :  { %v6352_v54 = vpop.f32.mrf.mxu1 }
 0x46f   :  { %v6353_v50 = vadd.f32 %v6352_v54, %v6310_v40  ;;  %v6531_v56 = vmax.f32 %v6351_v3, 0.0  ;;  %v6935_v40 = vld [vmem:[#allocation2 + $0x730] sm:$0xff]  ;;  %v10097_v3 = vcombine.low %v6939_v37, %v6941_v12 }
 0x470   :  { %v10094_v49 = vcombine.high %v6935_v40, %v6937_v41  ;;  %v6931_v54 = vld [vmem:[#allocation2 + $0x6b0] sm:$0xff]  ;;  %v10093_v52 = vcombine.low %v6935_v40, %v6937_v41 }
 0x471   :  { %v6532_v28 = vmax.f32 %v6353_v50, 0.0  ;;  %v6535_v17 = vpack.c.bf16 %v6531_v56, %v6527_v61  ;;  %v6933_v50 = vld [vmem:[#allocation2 + $0x6f0] sm:$0xff] }
 0x472   :  { %v10090_v56 = vcombine.high %v6931_v54, %v6933_v50  ;;  %v6925_v61 = vld [vmem:[#allocation2 + $0x5f0] sm:$0xff] }
 0x473   :  { %v6536_v6 = vpack.c.bf16 %v6532_v28, %v6528_v8  ;;  %v6929_v8 = vld [vmem:[#allocation2 + $0x670] sm:$0xff]  ;;  %v10089_v28 = vcombine.low %v6931_v54, %v6933_v50  ;;  %v10082_v19 = vcombine.high %v6923_v16, %v6925_v61  ;;  %v10081_v11 = vcombine.low %v6923_v16, %v6925_v61 }
 0x474   :  { %v10086_v24 = vcombine.high %v6927_v55, %v6929_v8 }
 0x475   :  { %6827 = vmatprep.mubr.bf16.mxu0 %v6536_v6  ;;  %v10085_v6 = vcombine.low %v6927_v55, %v6929_v8 }
 0x476   :  { %6828 = vmatmul.mubr.bf16.vlgmr.msra.gmra.mxu0 %v6535_v17  ;;  %v6919_v17 = vld [vmem:[#allocation2 + $0x530] sm:$0xff] }
 0x477   :  { %8438 = vmatpush1.bf16.msra.mxu0 %v10065_v43  ;;  %8469 = vmatprep.mubr.bf16.mxu0 %v10813_v58  ;;  %v10046_v43 = vcombine.high %v6887_v30, %v6889_v44 }
 0x478   :  { %8439 = vmatprep.subr.bf16.mxu0 %v10062_v1  ;;  %v6921_v1 = vld [vmem:[#allocation2 + $0x570] sm:$0xff] }
 0x479   :  { %v10078_v14 = vcombine.high %v6919_v17, %v6921_v1  ;;  %v10077_v31 = vcombine.low %v6919_v17, %v6921_v1  ;;  %v6389_v17 = vpop.f32.mrf.mxu0 }
 0x47b   :  { %8440 = vmatpush1.bf16.msra.mxu0 %v10061_v4  ;;  %v6915_v4 = vld [vmem:[#allocation2 + $0x4b0] sm:$0xff] }
 0x47c   :  { %8441 = vmatprep.subr.bf16.mxu0 %v10058_v32  ;;  %v6917_v32 = vld [vmem:[#allocation2 + $0x4f0] sm:$0xff] }
 0x47d   :  { %v10074_v18 = vcombine.high %v6915_v4, %v6917_v32  ;;  %v10073_v26 = vcombine.low %v6915_v4, %v6917_v32  ;;  %v7065_v4 = vld [vmem:[#allocation2 + $0x1770] sm:$0xff]  ;;  %v6391_v32 = vpop.f32.mrf.mxu0 }
 0x47f   :  { %8442 = vmatpush1.bf16.msra.mxu0 %v10057_v22  ;;  %v6911_v22 = vld [vmem:[#allocation2 + $0x430] sm:$0xff] }
 0x480   :  { %8443 = vmatprep.subr.bf16.mxu0 %v10054_v20  ;;  %v6913_v20 = vld [vmem:[#allocation2 + $0x470] sm:$0xff] }
 0x481   :  { %v10070_v15 = vcombine.high %v6911_v22, %v6913_v20  ;;  %v10069_v30 = vcombine.low %v6911_v22, %v6913_v20  ;;  %v7059_v22 = vld [vmem:[#allocation2 + $0x16b0] sm:$0xff] }
 0x482   :  { %v7061_v20 = vld [vmem:[#allocation2 + $0x16f0] sm:$0xff] }
 0x483   :  { %8444 = vmatpush1.bf16.msra.mxu0 %v10053_v27  ;;  %v7035_v27 = vld [vmem:[#allocation2 + $0x13b0] sm:$0xff] }
 0x484   :  { %8445 = vmatprep.subr.bf16.mxu0 %v10050_v29  ;;  %v7037_v29 = vld [vmem:[#allocation2 + $0x13f0] sm:$0xff] }
 0x485   :  { %v10194_v44 = vcombine.high %v7035_v27, %v7037_v29  ;;  %v10193_v59 = vcombine.low %v7035_v27, %v7037_v29  ;;  %v10218_v27 = vcombine.high %v7059_v22, %v7061_v20  ;;  %v7055_v29 = vld [vmem:[#allocation2 + $0x1630] sm:$0xff] }
 0x487   :  { %8446 = vmatpush1.bf16.msra.mxu0 %v10049_v45  ;;  %v7031_v45 = vld [vmem:[#allocation2 + $0x1330] sm:$0xff] }
 0x488   :  { %8447 = vmatprep.subr.bf16.mxu0 %v10046_v43  ;;  %v7033_v43 = vld [vmem:[#allocation2 + $0x1370] sm:$0xff] }
 0x489   :  { %v10190_v9 = vcombine.high %v7031_v45, %v7033_v43  ;;  %v10189_v35 = vcombine.low %v7031_v45, %v7033_v43  ;;  %v10217_v43 = vcombine.low %v7059_v22, %v7061_v20 }
 0x48b   :  { %8448 = vmatpush1.bf16.msra.mxu0 %v10045_v34  ;;  %v7027_v34 = vld [vmem:[#allocation2 + $0x12b0] sm:$0xff] }
 0x48c   :  { %8449 = vmatprep.subr.bf16.mxu0 %v10042_v51  ;;  %v7029_v51 = vld [vmem:[#allocation2 + $0x12f0] sm:$0xff] }
 0x48d   :  { %v10186_v39 = vcombine.high %v7027_v34, %v7029_v51  ;;  %v10185_v37 = vcombine.low %v7027_v34, %v7029_v51  ;;  %v7053_v34 = vld [vmem:[#allocation2 + $0x15f0] sm:$0xff] }
 0x48f   :  { %8450 = vmatpush1.bf16.msra.mxu0 %v10041_v42  ;;  %v7023_v42 = vld [vmem:[#allocation2 + $0x1230] sm:$0xff] }
 0x490   :  { %8451 = vmatprep.subr.bf16.mxu0 %v10038_v36  ;;  %v7025_v36 = vld [vmem:[#allocation2 + $0x1270] sm:$0xff] }
 0x491   :  { %v10182_v12 = vcombine.high %v7023_v42, %v7025_v36  ;;  %v10181_v40 = vcombine.low %v7023_v42, %v7025_v36  ;;  %v4894_v36 = vrot.slane %v11029_v7, %v10925_v0 }
 0x493   :  { %8452 = vmatpush1.bf16.msra.mxu0 %v10037_v23  ;;  %v7019_v23 = vld [vmem:[#allocation2 + $0x11b0] sm:$0xff] }
 0x494   :  { %8453 = vmatprep.subr.bf16.mxu0 %v10098_v38  ;;  %v7021_v38 = vld [vmem:[#allocation2 + $0x11f0] sm:$0xff] }
 0x495   :  { %v10178_v41 = vcombine.high %v7019_v23, %v7021_v38  ;;  %v10177_v54 = vcombine.low %v7019_v23, %v7021_v38  ;;  %v7049_v23 = vld [vmem:[#allocation2 + $0x1570] sm:$0xff] }
 0x497   :  { %8454 = vmatpush2.bf16.msra.mxu0 %v10097_v3  ;;  %v7015_v3 = vld [vmem:[#allocation2 + $0x1130] sm:$0xff] }
 0x498   :  { %8455 = vmatprep.subr.bf16.mxu0 %v10094_v49  ;;  %v7017_v49 = vld [vmem:[#allocation2 + $0x1170] sm:$0xff] }
 0x499   :  { %v10174_v50 = vcombine.high %v7015_v3, %v7017_v49  ;;  %v10173_v55 = vcombine.low %v7015_v3, %v7017_v49  ;;  %v6390_v49 = vadd.f32 %v6389_v17, %v4894_v36 }
 0x49b   :  { %8456 = vmatpush2.bf16.msra.mxu0 %v10093_v52  ;;  %v7011_v52 = vld [vmem:[#allocation2 + $0x10b0] sm:$0xff] }
 0x49c   :  { %8457 = vmatprep.subr.bf16.mxu0 %v10090_v56  ;;  %v7013_v56 = vld [vmem:[#allocation2 + $0x10f0] sm:$0xff] }
 0x49d   :  { %v10170_v8 = vcombine.high %v7011_v52, %v7013_v56  ;;  %v10169_v16 = vcombine.low %v7011_v52, %v7013_v56  ;;  %v7043_v52 = vld [vmem:[#allocation2 + $0x14b0] sm:$0xff] }
 0x49e   :  { %v7045_v56 = vld [vmem:[#allocation2 + $0x14f0] sm:$0xff] }
 0x49f   :  { %8458 = vmatpush2.bf16.msra.mxu0 %v10089_v28  ;;  %v7007_v28 = vld [vmem:[#allocation2 + $0x1030] sm:$0xff] }
 0x4a0   :  { %8459 = vmatprep.subr.bf16.mxu0 %v10086_v24  ;;  %v7009_v24 = vld [vmem:[#allocation2 + $0x1070] sm:$0xff] }
 0x4a1   :  { %v10166_v61 = vcombine.high %v7007_v28, %v7009_v24  ;;  %v10165_v1 = vcombine.low %v7007_v28, %v7009_v24 }
 0x4a3   :  { %8460 = vmatpush2.bf16.msra.mxu0 %v10085_v6  ;;  %v7067_v6 = vld [vmem:[#allocation2 + $0x17b0] sm:$0xff] }
 0x4a4   :  { %8461 = vmatprep.subr.bf16.mxu0 %v10082_v19  ;;  %v7069_v19 = vld [vmem:[#allocation2 + $0x17f0] sm:$0xff] }
 0x4a7   :  { %8462 = vmatpush2.bf16.msra.mxu0 %v10081_v11  ;;  %v10226_v11 = vcombine.high %v7067_v6, %v7069_v19 }
 0x4a8   :  { %8463 = vmatprep.subr.bf16.mxu0 %v10078_v14  ;;  %v7063_v14 = vld [vmem:[#allocation2 + $0x1730] sm:$0xff]  ;;  %v6432_v45 = vpop.f32.mrf.mxu1 }
 0x4aa   :  { %v6434_v51 = vpop.f32.mrf.mxu1 }
 0x4ab   :  { %8464 = vmatpush2.bf16.msra.mxu0 %v10077_v31  ;;  %v10225_v31 = vcombine.low %v7067_v6, %v7069_v19  ;;  %v10202_v19 = vcombine.high %v7043_v52, %v7045_v56 }
 0x4ac   :  { %8465 = vmatprep.subr.bf16.mxu0 %v10074_v18  ;;  %v10222_v18 = vcombine.high %v7063_v14, %v7065_v4  ;;  %v6436_v38 = vpop.f32.mrf.mxu1 }
 0x4af   :  { %8466 = vmatpush2.bf16.msra.mxu0 %v10073_v26  ;;  %v6393_v26 = vpop.f32.mrf.mxu0 }
 0x4b0   :  { %8467 = vmatprep.subr.bf16.mxu0 %v10070_v15  ;;  %v10221_v15 = vcombine.low %v7063_v14, %v7065_v4  ;;  %v7041_v14 = vld [vmem:[#allocation2 + $0x1470] sm:$0xff] }
 0x4b3   :  { %8468 = vmatpush2.bf16.msra.mxu0 %v10069_v30  ;;  %v7057_v30 = vld [vmem:[#allocation2 + $0x1670] sm:$0xff] }
 0x4b4   :  { %8523 = vmatprep.subr.bf16.mxu0 %v10194_v44  ;;  %v6395_v44 = vpop.f32.mrf.mxu0  ;;  %v10213_v42 = vcombine.low %v7055_v29, %v7057_v30 }
 0x4b6   :  { %8470 = vmatmul.mubr.bf16.vlgmr.msra.gmra.mxu0 %v10833_v21 }
 0x4b7   :  { %8524 = vmatpush1.bf16.msra.mxu0 %v10193_v59  ;;  %8555 = vmatprep.mubr.bf16.mxu0 %v10861_v60  ;;  %v10214_v59 = vcombine.high %v7055_v29, %v7057_v30  ;;  %v6908_v30 = vld [vmem:[#allocation2 + $0x3b8] sm:$0xff] }
 0x4b8   :  { %8525 = vmatprep.subr.bf16.mxu0 %v10190_v9  ;;  %v7051_v9 = vld [vmem:[#allocation2 + $0x15b0] sm:$0xff] }
 0x4b9   :  { %v10209_v3 = vcombine.low %v7051_v9, %v7053_v34 }
 0x4bb   :  { %8526 = vmatpush1.bf16.msra.mxu0 %v10189_v35  ;;  %v6475_v35 = vpop.f32.mrf.mxu0 }
 0x4bc   :  { %8527 = vmatprep.subr.bf16.mxu0 %v10186_v39  ;;  %v4898_v39 = vrot.slane %v11029_v7, %v10928_v5 }
 0x4be   :  { %v6396_v28 = vadd.f32 %v6395_v44, %v4898_v39  ;;  %v6910_v44 = vld [vmem:[#allocation2 + $0x3f8] sm:$0xff] }
 0x4bf   :  { %8528 = vmatpush1.bf16.msra.mxu0 %v10185_v37  ;;  %v10210_v37 = vcombine.high %v7051_v9, %v7053_v34 }
 0x4c0   :  { %8529 = vmatprep.subr.bf16.mxu0 %v10182_v12  ;;  %v7047_v12 = vld [vmem:[#allocation2 + $0x1530] sm:$0xff] }
 0x4c3   :  { %8530 = vmatpush1.bf16.msra.mxu0 %v10181_v40  ;;  %v6477_v40 = vpop.f32.mrf.mxu0 }
 0x4c4   :  { %8531 = vmatprep.subr.bf16.mxu0 %v10178_v41  ;;  %v6392_v41 = vadd.f32 %v6391_v32, %v4898_v39 }
 0x4c6   :  { %v6435_v24 = vadd.f32 %v6434_v51, %v6392_v41  ;;  %v10068_v51 = vcombine.high %v6908_v30, %v6910_v44 }
 0x4c7   :  { %8532 = vmatpush1.bf16.msra.mxu0 %v10177_v54  ;;  %v10206_v54 = vcombine.high %v7047_v12, %v7049_v23 }
 0x4c8   :  { %8533 = vmatprep.subr.bf16.mxu0 %v10174_v50  ;;  %v6394_v50 = vadd.f32 %v6393_v26, %v4894_v36  ;;  %v6478_v32 = vadd.f32 %v6477_v40, %v6435_v24  ;;  %v6967_v36 = vld [vmem:[#allocation2 + $0xb30] sm:$0xff] }
 0x4c9   :  { %v6959_v24 = vld [vmem:[#allocation2 + $0xa30] sm:$0xff] }
 0x4ca   :  { %v6437_v7 = vadd.f32 %v6436_v38, %v6394_v50 }
 0x4cb   :  { %8534 = vmatpush1.bf16.msra.mxu0 %v10173_v55  ;;  %v6438_v55 = vpop.f32.mrf.mxu1 }
 0x4cc   :  { %8535 = vmatprep.subr.bf16.mxu0 %v10170_v8  ;;  %v6479_v8 = vpop.f32.mrf.mxu0 }
 0x4ce   :  { %v6481_v17 = vpop.f32.mrf.mxu0 }
 0x4cf   :  { %8536 = vmatpush1.bf16.msra.mxu0 %v10169_v16  ;;  %v10205_v16 = vcombine.low %v7047_v12, %v7049_v23  ;;  %v6904_v12 = vld [vmem:[#allocation2 + $0x338] sm:$0xff] }
 0x4d0   :  { %8537 = vmatprep.subr.bf16.mxu0 %v10166_v61  ;;  %v6433_v61 = vadd.f32 %v6432_v45, %v6390_v49  ;;  %v6906_v23 = vld [vmem:[#allocation2 + $0x378] sm:$0xff]  ;;  %v6963_v49 = vld [vmem:[#allocation2 + $0xab0] sm:$0xff] }
 0x4d1   :  { %v10064_v50 = vcombine.high %v6904_v12, %v6906_v23 }
 0x4d2   :  { %v6476_v22 = vadd.f32 %v6475_v35, %v6433_v61  ;;  %v6969_v35 = vld [vmem:[#allocation2 + $0xb70] sm:$0xff]  ;;  %v6896_v61 = vld [vmem:[#allocation2 + $0x238] sm:$0xff] }
 0x4d3   :  { %8538 = vmatpush1.bf16.msra.mxu0 %v10165_v1  ;;  %v6439_v1 = vadd.f32 %v6438_v55, %v6396_v28  ;;  %v10126_v41 = vcombine.high %v6967_v36, %v6969_v35  ;;  %v10125_v55 = vcombine.low %v6967_v36, %v6969_v35  ;;  %v10063_v28 = vcombine.low %v6904_v12, %v6906_v23  ;;  %v6880_v35 = vld [vmem:[#allocation2 + $0x38] sm:$0xff] }
 0x4d4   :  { %8539 = vmatprep.subr.bf16.mxu0 %v10226_v11  ;;  %v7039_v11 = vld [vmem:[#allocation2 + $0x1430] sm:$0xff] }
 0x4d5   :  { %v10198_v26 = vcombine.high %v7039_v11, %v7041_v14  ;;  %v10197_v9 = vcombine.low %v7039_v11, %v7041_v14  ;;  %v6892_v14 = vld [vmem:[#allocation2 + $0x1b8] sm:$0xff] }
 0x4d7   :  { %8540 = vmatpush2.bf16.msra.mxu0 %v10225_v31  ;;  %v6480_v31 = vadd.f32 %v6479_v8, %v6437_v7  ;;  %v6961_v7 = vld [vmem:[#allocation2 + $0xa70] sm:$0xff] }
 0x4d8   :  { %8541 = vmatprep.subr.bf16.mxu0 %v10222_v18  ;;  %v10201_v18 = vcombine.low %v7043_v52, %v7045_v56  ;;  %v6900_v52 = vld [vmem:[#allocation2 + $0x2b8] sm:$0xff]  ;;  %v10118_v62 = vcombine.high %v6959_v24, %v6961_v7 }
 0x4d9   :  { %v6902_v56 = vld [vmem:[#allocation2 + $0x2f8] sm:$0xff] }
 0x4da   :  { %v10059_v2 = vcombine.low %v6900_v52, %v6902_v56 }
 0x4db   :  { %8542 = vmatpush2.bf16.msra.mxu0 %v10221_v15  ;;  %v6482_v15 = vadd.f32 %v6481_v17, %v6439_v1  ;;  %v6957_v1 = vld [vmem:[#allocation2 + $0x9f0] sm:$0xff]  ;;  %v6894_v17 = vld [vmem:[#allocation2 + $0x1f8] sm:$0xff] }
 0x4dc   :  { %8543 = vmatprep.subr.bf16.mxu0 %v10218_v27 }
 0x4df   :  { %8544 = vmatpush2.bf16.msra.mxu0 %v10217_v43 }
 0x4e0   :  { %8545 = vmatprep.subr.bf16.mxu0 %v10214_v59 }
 0x4e3   :  { %8546 = vmatpush2.bf16.msra.mxu0 %v10213_v42 }
 0x4e4   :  { %8547 = vmatprep.subr.bf16.mxu0 %v10210_v37 }
 0x4e7   :  { %8548 = vmatpush2.bf16.msra.mxu0 %v10209_v3  ;;  %v10067_v3 = vcombine.low %v6908_v30, %v6910_v44  ;;  %v6947_v30 = vld [vmem:[#allocation2 + $0x8b0] sm:$0xff] }
 0x4e8   :  { %v6518_v6 = vpop.f32.mrf.mxu1  ;;  %8549 = vmatprep.subr.bf16.mxu0 %v10206_v54  ;;  %v6965_v54 = vld [vmem:[#allocation2 + $0xaf0] sm:$0xff] }
 0x4e9   :  { %v6519_v45 = vadd.f32 %v6518_v6, %v6476_v22  ;;  %v10122_v8 = vcombine.high %v6963_v49, %v6965_v54  ;;  %v6898_v6 = vld [vmem:[#allocation2 + $0x278] sm:$0xff]  ;;  %v10052_v22 = vcombine.high %v6892_v14, %v6894_v17  ;;  %v6949_v44 = vld [vmem:[#allocation2 + $0x8f0] sm:$0xff] }
 0x4ea   :  { %v6520_v4 = vpop.f32.mrf.mxu1  ;;  %v10056_v11 = vcombine.high %v6896_v61, %v6898_v6  ;;  %v10105_v12 = vcombine.low %v6947_v30, %v6949_v44 }
 0x4eb   :  { %8550 = vmatpush2.bf16.msra.mxu0 %v10205_v16  ;;  %v6521_v27 = vadd.f32 %v6520_v4, %v6478_v32  ;;  %v6529_v37 = vmax.f32 %v6519_v45, 0.0  ;;  %v10060_v16 = vcombine.high %v6900_v52, %v6902_v56  ;;  %v10117_v4 = vcombine.low %v6959_v24, %v6961_v7  ;;  %v6936_v24 = vld [vmem:[#allocation2 + $0x738] sm:$0xff] }
 0x4ec   :  { %v6522_v20 = vpop.f32.mrf.mxu1  ;;  %8551 = vmatprep.subr.bf16.mxu0 %v10202_v19  ;;  %v10121_v19 = vcombine.low %v6963_v49, %v6965_v54  ;;  %v6940_v49 = vld [vmem:[#allocation2 + $0x7b8] sm:$0xff] }
 0x4ed   :  { %v6523_v29 = vadd.f32 %v6522_v20, %v6480_v31  ;;  %v6530_v39 = vmax.f32 %v6521_v27, 0.0  ;;  %v6951_v31 = vld [vmem:[#allocation2 + $0x930] sm:$0xff]  ;;  %v6888_v20 = vld [vmem:[#allocation2 + $0x138] sm:$0xff] }
 0x4ee   :  { %v6524_v43 = vpop.f32.mrf.mxu1  ;;  %v6942_v54 = vld [vmem:[#allocation2 + $0x7f8] sm:$0xff] }
 0x4ef   :  { %v6525_v59 = vadd.f32 %v6524_v43, %v6482_v15  ;;  %8552 = vmatpush2.bf16.msra.mxu0 %v10201_v18  ;;  %v6533_v34 = vmax.f32 %v6523_v29, 0.0  ;;  %v6953_v18 = vld [vmem:[#allocation2 + $0x970] sm:$0xff]  ;;  %v10051_v29 = vcombine.low %v6892_v14, %v6894_v17  ;;  %v6884_v43 = vld [vmem:[#allocation2 + $0xb8] sm:$0xff] }
 0x4f0   :  { %8553 = vmatprep.subr.bf16.mxu0 %v10198_v26  ;;  %v6890_v26 = vld [vmem:[#allocation2 + $0x178] sm:$0xff]  ;;  %v10110_v27 = vcombine.high %v6951_v31, %v6953_v18 }
 0x4f1   :  { %v6534_v42 = vmax.f32 %v6525_v59, 0.0  ;;  %v6537_v40 = vpack.c.bf16 %v6533_v34, %v6529_v37  ;;  %v10048_v45 = vcombine.high %v6888_v20, %v6890_v26  ;;  %v6886_v59 = vld [vmem:[#allocation2 + $0xf8] sm:$0xff]  ;;  %v10106_v34 = vcombine.high %v6947_v30, %v6949_v44 }
 0x4f2   :  { %v10044_v36 = vcombine.high %v6884_v43, %v6886_v59  ;;  %v6882_v37 = vld [vmem:[#allocation2 + $0x78] sm:$0xff] }
 0x4f3   :  { %v6538_v38 = vpack.c.bf16 %v6534_v42, %v6530_v39  ;;  %8554 = vmatpush2.bf16.msra.mxu0 %v10197_v9  ;;  %v10109_v9 = vcombine.low %v6951_v31, %v6953_v18  ;;  %v6943_v39 = vld [vmem:[#allocation2 + $0x830] sm:$0xff]  ;;  %v10039_v56 = vcombine.low %v6880_v35, %v6882_v37  ;;  %v6938_v7 = vld [vmem:[#allocation2 + $0x778] sm:$0xff] }
 0x4f4   :  { %8609 = vmatprep.subr.bf16.mxu0 %v10068_v51  ;;  %v10047_v51 = vcombine.low %v6888_v20, %v6890_v26  ;;  %v6945_v42 = vld [vmem:[#allocation2 + $0x870] sm:$0xff]  ;;  %v10095_v17 = vcombine.low %v6936_v24, %v6938_v7  ;;  %v6928_v31 = vld [vmem:[#allocation2 + $0x638] sm:$0xff] }
 0x4f5   :  { %6868 = vmatprep.mubr.bf16.mxu1 %v6538_v38  ;;  %v10102_v23 = vcombine.high %v6943_v39, %v6945_v42  ;;  %v10043_v38 = vcombine.low %v6884_v43, %v6886_v59  ;;  %v6930_v18 = vld [vmem:[#allocation2 + $0x678] sm:$0xff] }
 0x4f6   :  { %6869 = vmatmul.mubr.bf16.vlgmr.msra.gmra.mxu1 %v6537_v40  ;;  %8556 = vmatmul.mubr.bf16.vlgmr.msra.gmra.mxu0 %v10873_v46  ;;  %v7003_v40 = vld [vmem:[#allocation2 + $0xfb0] sm:$0xff]  ;;  %v6924_v30 = vld [vmem:[#allocation2 + $0x5b8] sm:$0xff]  ;;  %v10087_v59 = vcombine.low %v6928_v31, %v6930_v18 }
 0x4f7   :  { %8481 = vmatpush1.bf16.msra.mxu1 %v10129_v10  ;;  %8512 = vmatprep.mubr.bf16.mxu1 %v10827_v63  ;;  %v6955_v10 = vld [vmem:[#allocation2 + $0x9b0] sm:$0xff]  ;;  %v6926_v44 = vld [vmem:[#allocation2 + $0x5f8] sm:$0xff] }
 0x4f8   :  { %8482 = vmatprep.subr.bf16.mxu1 %v10126_v41  ;;  %8610 = vmatpush1.bf16.msra.mxu0 %v10067_v3  ;;  %v10114_v32 = vcombine.high %v6955_v10, %v6957_v1  ;;  %v10113_v15 = vcombine.low %v6955_v10, %v6957_v1  ;;  %v7005_v41 = vld [vmem:[#allocation2 + $0xff0] sm:$0xff]  ;;  %v10040_v3 = vcombine.high %v6880_v35, %v6882_v37  ;;  %v6932_v10 = vld [vmem:[#allocation2 + $0x6b8] sm:$0xff] }
 0x4f9   :  { %8611 = vmatprep.subr.bf16.mxu0 %v10064_v50  ;;  %8641 = vmatprep.mubr.bf16.mxu0 %v10813_v58  ;;  %v10055_v58 = vcombine.low %v6896_v61, %v6898_v6  ;;  %v10101_v50 = vcombine.low %v6943_v39, %v6945_v42  ;;  %v10162_v52 = vcombine.high %v7003_v40, %v7005_v41  ;;  %v6934_v1 = vld [vmem:[#allocation2 + $0x6f8] sm:$0xff] }
 0x4fa   :  { %v10099_v6 = vcombine.low %v6940_v49, %v6942_v54  ;;  %v10091_v26 = vcombine.low %v6932_v10, %v6934_v1  ;;  %v6920_v39 = vld [vmem:[#allocation2 + $0x538] sm:$0xff]  ;;  %v10083_v37 = vcombine.low %v6924_v30, %v6926_v44 }
 0x4fb   :  { %8483 = vmatpush1.bf16.msra.mxu1 %v10125_v55  ;;  %v6999_v55 = vld [vmem:[#allocation2 + $0xf30] sm:$0xff]  ;;  %v6922_v42 = vld [vmem:[#allocation2 + $0x578] sm:$0xff] }
 0x4fc   :  { %8484 = vmatprep.subr.bf16.mxu1 %v10122_v8  ;;  %8612 = vmatpush1.bf16.msra.mxu0 %v10063_v28  ;;  %v7001_v8 = vld [vmem:[#allocation2 + $0xf70] sm:$0xff]  ;;  %v10100_v28 = vcombine.high %v6940_v49, %v6942_v54  ;;  %v10079_v54 = vcombine.low %v6920_v39, %v6922_v42 }
 0x4fd   :  { %8613 = vmatprep.subr.bf16.mxu0 %v10060_v16  ;;  %v10161_v16 = vcombine.low %v7003_v40, %v7005_v41  ;;  %v10158_v61 = vcombine.high %v6999_v55, %v7001_v8  ;;  %v6916_v40 = vld [vmem:[#allocation2 + $0x4b8] sm:$0xff] }
 0x4fe   :  { %v6918_v41 = vld [vmem:[#allocation2 + $0x4f8] sm:$0xff] }
 0x4ff   :  { %8485 = vmatpush1.bf16.msra.mxu1 %v10121_v19  ;;  %v6995_v19 = vld [vmem:[#allocation2 + $0xeb0] sm:$0xff] }
 0x500   :  { %8486 = vmatprep.subr.bf16.mxu1 %v10118_v62  ;;  %8614 = vmatpush1.bf16.msra.mxu0 %v10059_v2  ;;  %v6997_v62 = vld [vmem:[#allocation2 + $0xef0] sm:$0xff]  ;;  %v10096_v2 = vcombine.high %v6936_v24, %v6938_v7  ;;  %v10075_v7 = vcombine.low %v6916_v40, %v6918_v41 }
 0x501   :  { %8615 = vmatprep.subr.bf16.mxu0 %v10056_v11  ;;  %v10157_v11 = vcombine.low %v6999_v55, %v7001_v8  ;;  %v10154_v14 = vcombine.high %v6995_v19, %v6997_v62  ;;  %v6912_v55 = vld [vmem:[#allocation2 + $0x438] sm:$0xff] }
 0x502   :  { %v6914_v8 = vld [vmem:[#allocation2 + $0x478] sm:$0xff] }
 0x503   :  { %8487 = vmatpush1.bf16.msra.mxu1 %v10117_v4  ;;  %v6991_v4 = vld [vmem:[#allocation2 + $0xe30] sm:$0xff] }
 0x504   :  { %8488 = vmatprep.subr.bf16.mxu1 %v10114_v32  ;;  %8616 = vmatpush1.bf16.msra.mxu0 %v10055_v58  ;;  %v6993_v32 = vld [vmem:[#allocation2 + $0xe70] sm:$0xff]  ;;  %v10092_v58 = vcombine.high %v6932_v10, %v6934_v1  ;;  %v10071_v1 = vcombine.low %v6912_v55, %v6914_v8 }
 0x505   :  { %8617 = vmatprep.subr.bf16.mxu0 %v10052_v22  ;;  %v10153_v22 = vcombine.low %v6995_v19, %v6997_v62  ;;  %v10150_v20 = vcombine.high %v6991_v4, %v6993_v32  ;;  %v7036_v19 = vld [vmem:[#allocation2 + $0x13b8] sm:$0xff] }
 0x506   :  { %v7038_v62 = vld [vmem:[#allocation2 + $0x13f8] sm:$0xff] }
 0x507   :  { %8489 = vmatpush1.bf16.msra.mxu1 %v10113_v15  ;;  %v6987_v15 = vld [vmem:[#allocation2 + $0xdb0] sm:$0xff] }
 0x508   :  { %8490 = vmatprep.subr.bf16.mxu1 %v10110_v27  ;;  %8618 = vmatpush1.bf16.msra.mxu0 %v10051_v29  ;;  %v6989_v27 = vld [vmem:[#allocation2 + $0xdf0] sm:$0xff]  ;;  %v10088_v29 = vcombine.high %v6928_v31, %v6930_v18 }
 0x509   :  { %8619 = vmatprep.subr.bf16.mxu0 %v10048_v45  ;;  %v10149_v45 = vcombine.low %v6991_v4, %v6993_v32  ;;  %v10146_v43 = vcombine.high %v6987_v15, %v6989_v27  ;;  %v7032_v32 = vld [vmem:[#allocation2 + $0x1338] sm:$0xff]  ;;  %v7091_v18 = vld [vmem:[#allocation2 + $0x1ab0] sm:$0xff] }
 0x50b   :  { %8491 = vmatpush1.bf16.msra.mxu1 %v10109_v9  ;;  %v6983_v9 = vld [vmem:[#allocation2 + $0xd30] sm:$0xff] }
 0x50c   :  { %8492 = vmatprep.subr.bf16.mxu1 %v10106_v34  ;;  %8620 = vmatpush1.bf16.msra.mxu0 %v10047_v51  ;;  %v6985_v34 = vld [vmem:[#allocation2 + $0xd70] sm:$0xff]  ;;  %v10084_v51 = vcombine.high %v6924_v30, %v6926_v44  ;;  %v7030_v30 = vld [vmem:[#allocation2 + $0x12f8] sm:$0xff] }
 0x50d   :  { %8621 = vmatprep.subr.bf16.mxu0 %v10044_v36  ;;  %v10145_v36 = vcombine.low %v6987_v15, %v6989_v27  ;;  %v10142_v35 = vcombine.high %v6983_v9, %v6985_v34 }
 0x50f   :  { %8493 = vmatpush1.bf16.msra.mxu1 %v10105_v12  ;;  %v6979_v12 = vld [vmem:[#allocation2 + $0xcb0] sm:$0xff] }
 0x510   :  { %8494 = vmatprep.subr.bf16.mxu1 %v10102_v23  ;;  %8622 = vmatpush1.bf16.msra.mxu0 %v10043_v38  ;;  %v6981_v23 = vld [vmem:[#allocation2 + $0xcf0] sm:$0xff]  ;;  %v10080_v38 = vcombine.high %v6920_v39, %v6922_v42 }
 0x511   :  { %8623 = vmatprep.subr.bf16.mxu0 %v10040_v3  ;;  %v10141_v3 = vcombine.low %v6983_v9, %v6985_v34  ;;  %v10138_v49 = vcombine.high %v6979_v12, %v6981_v23  ;;  %v7089_v9 = vld [vmem:[#allocation2 + $0x1a70] sm:$0xff] }
 0x513   :  { %8495 = vmatpush1.bf16.msra.mxu1 %v10101_v50  ;;  %v6975_v50 = vld [vmem:[#allocation2 + $0xc30] sm:$0xff] }
 0x514   :  { %8496 = vmatprep.subr.bf16.mxu1 %v10162_v52  ;;  %8624 = vmatpush1.bf16.msra.mxu0 %v10039_v56  ;;  %v6977_v52 = vld [vmem:[#allocation2 + $0xc70] sm:$0xff]  ;;  %v10076_v56 = vcombine.high %v6916_v40, %v6918_v41 }
 0x515   :  { %8625 = vmatprep.subr.bf16.mxu0 %v10100_v28  ;;  %v10137_v28 = vcombine.low %v6979_v12, %v6981_v23  ;;  %v10134_v24 = vcombine.high %v6975_v50, %v6977_v52 }
 0x517   :  { %8497 = vmatpush2.bf16.msra.mxu1 %v10161_v16  ;;  %v7099_v16 = vld [vmem:[#allocation2 + $0x1bb0] sm:$0xff] }
 0x518   :  { %8498 = vmatprep.subr.bf16.mxu1 %v10158_v61  ;;  %8626 = vmatpush2.bf16.msra.mxu0 %v10099_v6  ;;  %v7101_v61 = vld [vmem:[#allocation2 + $0x1bf0] sm:$0xff]  ;;  %v10072_v6 = vcombine.high %v6912_v55, %v6914_v8 }
 0x519   :  { %8627 = vmatprep.subr.bf16.mxu0 %v10096_v2  ;;  %v10133_v2 = vcombine.low %v6975_v50, %v6977_v52  ;;  %v10258_v10 = vcombine.high %v7099_v16, %v7101_v61  ;;  %v10257_v4 = vcombine.low %v7099_v16, %v7101_v61  ;;  %v7079_v50 = vld [vmem:[#allocation2 + $0x1930] sm:$0xff] }
 0x51a   :  { %v7081_v52 = vld [vmem:[#allocation2 + $0x1970] sm:$0xff] }
 0x51b   :  { %8499 = vmatpush2.bf16.msra.mxu1 %v10157_v11  ;;  %v7095_v11 = vld [vmem:[#allocation2 + $0x1b30] sm:$0xff] }
 0x51c   :  { %8500 = vmatprep.subr.bf16.mxu1 %v10154_v14  ;;  %8628 = vmatpush2.bf16.msra.mxu0 %v10095_v17  ;;  %v7097_v14 = vld [vmem:[#allocation2 + $0x1b70] sm:$0xff]  ;;  %v10196_v17 = vcombine.high %v7036_v19, %v7038_v62 }
 0x51d   :  { %8629 = vmatprep.subr.bf16.mxu0 %v10092_v58  ;;  %v7034_v58 = vld [vmem:[#allocation2 + $0x1378] sm:$0xff]  ;;  %v10254_v31 = vcombine.high %v7095_v11, %v7097_v14  ;;  %v10253_v27 = vcombine.low %v7095_v11, %v7097_v14  ;;  %v7075_v16 = vld [vmem:[#allocation2 + $0x18b0] sm:$0xff] }
 0x51e   :  { %v10192_v15 = vcombine.high %v7032_v32, %v7034_v58  ;;  %v10191_v34 = vcombine.low %v7032_v32, %v7034_v58  ;;  %v7077_v61 = vld [vmem:[#allocation2 + $0x18f0] sm:$0xff]  ;;  %v7008_v58 = vld [vmem:[#allocation2 + $0x1038] sm:$0xff] }
 0x51f   :  { %8501 = vmatpush2.bf16.msra.mxu1 %v10153_v22  ;;  %v7093_v22 = vld [vmem:[#allocation2 + $0x1af0] sm:$0xff]  ;;  %v10233_v32 = vcombine.low %v7075_v16, %v7077_v61 }
 0x520   :  { %8502 = vmatprep.subr.bf16.mxu1 %v10150_v20  ;;  %8630 = vmatpush2.bf16.msra.mxu0 %v10091_v26  ;;  %v10195_v20 = vcombine.low %v7036_v19, %v7038_v62  ;;  %v10249_v42 = vcombine.low %v7091_v18, %v7093_v22  ;;  %v10237_v62 = vcombine.low %v7079_v50, %v7081_v52  ;;  %v7071_v11 = vld [vmem:[#allocation2 + $0x1830] sm:$0xff] }
 0x521   :  { %8631 = vmatprep.subr.bf16.mxu0 %v10088_v29  ;;  %v7028_v29 = vld [vmem:[#allocation2 + $0x12b8] sm:$0xff]  ;;  %v7073_v14 = vld [vmem:[#allocation2 + $0x1870] sm:$0xff] }
 0x522   :  { %v10188_v39 = vcombine.high %v7028_v29, %v7030_v30  ;;  %v10187_v40 = vcombine.low %v7028_v29, %v7030_v30  ;;  %v7068_v29 = vld [vmem:[#allocation2 + $0x17b8] sm:$0xff] }
 0x523   :  { %8503 = vmatpush2.bf16.msra.mxu1 %v10149_v45  ;;  %v10250_v45 = vcombine.high %v7091_v18, %v7093_v22  ;;  %v10230_v18 = vcombine.high %v7071_v11, %v7073_v14  ;;  %v7131_v22 = vld [vmem:[#allocation2 + $0x1fb0] sm:$0xff]  ;;  %v7070_v30 = vld [vmem:[#allocation2 + $0x17f8] sm:$0xff] }
 0x524   :  { %8504 = vmatprep.subr.bf16.mxu1 %v10146_v43  ;;  %8632 = vmatpush2.bf16.msra.mxu0 %v10087_v59  ;;  %v7087_v59 = vld [vmem:[#allocation2 + $0x1a30] sm:$0xff] }
 0x525   :  { %8633 = vmatprep.subr.bf16.mxu0 %v10084_v51  ;;  %v10246_v12 = vcombine.high %v7087_v59, %v7089_v9 }
 0x527   :  { %8505 = vmatpush2.bf16.msra.mxu1 %v10145_v36  ;;  %v7024_v36 = vld [vmem:[#allocation2 + $0x1238] sm:$0xff] }
 0x528   :  { %8506 = vmatprep.subr.bf16.mxu1 %v10142_v35  ;;  %8634 = vmatpush2.bf16.msra.mxu0 %v10083_v37  ;;  %v7026_v35 = vld [vmem:[#allocation2 + $0x1278] sm:$0xff] }
 0x529   :  { %8635 = vmatprep.subr.bf16.mxu0 %v10080_v38  ;;  %v7085_v38 = vld [vmem:[#allocation2 + $0x19f0] sm:$0xff]  ;;  %v10184_v41 = vcombine.high %v7024_v36, %v7026_v35 }
 0x52b   :  { %8507 = vmatpush2.bf16.msra.mxu1 %v10141_v3  ;;  %v7020_v3 = vld [vmem:[#allocation2 + $0x11b8] sm:$0xff] }
 0x52c   :  { %8508 = vmatprep.subr.bf16.mxu1 %v10138_v49  ;;  %8636 = vmatpush2.bf16.msra.mxu0 %v10079_v54  ;;  %v7022_v49 = vld [vmem:[#allocation2 + $0x11f8] sm:$0xff] }
 0x52d   :  { %8637 = vmatprep.subr.bf16.mxu0 %v10076_v56  ;;  %v10183_v56 = vcombine.low %v7024_v36, %v7026_v35  ;;  %v10180_v55 = vcombine.high %v7020_v3, %v7022_v49  ;;  %v7123_v35 = vld [vmem:[#allocation2 + $0x1eb0] sm:$0xff] }
 0x52f   :  { %8509 = vmatpush2.bf16.msra.mxu1 %v10137_v28  ;;  %v7016_v28 = vld [vmem:[#allocation2 + $0x1138] sm:$0xff] }
 0x530   :  { %8510 = vmatprep.subr.bf16.mxu1 %v10134_v24  ;;  %8638 = vmatpush2.bf16.msra.mxu0 %v10075_v7  ;;  %v7018_v24 = vld [vmem:[#allocation2 + $0x1178] sm:$0xff]  ;;  %v10238_v7 = vcombine.high %v7079_v50, %v7081_v52 }
 0x531   :  { %8639 = vmatprep.subr.bf16.mxu0 %v10072_v6  ;;  %v10179_v6 = vcombine.low %v7020_v3, %v7022_v49  ;;  %v10176_v19 = vcombine.high %v7016_v28, %v7018_v24  ;;  %v7119_v3 = vld [vmem:[#allocation2 + $0x1e30] sm:$0xff] }
 0x532   :  { %v7121_v49 = vld [vmem:[#allocation2 + $0x1e70] sm:$0xff] }
 0x533   :  { %8511 = vmatpush2.bf16.msra.mxu1 %v10133_v2  ;;  %v7012_v2 = vld [vmem:[#allocation2 + $0x10b8] sm:$0xff] }
 0x534   :  { %8566 = vmatprep.subr.bf16.mxu1 %v10258_v10  ;;  %8640 = vmatpush2.bf16.msra.mxu0 %v10071_v1  ;;  %v7014_v10 = vld [vmem:[#allocation2 + $0x10f8] sm:$0xff]  ;;  %v10234_v1 = vcombine.high %v7075_v16, %v7077_v61  ;;  %v10277_v61 = vcombine.low %v7119_v3, %v7121_v49 }
 0x535   :  { %8695 = vmatprep.subr.bf16.mxu0 %v10196_v17  ;;  %v10175_v17 = vcombine.low %v7016_v28, %v7018_v24  ;;  %v7115_v28 = vld [vmem:[#allocation2 + $0x1db0] sm:$0xff] }
 0x536   :  { %8513 = vmatmul.mubr.bf16.vlgmr.msra.gmra.mxu1 %v10847_v25  ;;  %v10430_v26 = vpop.f32.mrf.mxu0  ;;  %v7117_v24 = vld [vmem:[#allocation2 + $0x1df0] sm:$0xff] }
 0x537   :  { %8567 = vmatpush1.bf16.msra.mxu1 %v10257_v4  ;;  %8598 = vmatprep.mubr.bf16.mxu1 %v10866_v33  ;;  %v10172_v4 = vcombine.high %v7012_v2, %v7014_v10 }
 0x538   :  { %v10431_v44 = vpop.f32.mrf.mxu0  ;;  %8568 = vmatprep.subr.bf16.mxu1 %v10254_v31  ;;  %8642 = vmatmul.mubr.bf16.vlgmr.msra.gmra.mxu0 %v10833_v21  ;;  %v7083_v21 = vld [vmem:[#allocation2 + $0x19b0] sm:$0xff]  ;;  %v7010_v31 = vld [vmem:[#allocation2 + $0x1078] sm:$0xff] }
 0x539   :  { %v11062_v43 = vadd.f32 %v10431_v44, %v10430_v26  ;;  %8696 = vmatpush1.bf16.msra.mxu0 %v10195_v20  ;;  %8727 = vmatprep.mubr.bf16.mxu0 %v10861_v60  ;;  %v10245_v60 = vcombine.low %v7087_v59, %v7089_v9  ;;  %v10242_v54 = vcombine.high %v7083_v21, %v7085_v38  ;;  %v7133_v20 = vld [vmem:[#allocation2 + $0x1ff0] sm:$0xff] }
 0x53a   :  { %v10433_v51 = vpop.f32.mrf.mxu0  ;;  %8697 = vmatprep.subr.bf16.mxu0 %v10192_v15  ;;  %v10241_v8 = vcombine.low %v7083_v21, %v7085_v38  ;;  %v10171_v26 = vcombine.low %v7012_v2, %v7014_v10  ;;  %v10168_v15 = vcombine.high %v7008_v58, %v7010_v31  ;;  %v10290_v44 = vcombine.high %v7131_v22, %v7133_v20  ;;  %v7129_v59 = vld [vmem:[#allocation2 + $0x1f70] sm:$0xff] }
 0x53b   :  { %8569 = vmatpush1.bf16.msra.mxu1 %v10253_v27  ;;  %v10229_v27 = vcombine.low %v7071_v11, %v7073_v14  ;;  %v10167_v9 = vcombine.low %v7008_v58, %v7010_v31  ;;  %v7111_v2 = vld [vmem:[#allocation2 + $0x1d30] sm:$0xff]  ;;  %v10273_v14 = vcombine.low %v7115_v28, %v7117_v24 }
 0x53c   :  { %v10434_v37 = vpop.f32.mrf.mxu0  ;;  %8570 = vmatprep.subr.bf16.mxu1 %v10250_v45  ;;  %v7127_v45 = vld [vmem:[#allocation2 + $0x1f30] sm:$0xff] }
 0x53d   :  { %v11065_v23 = vadd.f32 %v10434_v37, %v10433_v51  ;;  %8698 = vmatpush1.bf16.msra.mxu0 %v10191_v34  ;;  %v10228_v34 = vcombine.high %v7068_v29, %v7070_v30  ;;  %v10289_v51 = vcombine.low %v7131_v22, %v7133_v20  ;;  %v10286_v36 = vcombine.high %v7127_v45, %v7129_v59  ;;  %v7125_v37 = vld [vmem:[#allocation2 + $0x1ef0] sm:$0xff] }
 0x53e   :  { %8699 = vmatprep.subr.bf16.mxu0 %v10188_v39  ;;  %v7064_v39 = vld [vmem:[#allocation2 + $0x1738] sm:$0xff]  ;;  %v10285_v38 = vcombine.low %v7127_v45, %v7129_v59  ;;  %v10281_v52 = vcombine.low %v7123_v35, %v7125_v37  ;;  %v7113_v10 = vld [vmem:[#allocation2 + $0x1d70] sm:$0xff] }
 0x53f   :  { %8571 = vmatpush1.bf16.msra.mxu1 %v10249_v42  ;;  %v7066_v42 = vld [vmem:[#allocation2 + $0x1778] sm:$0xff]  ;;  %v7107_v58 = vld [vmem:[#allocation2 + $0x1cb0] sm:$0xff]  ;;  %v10269_v20 = vcombine.low %v7111_v2, %v7113_v10 }
 0x540   :  { %8572 = vmatprep.subr.bf16.mxu1 %v10246_v12  ;;  %v10227_v12 = vcombine.low %v7068_v29, %v7070_v30  ;;  %v10224_v21 = vcombine.high %v7064_v39, %v7066_v42  ;;  %v7109_v31 = vld [vmem:[#allocation2 + $0x1cf0] sm:$0xff] }
 0x541   :  { %8700 = vmatpush1.bf16.msra.mxu0 %v10187_v40  ;;  %v7060_v40 = vld [vmem:[#allocation2 + $0x16b8] sm:$0xff]  ;;  %v7103_v29 = vld [vmem:[#allocation2 + $0x1c30] sm:$0xff]  ;;  %v10265_v59 = vcombine.low %v7107_v58, %v7109_v31 }
 0x542   :  { %8701 = vmatprep.subr.bf16.mxu0 %v10184_v41  ;;  %v7062_v41 = vld [vmem:[#allocation2 + $0x16f8] sm:$0xff]  ;;  %v7105_v30 = vld [vmem:[#allocation2 + $0x1c70] sm:$0xff] }
 0x543   :  { %8573 = vmatpush1.bf16.msra.mxu1 %v10245_v60  ;;  %v10282_v60 = vcombine.high %v7123_v35, %v7125_v37  ;;  %v10220_v50 = vcombine.high %v7060_v40, %v7062_v41  ;;  %v10261_v37 = vcombine.low %v7103_v29, %v7105_v30 }
 0x544   :  { %8574 = vmatprep.subr.bf16.mxu1 %v10242_v54  ;;  %v10223_v54 = vcombine.low %v7064_v39, %v7066_v42  ;;  %v6972_v39 = vld [vmem:[#allocation2 + $0xbb8] sm:$0xff] }
 0x545   :  { %8702 = vmatpush1.bf16.msra.mxu0 %v10183_v56  ;;  %v7056_v56 = vld [vmem:[#allocation2 + $0x1638] sm:$0xff] }
 0x546   :  { %8703 = vmatprep.subr.bf16.mxu0 %v10180_v55  ;;  %v7058_v55 = vld [vmem:[#allocation2 + $0x1678] sm:$0xff] }
 0x547   :  { %8575 = vmatpush1.bf16.msra.mxu1 %v10241_v8  ;;  %v10278_v8 = vcombine.high %v7119_v3, %v7121_v49  ;;  %v10216_v16 = vcombine.high %v7056_v56, %v7058_v55  ;;  %v6974_v42 = vld [vmem:[#allocation2 + $0xbf8] sm:$0xff] }
 0x548   :  { %8576 = vmatprep.subr.bf16.mxu1 %v10238_v7  ;;  %v10219_v7 = vcombine.low %v7060_v40, %v7062_v41  ;;  %v10131_v41 = vcombine.low %v6972_v39, %v6974_v42  ;;  %v6964_v3 = vld [vmem:[#allocation2 + $0xab8] sm:$0xff] }
 0x549   :  { %8704 = vmatpush1.bf16.msra.mxu0 %v10179_v6  ;;  %v7052_v6 = vld [vmem:[#allocation2 + $0x15b8] sm:$0xff] }
 0x54a   :  { %8705 = vmatprep.subr.bf16.mxu0 %v10176_v19  ;;  %v7054_v19 = vld [vmem:[#allocation2 + $0x15f8] sm:$0xff] }
 0x54b   :  { %8577 = vmatpush1.bf16.msra.mxu1 %v10237_v62  ;;  %v10274_v62 = vcombine.high %v7115_v28, %v7117_v24  ;;  %v10212_v11 = vcombine.high %v7052_v6, %v7054_v19  ;;  %v6966_v49 = vld [vmem:[#allocation2 + $0xaf8] sm:$0xff] }
 0x54c   :  { %8578 = vmatprep.subr.bf16.mxu1 %v10234_v1  ;;  %v10215_v1 = vcombine.low %v7056_v56, %v7058_v55  ;;  %v6962_v56 = vld [vmem:[#allocation2 + $0xa78] sm:$0xff]  ;;  %v10123_v55 = vcombine.low %v6964_v3, %v6966_v49 }
 0x54d   :  { %8706 = vmatpush1.bf16.msra.mxu0 %v10175_v17  ;;  %v7048_v17 = vld [vmem:[#allocation2 + $0x1538] sm:$0xff] }
 0x54e   :  { %8707 = vmatprep.subr.bf16.mxu0 %v10172_v4  ;;  %v7050_v4 = vld [vmem:[#allocation2 + $0x1578] sm:$0xff] }
 0x54f   :  { %8579 = vmatpush1.bf16.msra.mxu1 %v10233_v32  ;;  %v10270_v32 = vcombine.high %v7111_v2, %v7113_v10  ;;  %v10208_v22 = vcombine.high %v7048_v17, %v7050_v4  ;;  %v6956_v28 = vld [vmem:[#allocation2 + $0x9b8] sm:$0xff] }
 0x550   :  { %8580 = vmatprep.subr.bf16.mxu1 %v10230_v18  ;;  %v10211_v18 = vcombine.low %v7052_v6, %v7054_v19  ;;  %v6958_v24 = vld [vmem:[#allocation2 + $0x9f8] sm:$0xff]  ;;  %v10610_v6 = vld [vmem:[#allocation7 + $0x370] sm:$0xff]  }
 0x551   :  { %8708 = vmatpush1.bf16.msra.mxu0 %v10171_v26  ;;  %v7044_v26 = vld [vmem:[#allocation2 + $0x14b8] sm:$0xff]  ;;  %v10116_v19 = vcombine.high %v6956_v28, %v6958_v24  ;;  %v10115_v2 = vcombine.low %v6956_v28, %v6958_v24 }
 0x552   :  { %8709 = vmatprep.subr.bf16.mxu0 %v10168_v15  ;;  %v7046_v15 = vld [vmem:[#allocation2 + $0x14f8] sm:$0xff] }
 0x553   :  { %8581 = vmatpush1.bf16.msra.mxu1 %v10229_v27  ;;  %v10266_v27 = vcombine.high %v7107_v58, %v7109_v31  ;;  %v10204_v45 = vcombine.high %v7044_v26, %v7046_v15  ;;  %v10612_v10 = vld [vmem:[#allocation7 + $0x368] sm:$0xff]  }
 0x554   :  { %8582 = vmatprep.subr.bf16.mxu1 %v10290_v44  ;;  %v10207_v44 = vcombine.low %v7048_v17, %v7050_v4  ;;  %v10613_v17 = vld [vmem:[#allocation7 + $0x328] sm:$0xff]  }
 0x555   :  { %8710 = vmatpush1.bf16.msra.mxu0 %v10167_v9  ;;  %v7040_v9 = vld [vmem:[#allocation2 + $0x1438] sm:$0xff] }
 0x556   :  { %8711 = vmatprep.subr.bf16.mxu0 %v10228_v34  ;;  %v7042_v34 = vld [vmem:[#allocation2 + $0x1478] sm:$0xff] }
 0x557   :  { %8583 = vmatpush2.bf16.msra.mxu1 %v10289_v51  ;;  %v10262_v51 = vcombine.high %v7103_v29, %v7105_v30  ;;  %v10200_v35 = vcombine.high %v7040_v9, %v7042_v34  ;;  %v10199_v40 = vcombine.low %v7040_v9, %v7042_v34  ;;  %v6944_v31 = vld [vmem:[#allocation2 + $0x838] sm:$0xff]  ;;  %v10617_v30 = vld [vmem:[#allocation7 + $0x318] sm:$0xff]  }
 0x558   :  { %8584 = vmatprep.subr.bf16.mxu1 %v10286_v36  ;;  %v10203_v36 = vcombine.low %v7044_v26, %v7046_v15  ;;  %v10616_v26 = vld [vmem:[#allocation7 + $0x358] sm:$0xff]   ;;  %v7006_v29 = vld [vmem:[#allocation2 + $0xff8] sm:$0xff] }
 0x559   :  { %8712 = vmatpush2.bf16.msra.mxu0 %v10227_v12  ;;  %v10132_v12 = vcombine.high %v6972_v39, %v6974_v42  ;;  %v7002_v9 = vld [vmem:[#allocation2 + $0xf78] sm:$0xff] }
 0x55a   :  { %8713 = vmatprep.subr.bf16.mxu0 %v10224_v21  ;;  %v6968_v21 = vld [vmem:[#allocation2 + $0xb38] sm:$0xff] }
 0x55b   :  { %8585 = vmatpush2.bf16.msra.mxu1 %v10285_v38  ;;  %v6970_v38 = vld [vmem:[#allocation2 + $0xb78] sm:$0xff] }
 0x55c   :  { %8586 = vmatprep.subr.bf16.mxu1 %v10282_v60  ;;  %v10128_v60 = vcombine.high %v6968_v21, %v6970_v38  ;;  %v6996_v39 = vld [vmem:[#allocation2 + $0xeb8] sm:$0xff] }
 0x55d   :  { %8714 = vmatpush2.bf16.msra.mxu0 %v10223_v54  ;;  %v10127_v54 = vcombine.low %v6968_v21, %v6970_v38  ;;  %v6998_v42 = vld [vmem:[#allocation2 + $0xef8] sm:$0xff] }
 0x55e   :  { %8715 = vmatprep.subr.bf16.mxu0 %v10220_v50  ;;  %v10124_v50 = vcombine.high %v6964_v3, %v6966_v49  ;;  %v10155_v21 = vcombine.low %v6996_v39, %v6998_v42  ;;  %v6984_v49 = vld [vmem:[#allocation2 + $0xd38] sm:$0xff] }
 0x55f   :  { %8587 = vmatpush2.bf16.msra.mxu1 %v10281_v52  ;;  %v6960_v52 = vld [vmem:[#allocation2 + $0xa38] sm:$0xff] }
 0x560   :  { %8588 = vmatprep.subr.bf16.mxu1 %v10278_v8  ;;  %v10120_v8 = vcombine.high %v6960_v52, %v6962_v56  ;;  %v6976_v24 = vld [vmem:[#allocation2 + $0xc38] sm:$0xff] }
 0x561   :  { %8716 = vmatpush2.bf16.msra.mxu0 %v10219_v7  ;;  %v10119_v7 = vcombine.low %v6960_v52, %v6962_v56  ;;  %v6980_v56 = vld [vmem:[#allocation2 + $0xcb8] sm:$0xff] }
 0x562   :  { %8717 = vmatprep.subr.bf16.mxu0 %v10216_v16  ;;  %v10608_v16 = vld [vmem:[#allocation7 + $0x378] sm:$0xff]  }
 0x563   :  { %8589 = vmatpush2.bf16.msra.mxu1 %v10277_v61  ;;  %v10609_v61 = vld [vmem:[#allocation7 + $0x338] sm:$0xff]  }
 0x564   :  { %8590 = vmatprep.subr.bf16.mxu1 %v10274_v62  ;;  %v6954_v62 = vld [vmem:[#allocation2 + $0x978] sm:$0xff] }
 0x565   :  { %8718 = vmatpush2.bf16.msra.mxu0 %v10215_v1 }
 0x566   :  { %8719 = vmatprep.subr.bf16.mxu0 %v10212_v11  ;;  %v6948_v11 = vld [vmem:[#allocation2 + $0x8b8] sm:$0xff] }
 0x567   :  { %8591 = vmatpush2.bf16.msra.mxu1 %v10273_v14  ;;  %v6950_v14 = vld [vmem:[#allocation2 + $0x8f8] sm:$0xff] }
 0x568   :  { %8592 = vmatprep.subr.bf16.mxu1 %v10270_v32  ;;  %v10614_v32 = vld [vmem:[#allocation7 + $0x360] sm:$0xff]   ;;  %v10108_v58 = vcombine.high %v6948_v11, %v6950_v14 }
 0x569   :  { %8720 = vmatpush2.bf16.msra.mxu0 %v10211_v18  ;;  %v6946_v18 = vld [vmem:[#allocation2 + $0x878] sm:$0xff] }
 0x56a   :  { %8721 = vmatprep.subr.bf16.mxu0 %v10208_v22  ;;  %v10615_v22 = vld [vmem:[#allocation7 + $0x320] sm:$0xff]   ;;  %v10104_v15 = vcombine.high %v6944_v31, %v6946_v18 }
 0x56b   :  { %8593 = vmatpush2.bf16.msra.mxu1 %v10269_v20  ;;  %v10107_v20 = vcombine.low %v6948_v11, %v6950_v14  ;;  %v7092_v11 = vld [vmem:[#allocation2 + $0x1ab8] sm:$0xff] }
 0x56c   :  { %8594 = vmatprep.subr.bf16.mxu1 %v10266_v27  ;;  %v7004_v27 = vld [vmem:[#allocation2 + $0xfb8] sm:$0xff] }
 0x56d   :  { %8722 = vmatpush2.bf16.msra.mxu0 %v10207_v44  ;;  %v10103_v44 = vcombine.low %v6944_v31, %v6946_v18  ;;  %v10163_v34 = vcombine.low %v7004_v27, %v7006_v29  ;;  %v7094_v14 = vld [vmem:[#allocation2 + $0x1af8] sm:$0xff] }
 0x56e   :  { %8723 = vmatprep.subr.bf16.mxu0 %v10204_v45  ;;  %v10164_v45 = vcombine.high %v7004_v27, %v7006_v29  ;;  %v10252_v18 = vcombine.high %v7092_v11, %v7094_v14  ;;  %v10620_v27 = vld [vmem:[#allocation7 + $0x348] sm:$0xff]  }
 0x56f   :  { %8595 = vmatpush2.bf16.msra.mxu1 %v10265_v59  ;;  %v7000_v59 = vld [vmem:[#allocation2 + $0xf38] sm:$0xff] }
 0x570   :  { %8596 = vmatprep.subr.bf16.mxu1 %v10262_v51  ;;  %v10160_v51 = vcombine.high %v7000_v59, %v7002_v9 }
 0x571   :  { %8724 = vmatpush2.bf16.msra.mxu0 %v10203_v36  ;;  %v10159_v36 = vcombine.low %v7000_v59, %v7002_v9  ;;  %v7084_v9 = vld [vmem:[#allocation2 + $0x19b8] sm:$0xff] }
 0x572   :  { %8725 = vmatprep.subr.bf16.mxu0 %v10200_v35  ;;  %v10156_v35 = vcombine.high %v6996_v39, %v6998_v42 }
 0x573   :  { %8597 = vmatpush2.bf16.msra.mxu1 %v10261_v37  ;;  %v6992_v37 = vld [vmem:[#allocation2 + $0xe38] sm:$0xff] }
 0x574   :  { %8652 = vmatprep.subr.bf16.mxu1 %v10132_v12  ;;  %v6994_v12 = vld [vmem:[#allocation2 + $0xe78] sm:$0xff] }
 0x575   :  { %8726 = vmatpush2.bf16.msra.mxu0 %v10199_v40  ;;  %v10152_v38 = vcombine.high %v6992_v37, %v6994_v12  ;;  %v6988_v40 = vld [vmem:[#allocation2 + $0xdb8] sm:$0xff] }
 0x576   :  { %8599 = vmatmul.mubr.bf16.vlgmr.msra.gmra.mxu1 %v10877_v47  ;;  %10458 = vmatprep.subr.bf16.mxu0 %v10608_v16 }
 0x577   :  { %8653 = vmatpush1.bf16.msra.mxu1 %v10131_v41  ;;  %8684 = vmatprep.mubr.bf16.mxu1 %v10827_v63  ;;  %v6952_v63 = vld [vmem:[#allocation2 + $0x938] sm:$0xff] }
 0x578   :  { %8654 = vmatprep.subr.bf16.mxu1 %v10128_v60  ;;  %8728 = vmatmul.mubr.bf16.vlgmr.msra.gmra.mxu0 %v10873_v46  ;;  %v10611_v46 = vld [vmem:[#allocation7 + $0x330] sm:$0xff]   ;;  %v10112_v1 = vcombine.high %v6952_v63, %v6954_v62  ;;  %v10111_v4 = vcombine.low %v6952_v63, %v6954_v62  ;;  %v6990_v41 = vld [vmem:[#allocation2 + $0xdf8] sm:$0xff]  ;;  %v10151_v60 = vcombine.low %v6992_v37, %v6994_v12 }
 0x579   :  { %10459 = vmatpush3.bf16.msra.mxu0 %v10609_v61  ;;  %v10148_v3 = vcombine.high %v6988_v40, %v6990_v41  ;;  %v7080_v37 = vld [vmem:[#allocation2 + $0x1938] sm:$0xff] }
 0x57a   :  { %10460 = vmatprep.subr.bf16.mxu0 %v10610_v6  ;;  %v7100_v6 = vld [vmem:[#allocation2 + $0x1bb8] sm:$0xff] }
 0x57b   :  { %8655 = vmatpush1.bf16.msra.mxu1 %v10127_v54  ;;  %v6986_v54 = vld [vmem:[#allocation2 + $0xd78] sm:$0xff] }
 0x57c   :  { %8656 = vmatprep.subr.bf16.mxu1 %v10124_v50  ;;  %v10147_v50 = vcombine.low %v6988_v40, %v6990_v41  ;;  %v10144_v52 = vcombine.high %v6984_v49, %v6986_v54  ;;  %v7082_v12 = vld [vmem:[#allocation2 + $0x1978] sm:$0xff] }
 0x57d   :  { %10461 = vmatpush3.bf16.msra.mxu0 %v10611_v46  ;;  %v7096_v46 = vld [vmem:[#allocation2 + $0x1b38] sm:$0xff] }
 0x57e   :  { %10462 = vmatprep.subr.bf16.mxu0 %v10612_v10  ;;  %v7078_v40 = vld [vmem:[#allocation2 + $0x18f8] sm:$0xff] }
 0x57f   :  { %8657 = vmatpush1.bf16.msra.mxu1 %v10123_v55  ;;  %v6982_v55 = vld [vmem:[#allocation2 + $0xcf8] sm:$0xff] }
 0x580   :  { %8658 = vmatprep.subr.bf16.mxu1 %v10120_v8  ;;  %v10143_v8 = vcombine.low %v6984_v49, %v6986_v54  ;;  %v10140_v28 = vcombine.high %v6980_v56, %v6982_v55  ;;  %v10139_v16 = vcombine.low %v6980_v56, %v6982_v55  ;;  %v7132_v54 = vld [vmem:[#allocation2 + $0x1fb8] sm:$0xff] }
 0x581   :  { %10463 = vmatpush3.bf16.msra.mxu0 %v10613_v17  ;;  %v7128_v55 = vld [vmem:[#allocation2 + $0x1f38] sm:$0xff] }
 0x582   :  { %10464 = vmatprep.subr.bf16.mxu0 %v10614_v32 }
 0x583   :  { %8659 = vmatpush1.bf16.msra.mxu1 %v10119_v7  ;;  %v6978_v7 = vld [vmem:[#allocation2 + $0xc78] sm:$0xff] }
 0x584   :  { %8660 = vmatprep.subr.bf16.mxu1 %v10116_v19  ;;  %v10136_v61 = vcombine.high %v6976_v24, %v6978_v7  ;;  %v7102_v19 = vld [vmem:[#allocation2 + $0x1bf8] sm:$0xff]  ;;  %v10135_v63 = vcombine.low %v6976_v24, %v6978_v7 }
 0x585   :  { %10465 = vmatpush3.bf16.msra.mxu0 %v10615_v22  ;;  %v10260_v62 = vcombine.high %v7100_v6, %v7102_v19  ;;  %v10259_v10 = vcombine.low %v7100_v6, %v7102_v19  ;;  %v7124_v7 = vld [vmem:[#allocation2 + $0x1eb8] sm:$0xff] }
 0x586   :  { %10466 = vmatprep.subr.bf16.mxu0 %v10616_v26  ;;  %v7090_v26 = vld [vmem:[#allocation2 + $0x1a78] sm:$0xff] }
 0x587   :  { %8661 = vmatpush1.bf16.msra.mxu1 %v10115_v2  ;;  %v7098_v2 = vld [vmem:[#allocation2 + $0x1b78] sm:$0xff] }
 0x588   :  { %8662 = vmatprep.subr.bf16.mxu1 %v10112_v1  ;;  %v10256_v1 = vcombine.high %v7096_v46, %v7098_v2  ;;  %v10255_v32 = vcombine.low %v7096_v46, %v7098_v2  ;;  %v7120_v19 = vld [vmem:[#allocation2 + $0x1e38] sm:$0xff] }
 0x589   :  { %10467 = vmatpush3.bf16.msra.mxu0 %v10617_v30  ;;  %v10621_v30 = vld [vmem:[#allocation7 + $0x308] sm:$0xff]  }
 0x58a   :  { %v7116_v2 = vld [vmem:[#allocation2 + $0x1db8] sm:$0xff] }
 0x58b   :  { %8663 = vmatpush1.bf16.msra.mxu1 %v10111_v4  ;;  %v10618_v4 = vld [vmem:[#allocation7 + $0x350] sm:$0xff]  }
 0x58c   :  { %8664 = vmatprep.subr.bf16.mxu1 %v10108_v58  ;;  %v10619_v58 = vld [vmem:[#allocation7 + $0x310] sm:$0xff]   ;;  %10468 = vmatprep.subr.bf16.mxu0 %v10618_v4 }
 0x58d   :  { %10469 = vmatpush3.bf16.msra.mxu0 %v10619_v58  ;;  %v7108_v58 = vld [vmem:[#allocation2 + $0x1cb8] sm:$0xff] }
 0x58e   :  { %10470 = vmatprep.subr.bf16.mxu0 %v10620_v27 }
 0x58f   :  { %8665 = vmatpush1.bf16.msra.mxu1 %v10107_v20  ;;  %v7088_v20 = vld [vmem:[#allocation2 + $0x1a38] sm:$0xff] }
 0x590   :  { %8666 = vmatprep.subr.bf16.mxu1 %v10104_v15  ;;  %v10247_v42 = vcombine.low %v7088_v20, %v7090_v26 }
 0x591   :  { %10471 = vmatpush3.bf16.msra.mxu0 %v10621_v30  ;;  %v10625_v30 = vld [vmem:[#allocation7 + $0x3b8] sm:$0xff]  }
 0x593   :  { %8667 = vmatpush1.bf16.msra.mxu1 %v10103_v44 }
 0x594   :  { %8668 = vmatprep.subr.bf16.mxu1 %v10164_v45  ;;  %v10248_v45 = vcombine.high %v7088_v20, %v7090_v26  ;;  %v7104_v20 = vld [vmem:[#allocation2 + $0x1c38] sm:$0xff] }
 0x595   :  { %v7106_v26 = vld [vmem:[#allocation2 + $0x1c78] sm:$0xff] }
 0x596   :  { %v10264_v27 = vcombine.high %v7104_v20, %v7106_v26 }
 0x597   :  { %8669 = vmatpush2.bf16.msra.mxu1 %v10163_v34  ;;  %v7086_v34 = vld [vmem:[#allocation2 + $0x19f8] sm:$0xff] }
 0x598   :  { %8670 = vmatprep.subr.bf16.mxu1 %v10160_v51  ;;  %v10622_v51 = vld [vmem:[#allocation7 + $0x340] sm:$0xff]  }
 0x599   :  { %10472 = vmatprep.subr.bf16.mxu0 %v10622_v51  ;;  %v10631_v51 = vld [vmem:[#allocation7 + $0x3a0] sm:$0xff]  }
 0x59b   :  { %8671 = vmatpush2.bf16.msra.mxu1 %v10159_v36  ;;  %v10244_v36 = vcombine.high %v7084_v9, %v7086_v34 }
 0x59c   :  { %8672 = vmatprep.subr.bf16.mxu1 %v10156_v35 }
 0x59f   :  { %8673 = vmatpush2.bf16.msra.mxu1 %v10155_v21  ;;  %v10240_v21 = vcombine.high %v7080_v37, %v7082_v12 }
 0x5a0   :  { %8674 = vmatprep.subr.bf16.mxu1 %v10152_v38  ;;  %v7076_v38 = vld [vmem:[#allocation2 + $0x18b8] sm:$0xff] }
 0x5a1   :  { %v10236_v41 = vcombine.high %v7076_v38, %v7078_v40  ;;  %v10235_v49 = vcombine.low %v7076_v38, %v7078_v40 }
 0x5a3   :  { %8675 = vmatpush2.bf16.msra.mxu1 %v10151_v60  ;;  %v7072_v60 = vld [vmem:[#allocation2 + $0x1838] sm:$0xff] }
 0x5a4   :  { %8676 = vmatprep.subr.bf16.mxu1 %v10148_v3  ;;  %v7074_v3 = vld [vmem:[#allocation2 + $0x1878] sm:$0xff] }
 0x5a7   :  { %8677 = vmatpush2.bf16.msra.mxu1 %v10147_v50  ;;  %v7134_v50 = vld [vmem:[#allocation2 + $0x1ff8] sm:$0xff] }
 0x5a8   :  { %8678 = vmatprep.subr.bf16.mxu1 %v10144_v52  ;;  %v10231_v52 = vcombine.low %v7072_v60, %v7074_v3  ;;  %v10292_v56 = vcombine.high %v7132_v54, %v7134_v50 }
 0x5ab   :  { %8679 = vmatpush2.bf16.msra.mxu1 %v10143_v8  ;;  %v7130_v8 = vld [vmem:[#allocation2 + $0x1f78] sm:$0xff] }
 0x5ac   :  { %8680 = vmatprep.subr.bf16.mxu1 %v10140_v28  ;;  %v10291_v28 = vcombine.low %v7132_v54, %v7134_v50  ;;  %v10288_v24 = vcombine.high %v7128_v55, %v7130_v8 }
 0x5af   :  { %8681 = vmatpush2.bf16.msra.mxu1 %v10139_v16  ;;  %v7126_v16 = vld [vmem:[#allocation2 + $0x1ef8] sm:$0xff] }
 0x5b0   :  { %8682 = vmatprep.subr.bf16.mxu1 %v10136_v61  ;;  %v10287_v61 = vcombine.low %v7128_v55, %v7130_v8  ;;  %v10284_v6 = vcombine.high %v7124_v7, %v7126_v16 }
 0x5b3   :  { %8683 = vmatpush2.bf16.msra.mxu1 %v10135_v63  ;;  %v7122_v63 = vld [vmem:[#allocation2 + $0x1e78] sm:$0xff] }
 0x5b4   :  { %8738 = vmatprep.subr.bf16.mxu1 %v10260_v62  ;;  %v10283_v62 = vcombine.low %v7124_v7, %v7126_v16  ;;  %v10280_v46 = vcombine.high %v7120_v19, %v7122_v63  ;;  %v10635_v16 = vld [vmem:[#allocation7 + $0x390] sm:$0xff]  }
 0x5b6   :  { %8685 = vmatmul.mubr.bf16.vlgmr.msra.gmra.mxu1 %v10847_v25  ;;  %v10452_v17 = vpop.f32.mrf.mxu1  ;;  %v10251_v25 = vcombine.low %v7092_v11, %v7094_v14  ;;  %v7112_v14 = vld [vmem:[#allocation2 + $0x1d38] sm:$0xff] }
 0x5b7   :  { %8739 = vmatpush1.bf16.msra.mxu1 %v10259_v10  ;;  %8770 = vmatprep.mubr.bf16.mxu1 %v10866_v33  ;;  %v7118_v10 = vld [vmem:[#allocation2 + $0x1df8] sm:$0xff] }
 0x5b8   :  { %v10453_v31 = vpop.f32.mrf.mxu1  ;;  %8740 = vmatprep.subr.bf16.mxu1 %v10256_v1  ;;  %v10279_v1 = vcombine.low %v7120_v19, %v7122_v63  ;;  %v10276_v11 = vcombine.high %v7116_v2, %v7118_v10  ;;  %v10275_v4 = vcombine.low %v7116_v2, %v7118_v10 }
 0x5b9   :  { %v10454_v22 = vadd.f32 %v10453_v31, %v10452_v17  ;;  %v7114_v17 = vld [vmem:[#allocation2 + $0x1d78] sm:$0xff] }
 0x5ba   :  { %v10455_v15 = vpop.f32.mrf.mxu1  ;;  %v7110_v31 = vld [vmem:[#allocation2 + $0x1cf8] sm:$0xff] }
 0x5bb   :  { %v6871_v29 = vadd.f32 %v10454_v22, %v11062_v43  ;;  %8741 = vmatpush1.bf16.msra.mxu1 %v10255_v32  ;;  %v10623_v43 = vld [vmem:[#allocation7 + $0x300] sm:$0xff]   ;;  %v10272_v32 = vcombine.high %v7112_v14, %v7114_v17  ;;  %v10268_v22 = vcombine.high %v7108_v58, %v7110_v31 }
 0x5bc   :  { %v10456_v44 = vpop.f32.mrf.mxu1  ;;  %8742 = vmatprep.subr.bf16.mxu1 %v10252_v18  ;;  %10473 = vmatpush3.bf16.msra.mxu0 %v10623_v43  ;;  %v10271_v18 = vcombine.low %v7112_v14, %v7114_v17 }
 0x5bd   :  { %v11074_v33 = vadd.f32 %v6871_v29, %v11016_v53  ;;  %v10457_v59 = vadd.f32 %v10456_v44, %v10455_v15  ;;  %v10243_v53 = vcombine.low %v7084_v9, %v7086_v34  ;;  %v10267_v15 = vcombine.low %v7108_v58, %v7110_v31  ;;  %v10626_v44 = vld [vmem:[#allocation7 + $0x3f0] sm:$0xff]   ;;  %v10629_v9 = vld [vmem:[#allocation7 + $0x3a8] sm:$0xff]   ;;  %v10630_v34 = vld [vmem:[#allocation7 + $0x3e0] sm:$0xff]  }
 0x5be   :  { %v10263_v29 = vcombine.low %v7104_v20, %v7106_v26 }
 0x5bf   :  { %v6874_v39 = vadd.f32 %v10457_v59, %v11065_v23  ;;  %8743 = vmatpush1.bf16.msra.mxu1 %v10251_v25  ;;  %v10239_v23 = vcombine.low %v7080_v37, %v7082_v12  ;;  %v10624_v25 = vld [vmem:[#allocation7 + $0x3f8] sm:$0xff]   ;;  %v10628_v59 = vld [vmem:[#allocation7 + $0x3e8] sm:$0xff]  }
 0x5c0   :  { %8744 = vmatprep.subr.bf16.mxu1 %v10248_v45  ;;  %v10627_v45 = vld [vmem:[#allocation7 + $0x3b0] sm:$0xff]  }
 0x5c1   :  { %v11078_v35 = vadd.f32 %v6874_v39, %v11018_v48  ;;  %v10232_v48 = vcombine.high %v7072_v60, %v7074_v3  ;;  %v10632_v39 = vld [vmem:[#allocation7 + $0x3d8] sm:$0xff]  }
 0x5c3   :  { %8745 = vmatpush1.bf16.msra.mxu1 %v10247_v42  ;;  %v10633_v42 = vld [vmem:[#allocation7 + $0x398] sm:$0xff]  }
 0x5c4   :  { %8746 = vmatprep.subr.bf16.mxu1 %v10244_v36 }
 0x5c7   :  { %8747 = vmatpush1.bf16.msra.mxu1 %v10243_v53  ;;  %v7135_v53 = vld [vmem:[#allocation5 + $0xc] sm:$0xf] }
 0x5c8   :  { %8748 = vmatprep.subr.bf16.mxu1 %v10240_v21  ;;  %v7144_v40 = vrot.slane %v7135_v53, %v10967_v57 }
 0x5cb   :  { %8749 = vmatpush1.bf16.msra.mxu1 %v10239_v23  ;;  %v7140_v23 = vrot.slane %v7135_v53, %v10890_v13 }
 0x5cc   :  { %8750 = vmatprep.subr.bf16.mxu1 %v10236_v41 }
 0x5cf   :  { %8751 = vmatpush1.bf16.msra.mxu1 %v10235_v49 }
 0x5d0   :  { %8752 = vmatprep.subr.bf16.mxu1 %v10232_v48 }
 0x5d3   :  { %8753 = vmatpush1.bf16.msra.mxu1 %v10231_v52 }
 0x5d4   :  { %8754 = vmatprep.subr.bf16.mxu1 %v10292_v56 }
 0x5d7   :  { %8755 = vmatpush2.bf16.msra.mxu1 %v10291_v28 }
 0x5d8   :  { %8756 = vmatprep.subr.bf16.mxu1 %v10288_v24  ;;  %v10634_v24 = vld [vmem:[#allocation7 + $0x3d0] sm:$0xff]  }
 0x5db   :  { %8757 = vmatpush2.bf16.msra.mxu1 %v10287_v61 }
 0x5dc   :  { %8758 = vmatprep.subr.bf16.mxu1 %v10284_v6 }
 0x5df   :  { %8759 = vmatpush2.bf16.msra.mxu1 %v10283_v62  ;;  %v10636_v62 = vld [vmem:[#allocation7 + $0x3c8] sm:$0xff]  }
 0x5e0   :  { %8760 = vmatprep.subr.bf16.mxu1 %v10280_v46 }
 0x5e3   :  { %8761 = vmatpush2.bf16.msra.mxu1 %v10279_v1  ;;  %v10637_v1 = vld [vmem:[#allocation7 + $0x388] sm:$0xff]  }
 0x5e4   :  { %8762 = vmatprep.subr.bf16.mxu1 %v10276_v11 }
 0x5e7   :  { %8763 = vmatpush2.bf16.msra.mxu1 %v10275_v4 }
 0x5e8   :  { %8764 = vmatprep.subr.bf16.mxu1 %v10272_v32  ;;  %v10638_v32 = vld [vmem:[#allocation7 + $0x3c0] sm:$0xff]  }
 0x5eb   :  { %8765 = vmatpush2.bf16.msra.mxu1 %v10271_v18  ;;  %v10639_v18 = vld [vmem:[#allocation7 + $0x380] sm:$0xff]  }
 0x5ec   :  { %8766 = vmatprep.subr.bf16.mxu1 %v10268_v22 }
 0x5ef   :  { %8767 = vmatpush2.bf16.msra.mxu1 %v10267_v15 }
 0x5f0   :  { %8768 = vmatprep.subr.bf16.mxu1 %v10264_v27 }
 0x5f3   :  { %8769 = vmatpush2.bf16.msra.mxu1 %v10263_v29 }
 0x5f4   :  { %10480 = vmatprep.subr.bf16.mxu1 %v10624_v25 }
 0x5f6   :  { %8771 = vmatmul.mubr.bf16.vlgmr.msra.gmra.mxu1 %v10877_v47  ;;  %v8471_v47 = vpop.f32.mrf.mxu0  ;;  %v8514_v12 = vpop.f32.mrf.mxu1 }
 0x5f7   :  { %10481 = vmatpush3.bf16.msra.mxu1 %v10625_v30  ;;  %v8472_v49 = vadd.f32 %v8471_v47, %v7140_v23 }
 0x5f8   :  { %10482 = vmatprep.subr.bf16.mxu1 %v10626_v44  ;;  %v8473_v43 = vpop.f32.mrf.mxu0  ;;  %v8516_v21 = vpop.f32.mrf.mxu1 }
 0x5f9   :  { %v8474_v3 = vadd.f32 %v8473_v43, %v7144_v40  ;;  %v8515_v8 = vadd.f32 %v8514_v12, %v8472_v49 }
 0x5fa   :  { %v8475_v36 = vpop.f32.mrf.mxu0  ;;  %v8518_v41 = vpop.f32.mrf.mxu1 }
 0x5fb   :  { %10483 = vmatpush3.bf16.msra.mxu1 %v10627_v45  ;;  %v8476_v48 = vadd.f32 %v8475_v36, %v7140_v23  ;;  %v8517_v56 = vadd.f32 %v8516_v21, %v8474_v3 }
 0x5fc   :  { %10484 = vmatprep.subr.bf16.mxu1 %v10628_v59  ;;  %v8477_v37 = vpop.f32.mrf.mxu0  ;;  %v8520_v54 = vpop.f32.mrf.mxu1  ;;  %v7152_v59 = vrot.slane %v7135_v53, %v10928_v5 }
 0x5fd   :  { %v8478_v52 = vadd.f32 %v8477_v37, %v7144_v40  ;;  %v8519_v55 = vadd.f32 %v8518_v41, %v8476_v48 }
 0x5fe   :  { %v8557_v38 = vpop.f32.mrf.mxu0 }
 0x5ff   :  { %10485 = vmatpush3.bf16.msra.mxu1 %v10629_v9  ;;  %v8521_v7 = vadd.f32 %v8520_v54, %v8478_v52  ;;  %v8558_v19 = vadd.f32 %v8557_v38, %v8515_v8  ;;  %v7148_v9 = vrot.slane %v7135_v53, %v10925_v0 }
 0x600   :  { %10486 = vmatprep.subr.bf16.mxu1 %v10630_v34  ;;  %v8559_v60 = vpop.f32.mrf.mxu0 }
 0x601   :  { %v8560_v57 = vadd.f32 %v8559_v60, %v8517_v56 }
 0x602   :  { %v8561_v50 = vpop.f32.mrf.mxu0 }
 0x603   :  { %10487 = vmatpush3.bf16.msra.mxu1 %v10631_v51  ;;  %v8562_v13 = vadd.f32 %v8561_v50, %v8519_v55 }
 0x604   :  { %10488 = vmatprep.subr.bf16.mxu1 %v10632_v39  ;;  %v8563_v61 = vpop.f32.mrf.mxu0 }
 0x605   :  { %v8564_v46 = vadd.f32 %v8563_v61, %v8521_v7 }
 0x606   :  { %v8643_v15 = vpop.f32.mrf.mxu0 }
 0x607   :  { %10489 = vmatpush3.bf16.msra.mxu1 %v10633_v42  ;;  %v8644_v42 = vadd.f32 %v8643_v15, %v7148_v9 }
 0x608   :  { %10490 = vmatprep.subr.bf16.mxu1 %v10634_v24  ;;  %v8645_v27 = vpop.f32.mrf.mxu0 }
 0x609   :  { %v8646_v39 = vadd.f32 %v8645_v27, %v7152_v59 }
 0x60a   :  { %v8647_v29 = vpop.f32.mrf.mxu0 }
 0x60b   :  { %10491 = vmatpush3.bf16.msra.mxu1 %v10635_v16  ;;  %v8648_v47 = vadd.f32 %v8647_v29, %v7148_v9 }
 0x60c   :  { %10492 = vmatprep.subr.bf16.mxu1 %v10636_v62  ;;  %v8649_v25 = vpop.f32.mrf.mxu0 }
 0x60d   :  { %v8650_v37 = vadd.f32 %v8649_v25, %v7152_v59 }
 0x60f   :  { %10493 = vmatpush3.bf16.msra.mxu1 %v10637_v1  ;;  %v10325_v1 = vld [vmem:[#allocation8] ss:$0 sm:$0xff] }
 0x610   :  { %10494 = vmatprep.subr.bf16.mxu1 %v10638_v32 }
 0x613   :  { %10495 = vmatpush3.bf16.msra.mxu1 %v10639_v18 }
 0x636   :  { %v8600_v28 = vpop.f32.mrf.mxu1 }
 0x637   :  { %v8601_v11 = vadd.f32 %v8600_v28, %v8558_v19 }
 0x638   :  { %v8602_v6 = vpop.f32.mrf.mxu1  ;;  %v8729_v45 = vpop.f32.mrf.mxu0 }
 0x639   :  { %v8603_v2 = vadd.f32 %v8602_v6, %v8560_v57  ;;  %v8781_v22 = vmax.f32 %v8601_v11, 0.0 }
 0x63a   :  { %v8604_v63 = vpop.f32.mrf.mxu1  ;;  %v8731_v51 = vpop.f32.mrf.mxu0 }
 0x63b   :  { %v8605_v10 = vadd.f32 %v8604_v63, %v8562_v13  ;;  %v8782_v58 = vmax.f32 %v8603_v2, 0.0 }
 0x63c   :  { %v8606_v14 = vpop.f32.mrf.mxu1  ;;  %v8733_v36 = vpop.f32.mrf.mxu0 }
 0x63d   :  { %v8607_v17 = vadd.f32 %v8606_v14, %v8564_v46  ;;  %v8785_v4 = vmax.f32 %v8605_v10, 0.0 }
 0x63e   :  { %v8735_v41 = vpop.f32.mrf.mxu0 }
 0x63f   :  { %v8786_v31 = vmax.f32 %v8607_v17, 0.0  ;;  %v8789_v26 = vpack.c.bf16 %v8785_v4, %v8781_v22 }
 0x641   :  { %v8790_v20 = vpack.c.bf16 %v8786_v31, %v8782_v58 }
 0x643   :  { %9081 = vmatprep.mubr.bf16.mxu0 %v8790_v20 }
 0x644   :  { %9082 = vmatmul.mubr.bf16.vlgmr.msra.gmra.mxu0 %v8789_v26 }
 0x676   :  { %v8686_v30 = vpop.f32.mrf.mxu1 }
 0x677   :  { %v8687_v38 = vadd.f32 %v8686_v30, %v8644_v42 }
 0x678   :  { %v8688_v44 = vpop.f32.mrf.mxu1 }
 0x679   :  { %v8689_v12 = vadd.f32 %v8688_v44, %v8646_v39  ;;  %v8730_v5 = vadd.f32 %v8729_v45, %v8687_v38 }
 0x67a   :  { %v8690_v34 = vpop.f32.mrf.mxu1 }
 0x67b   :  { %v8691_v21 = vadd.f32 %v8690_v34, %v8648_v47  ;;  %v8732_v3 = vadd.f32 %v8731_v51, %v8689_v12 }
 0x67c   :  { %v8692_v43 = vpop.f32.mrf.mxu1 }
 0x67d   :  { %v8693_v23 = vadd.f32 %v8692_v43, %v8650_v37  ;;  %v8734_v49 = vadd.f32 %v8733_v36, %v8691_v21 }
 0x67f   :  { %v8736_v0 = vadd.f32 %v8735_v41, %v8693_v23 }
 0x6b6   :  { %v8772_v40 = vpop.f32.mrf.mxu1 }
 0x6b7   :  { %v8773_v50 = vadd.f32 %v8772_v40, %v8730_v5 }
 0x6b8   :  { %v8774_v60 = vpop.f32.mrf.mxu1 }
 0x6b9   :  { %v8775_v53 = vadd.f32 %v8774_v60, %v8732_v3  ;;  %v8783_v24 = vmax.f32 %v8773_v50, 0.0 }
 0x6ba   :  { %v8776_v48 = vpop.f32.mrf.mxu1 }
 0x6bb   :  { %v8777_v54 = vadd.f32 %v8776_v48, %v8734_v49  ;;  %v8784_v8 = vmax.f32 %v8775_v53, 0.0 }
 0x6bc   :  { %v8778_v52 = vpop.f32.mrf.mxu1 }
 0x6bd   :  { %v8779_v56 = vadd.f32 %v8778_v52, %v8736_v0  ;;  %v8787_v55 = vmax.f32 %v8777_v54, 0.0 }
 0x6bf   :  { %v8788_v28 = vmax.f32 %v8779_v56, 0.0  ;;  %v8791_v16 = vpack.c.bf16 %v8787_v55, %v8783_v24 }
 0x6c1   :  { %v8792_v7 = vpack.c.bf16 %v8788_v28, %v8784_v8 }
 0x6c3   :  { %9122 = vmatprep.mubr.bf16.mxu1 %v8792_v7 }
 0x6c4   :  { %9123 = vmatmul.mubr.bf16.vlgmr.msra.gmra.mxu1 %v8791_v16 }
 0x704   :  { %v10474_v61 = vpop.f32.mrf.mxu0 }
 0x706   :  { %v10475_v6 = vpop.f32.mrf.mxu0 }
 0x707   :  { %v10476_v63 = vadd.f32 %v10475_v6, %v10474_v61 }
 0x708   :  { %v10477_v57 = vpop.f32.mrf.mxu0 }
 0x70a   :  { %v10478_v46 = vpop.f32.mrf.mxu0 }
 0x70b   :  { %v10479_v14 = vadd.f32 %v10478_v46, %v10477_v57 }
 0x784   :  { %v10496_v13 = vpop.f32.mrf.mxu1 }
 0x786   :  { %v10497_v19 = vpop.f32.mrf.mxu1 }
 0x787   :  { %v10498_v62 = vadd.f32 %v10497_v19, %v10496_v13 }
 0x788   :  { %v10499_v2 = vpop.f32.mrf.mxu1 }
 0x789   :  { %v9125_v10 = vadd.f32 %v10498_v62, %v10476_v63 }
 0x78a   :  { %v10500_v11 = vpop.f32.mrf.mxu1 }
 0x78b   :  { %v9131_v17 = vadd.f32 %v9125_v10, %v11074_v33  ;;  %v10501_v4 = vadd.f32 %v10500_v11, %v10499_v2 }
 0x78d   :  { %v9140_v32 = vadd.f32 %v10325_v1, %v9131_v17  ;;  %v9128_v58 = vadd.f32 %v10501_v4, %v10479_v14 }
 0x78f   :  { %v9142_v31 = vmax.f32 %v9140_v32, 0.0  ;;  %v9132_v18 = vadd.f32 %v9128_v58, %v11078_v35 }
 0x791   :  { %9144 = vst [vmem:[#allocation10] sm:$0xff] %v9142_v31  ;;  %v9141_v22 = vadd.f32 %v10325_v1, %v9132_v18 }
 0x793   :  { %v9143_v20 = vmax.f32 %v9141_v22, 0.0 }
 0x795   :  { %9145 = vst [vmem:[#allocation10 + $0x8] sm:$0xff] %v9143_v20 }
 0x796   :  { %10732 = shalt.err (!%p10729_p10)
}
 0x797   :  { %s10757_s6 = smov 128   ;;  %s10758_s7 = smov 8  }
 0x798   :  { %9157 = dma.vmem_to_hbm [thread:$0]  %s9152_s29, 256, %s11095_s5, [#allocation4], %s10757_s6, %s10757_s6, %s10758_s7  }
 0x799   :  { %10747 = dma.done.wait [#allocation4], 256  }
 0x79a   :  { %10748 = vsyncadd [#allocation4], 4294967040 }
 0x79b   :  { %9161 = vsyncpa [#allocation3], 1 }
 0x79c   :  { %9162 = vsyncpa [#allocation6], 1 }
 0x79d   :  { %9163 = vsyncpa [#allocation9], 1 }
 0x79e   :  { %9164 = vsyncpa [#allocation4], 1 }

</bundles_post_ra>
